<compile_context>
chip_gen: v7x
topology: tpu7x:2x2x1
jax: 0.10.0
libtpu: 0.0.40
codegen_flags: <defaults>
</compile_context>

<pallas_src>
import functools

import jax
import jax.numpy as jnp
from jax.experimental import pallas as pl
from jax.experimental.pallas import tpu as pltpu


def _round_up(x, m):
    return (x + m - 1) // m * m


# ---------------------------------------------------------------------------
# One-time, EAGER probe (module import time, never inside a jit trace):
# determine pltpu.roll direction so lane "gather" shifts are always computed
# correctly (we need xs[j] = x[(j + off) % S]).
# ---------------------------------------------------------------------------
def _probe_roll_convention():
    def k(x_ref, o_ref):
        o_ref[...] = pltpu.roll(x_ref[...], 1, axis=1)

    row = jnp.arange(128, dtype=jnp.float32)
    x = jnp.broadcast_to(row, (8, 128))
    try:
        y = pl.pallas_call(
            k, out_shape=jax.ShapeDtypeStruct((8, 128), jnp.float32)
        )(x)
        first = float(jax.device_get(y)[0, 0])
    except Exception:
        return True  # fall back to jnp.roll convention
    if first == 127.0:   # roll(x, r)[j] = x[(j - r) % n]  (jnp.roll convention)
        return True
    if first == 1.0:     # roll(x, r)[j] = x[(j + r) % n]
        return False
    return True


_ROLL_LIKE_JNP = _probe_roll_convention()


# ---------------------------------------------------------------------------
# Fused conv stage kernel: [optional BN+SiLU prologue] -> grouped (1,3,3) conv
# (block-diagonal tap matmuls) -> masked store + per-channel sum / sum^2.
# One grid step processes one batch element (all depth slices).
# ---------------------------------------------------------------------------
def _fused_conv_kernel(x_ref, w_ref, scale_ref, shift_ref, mask_ref,
                       y_ref, sum_ref, sq_ref, *, wp, apply_act, roll_like_jnp):
    # x_ref    : (1, D_in, C_in, S)    previous activation (flat layout, halo/tail zeroed)
    # w_ref    : (9, C_out, C_in)      per-tap block-diagonal (groups folded) weights
    # scale_ref: (C_in, 1)             fused BN scale for prologue (ones when unused)
    # shift_ref: (C_in, 1)             fused BN shift for prologue (zeros when unused)
    # mask_ref : (1, S)                1.0 at valid (row < H, col < W) flat positions
    # y_ref    : (1, D_out, C_out, S)  conv output (flat layout, masked)
    # sum_ref  : (1, C_out, 1)         per-channel sum of valid outputs (this batch elem)
    # sq_ref   : (1, C_out, 1)         per-channel sum of squares
    d_in = x_ref.shape[1]
    d_out = y_ref.shape[1]
    c_out = y_ref.shape[2]
    s = y_ref.shape[3]

    mask = mask_ref[...]                                            # (1, S)
    scale = scale_ref[...]                                          # (C_in, 1)
    shift = shift_ref[...]                                          # (C_in, 1)
    w_taps = [w_ref[ti] for ti in range(9)]                         # 9 x (C_out, C_in)
    offs = [(kh - 1) * wp + (kw - 1) for kh in range(3) for kw in range(3)]

    ssum = jnp.zeros((c_out, 1), jnp.float32)
    ssq = jnp.zeros((c_out, 1), jnp.float32)

    for od in range(d_out):                    # kernel depth = 1, depth pad = 1
        di = od - 1
        if 0 <= di < d_in:
            x = x_ref[0, di]                                        # (C_in, S)
            if apply_act:                      # fused BatchNorm + SiLU prologue
                t = x * scale + shift
                t = t * jax.nn.sigmoid(t)
                x = t * mask                   # re-zero the halo columns / tail
            acc = jnp.zeros((c_out, s), jnp.float32)
            for ti, off in enumerate(offs):    # 9 taps as static lane rotations
                if off == 0:
                    xs = x
                else:
                    amt = (-off) % s if roll_like_jnp else off % s
                    xs = pltpu.roll(x, amt, axis=1)
                acc = acc + jnp.dot(w_taps[ti], xs,
                                    preferred_element_type=jnp.float32)
            acc = acc * mask                   # kill wrap columns / tail
            y_ref[0, od] = acc
            ssum = ssum + jnp.sum(acc, axis=1, keepdims=True)
            ssq = ssq + jnp.sum(acc * acc, axis=1, keepdims=True)
        else:
            # depth-padding slices: conv of an all-zero slice is exactly zero
            y_ref[0, od] = jnp.zeros((c_out, s), jnp.float32)

    sum_ref[0] = ssum
    sq_ref[0] = ssq


def _conv_stage(x_flat, w_taps, scale, shift, mask, *, d_out, wp, apply_act):
    n, d_in, c_in, s = x_flat.shape
    n_taps, c_out, _ = w_taps.shape
    kernel = functools.partial(_fused_conv_kernel, wp=wp, apply_act=apply_act,
                               roll_like_jnp=_ROLL_LIKE_JNP)
    return pl.pallas_call(
        kernel,
        out_shape=(
            jax.ShapeDtypeStruct((n, d_out, c_out, s), jnp.float32),
            jax.ShapeDtypeStruct((n, c_out, 1), jnp.float32),
            jax.ShapeDtypeStruct((n, c_out, 1), jnp.float32),
        ),
        grid=(n,),
        in_specs=[
            pl.BlockSpec((1, d_in, c_in, s), lambda i: (i, 0, 0, 0)),
            pl.BlockSpec((n_taps, c_out, c_in), lambda i: (0, 0, 0)),
            pl.BlockSpec((c_in, 1), lambda i: (0, 0)),
            pl.BlockSpec((c_in, 1), lambda i: (0, 0)),
            pl.BlockSpec((1, s), lambda i: (0, 0)),
        ],
        out_specs=(
            pl.BlockSpec((1, d_out, c_out, s), lambda i: (i, 0, 0, 0)),
            pl.BlockSpec((1, c_out, 1), lambda i: (i, 0, 0)),
            pl.BlockSpec((1, c_out, 1), lambda i: (i, 0, 0)),
        ),
        compiler_params=pltpu.CompilerParams(dimension_semantics=("parallel",)),
    )(x_flat, w_taps, scale, shift, mask)


# ---------------------------------------------------------------------------
# Final BatchNorm + SiLU epilogue (elementwise, whole slab per grid step).
# ---------------------------------------------------------------------------
def _bn_silu_kernel(x_ref, scale_ref, shift_ref, o_ref):
    x = x_ref[0]                                  # (D, C, S)
    t = x * scale_ref[...][None] + shift_ref[...][None]
    o_ref[0] = t * jax.nn.sigmoid(t)


def _bn_silu_stage(x_flat, scale, shift):
    n, d, c, s = x_flat.shape
    return pl.pallas_call(
        _bn_silu_kernel,
        out_shape=jax.ShapeDtypeStruct((n, d, c, s), jnp.float32),
        grid=(n,),
        in_specs=[
            pl.BlockSpec((1, d, c, s), lambda i: (i, 0, 0, 0)),
            pl.BlockSpec((c, 1), lambda i: (0, 0)),
            pl.BlockSpec((c, 1), lambda i: (0, 0)),
        ],
        out_specs=pl.BlockSpec((1, d, c, s), lambda i: (i, 0, 0, 0)),
        compiler_params=pltpu.CompilerParams(dimension_semantics=("parallel",)),
    )(x_flat, scale, shift)


# ---------------------------------------------------------------------------
# Layout / weight / BN-stat glue (entry+exit conversion and tiny per-channel math only).
# ---------------------------------------------------------------------------
def _to_flat(x, wp, s):
    n, c, d, h, w = x.shape
    xw = jnp.pad(x.astype(jnp.float32), ((0, 0), (0, 0), (0, 0), (0, 0), (0, wp - w)))
    xw = xw.transpose(0, 2, 1, 3, 4).reshape(n, d, c, h * wp)
    return jnp.pad(xw, ((0, 0), (0, 0), (0, 0), (0, s - h * wp)))


def _from_flat(y, h, w, wp):
    n, d, c, _ = y.shape
    y = y[..., :h * wp].reshape(n, d, c, h, wp)[..., :w]
    return y.transpose(0, 2, 1, 3, 4)


def _valid_mask(h, w, wp, s):
    m = jnp.zeros((h, wp), jnp.float32).at[:, :w].set(1.0).reshape(1, h * wp)
    return jnp.pad(m, ((0, 0), (0, s - h * wp)))


def _tap_weights(w, groups):
    """(C_out, C_in//G, 1, 3, 3) grouped weights -> dense block-diagonal (9, C_out, C_in)."""
    c_out, cg_in = w.shape[0], w.shape[1]
    cg_out = c_out // groups
    c_in = cg_in * groups
    wf = jnp.zeros((c_out, c_in, 3, 3), jnp.float32)
    for g in range(groups):
        wf = wf.at[g * cg_out:(g + 1) * cg_out, g * cg_in:(g + 1) * cg_in].set(
            w[g * cg_out:(g + 1) * cg_out, :, 0].astype(jnp.float32))
    return wf.transpose(2, 3, 0, 1).reshape(9, c_out, c_in)   # tap index = kh*3 + kw


def _bn_affine(sums, sqs, gamma, beta, count, eps):
    total = jnp.sum(sums[..., 0], axis=0)                     # (C,)
    totsq = jnp.sum(sqs[..., 0], axis=0)
    mean = total / count
    var = jnp.maximum(totsq / count - mean * mean, 0.0)       # biased (training) variance
    scale = gamma.astype(jnp.float32) * jax.lax.rsqrt(var + eps)
    shift = beta.astype(jnp.float32) - mean * scale
    return scale[:, None], shift[:, None]                     # (C, 1)


# ---------------------------------------------------------------------------
# Full module forward
# ---------------------------------------------------------------------------
def conv_block_group_forward(x, params, groups=2, eps=1e-5):
    n, c_in, d, h, w = x.shape
    wp = w + 2
    s = _round_up(h * wp + wp + 2, 128)      # lane width; taps never wrap into valid data

    mask = _valid_mask(h, w, wp, s)          # (1, S)
    x_flat = _to_flat(x, wp, s)              # (N, D, Cin, S)

    w1 = _tap_weights(params["w1"], groups)  # (9, Cout, Cin)
    w2 = _tap_weights(params["w2"], groups)  # (9, Cout, Cout)

    # stage 1: conv1 + per-channel stats for BN1
    d1 = d + 2
    ones = jnp.ones((c_in, 1), jnp.float32)
    zeros = jnp.zeros((c_in, 1), jnp.float32)
    y1, s1, q1 = _conv_stage(x_flat, w1, ones, zeros, mask,
                             d_out=d1, wp=wp, apply_act=False)
    scale1, shift1 = _bn_affine(s1, q1, params["g1"], params["b1"],
                                count=n * d1 * h * w, eps=eps)

    # stage 2: fused BN1 + SiLU prologue -> conv2 + per-channel stats for BN2
    d2 = d1 + 2
    y2, s2, q2 = _conv_stage(y1, w2, scale1, shift1, mask,
                             d_out=d2, wp=wp, apply_act=True)
    scale2, shift2 = _bn_affine(s2, q2, params["g2"], params["b2"],
                                count=n * d2 * h * w, eps=eps)

    # stage 3: BN2 + SiLU epilogue, then back to NCDHW
    out = _bn_silu_stage(y2, scale2, shift2)
    return _from_flat(out, h, w, wp)


# ---------------------------------------------------------------------------
# Pure-JAX reference (for sanity check)
# ---------------------------------------------------------------------------
def _ref_conv(x, w, groups):
    return jax.lax.conv_general_dilated(
        x, w, window_strides=(1, 1, 1),
        padding=((1, 1), (1, 1), (1, 1)),
        dimension_numbers=("NCDHW", "OIDHW", "NCDHW"),
        feature_group_count=groups)


def _ref_bn_silu(x, gamma, beta, eps=1e-5):
    mean = jnp.mean(x, axis=(0, 2, 3, 4), keepdims=True)
    var = jnp.var(x, axis=(0, 2, 3, 4), keepdims=True)
    y = (x - mean) / jnp.sqrt(var + eps)
    y = y * gamma.reshape(1, -1, 1, 1, 1) + beta.reshape(1, -1, 1, 1, 1)
    return y * jax.nn.sigmoid(y)


def ref_forward(x, params, groups=2):
    y = _ref_bn_silu(_ref_conv(x, params["w1"], groups), params["g1"], params["b1"])
    y = _ref_bn_silu(_ref_conv(y, params["w2"], groups), params["g2"], params["b2"])
    return y


if __name__ == "__main__":
    N, Cin, Cout, D, H, W, G = 2, 4, 8, 4, 16, 16, 2
    key = jax.random.PRNGKey(0)
    k = jax.random.split(key, 7)

    x = jax.random.normal(k[0], (N, Cin, D, H, W), jnp.float32)
    params = {
        "w1": 0.1 * jax.random.normal(k[1], (Cout, Cin // G, 1, 3, 3), jnp.float32),
        "g1": 1.0 + 0.1 * jax.random.normal(k[2], (Cout,), jnp.float32),
        "b1": 0.1 * jax.random.normal(k[3], (Cout,), jnp.float32),
        "w2": 0.1 * jax.random.normal(k[4], (Cout, Cout // G, 1, 3, 3), jnp.float32),
        "g2": 1.0 + 0.1 * jax.random.normal(k[5], (Cout,), jnp.float32),
        "b2": 0.1 * jax.random.normal(k[6], (Cout,), jnp.float32),
    }

    fwd = jax.jit(functools.partial(conv_block_group_forward, groups=G))
    out = jax.block_until_ready(fwd(x, params))
    assert out.shape == (N, Cout, D + 4, H, W), out.shape

    ref = jax.block_until_ready(jax.jit(functools.partial(ref_forward, groups=G))(x, params))
    max_err = float(jnp.max(jnp.abs(out - ref)))
    assert max_err < 2e-2, f"mismatch vs reference: {max_err}"

    print("KERNEL_OK")
</pallas_src>

<mosaic_0001>
module attributes {stable_mosaic.version = 11 : i64} {
  func.func @k(%arg0: memref<8x128xf32, #tpu.memory_space<vmem>>, %arg1: memref<8x128xf32, #tpu.memory_space<vmem>>) attributes {dimension_semantics = [], scalar_prefetch = 0 : i64, scratch_operands = 0 : i64, tpu.core_type = #tpu.core_type<tc>} {
    %c0 = arith.constant 0 : index
    %c0_0 = arith.constant 0 : index
    %0 = vector.load %arg0[%c0, %c0_0] : memref<8x128xf32, #tpu.memory_space<vmem>>, vector<8x128xf32>
    %c1_i32 = arith.constant 1 : i32
    %1 = tpu.dynamic_rotate %0 by %c1_i32 dim 1 : vector<8x128xf32>, i32 -> vector<8x128xf32>
    %c0_1 = arith.constant 0 : index
    %c0_2 = arith.constant 0 : index
    %2 = vector.load %arg1[%c0_1, %c0_2] : memref<8x128xf32, #tpu.memory_space<vmem>>, vector<8x128xf32>
    tpu.vector_store %arg1[%c0_1, %c0_2], %1 {strides = array<i32>} : memref<8x128xf32, #tpu.memory_space<vmem>>, vector<8x128xf32>,
    return
  }
}

module attributes {stable_mosaic.version = 11 : i64} {
  func.func @_fused_conv_kernel(%arg0: i32, %arg1: memref<1x6x8x384xf32, #tpu.memory_space<vmem>>, %arg2: memref<9x8x8xf32, #tpu.memory_space<vmem>>, %arg3: memref<8x1xf32, #tpu.memory_space<vmem>>, %arg4: memref<8x1xf32, #tpu.memory_space<vmem>>, %arg5: memref<1x384xf32, #tpu.memory_space<vmem>>, %arg6: memref<1x8x8x384xf32, #tpu.memory_space<vmem>>, %arg7: memref<1x8x1xf32, #tpu.memory_space<vmem>>, %arg8: memref<1x8x1xf32, #tpu.memory_space<vmem>>) attributes {dimension_semantics = [#tpu.dimension_semantics<parallel>], iteration_bounds = array<i64: 2>, scalar_prefetch = 0 : i64, scratch_operands = 0 : i64, tpu.core_type = #tpu.core_type<tc>, window_params = [{transform_indices = @transform_0, window_bounds = array<i64: 1, 6, 8, 384>}, {pipeline_mode = #tpu.pipeline_mode<synchronous>, transform_indices = @transform_1, window_bounds = array<i64: 9, 8, 8>}, {pipeline_mode = #tpu.pipeline_mode<synchronous>, transform_indices = @transform_2, window_bounds = array<i64: 8, 1>}, {pipeline_mode = #tpu.pipeline_mode<synchronous>, transform_indices = @transform_3, window_bounds = array<i64: 8, 1>}, {pipeline_mode = #tpu.pipeline_mode<synchronous>, transform_indices = @transform_4, window_bounds = array<i64: 1, 384>}, {transform_indices = @transform_5, window_bounds = array<i64: 1, 8, 8, 384>}, {transform_indices = @transform_6, window_bounds = array<i64: 1, 8, 1>}, {transform_indices = @transform_7, window_bounds = array<i64: 1, 8, 1>}]} {
    %c0 = arith.constant 0 : index
    %c0_0 = arith.constant 0 : index
    %0 = vector.load %arg5[%c0, %c0_0] : memref<1x384xf32, #tpu.memory_space<vmem>>, vector<1x384xf32>
    %c0_1 = arith.constant 0 : index
    %c0_2 = arith.constant 0 : index
    %1 = vector.load %arg3[%c0_1, %c0_2] : memref<8x1xf32, #tpu.memory_space<vmem>>, vector<8x1xf32>
    %c0_3 = arith.constant 0 : index
    %c0_4 = arith.constant 0 : index
    %2 = vector.load %arg4[%c0_3, %c0_4] : memref<8x1xf32, #tpu.memory_space<vmem>>, vector<8x1xf32>
    %c0_5 = arith.constant 0 : index
    %c0_6 = arith.constant 0 : index
    %c0_7 = arith.constant 0 : index
    %3 = vector.load %arg2[%c0_5, %c0_6, %c0_7] : memref<9x8x8xf32, #tpu.memory_space<vmem>>, vector<1x8x8xf32>
    %4 = vector.shape_cast %3 : vector<1x8x8xf32> to vector<8x8xf32>
    %c1 = arith.constant 1 : index
    %c0_8 = arith.constant 0 : index
    %c0_9 = arith.constant 0 : index
    %5 = vector.load %arg2[%c1, %c0_8, %c0_9] : memref<9x8x8xf32, #tpu.memory_space<vmem>>, vector<1x8x8xf32>
    %6 = vector.shape_cast %5 : vector<1x8x8xf32> to vector<8x8xf32>
    %c2 = arith.constant 2 : index
    %c0_10 = arith.constant 0 : index
    %c0_11 = arith.constant 0 : index
    %7 = vector.load %arg2[%c2, %c0_10, %c0_11] : memref<9x8x8xf32, #tpu.memory_space<vmem>>, vector<1x8x8xf32>
    %8 = vector.shape_cast %7 : vector<1x8x8xf32> to vector<8x8xf32>
    %c3 = arith.constant 3 : index
    %c0_12 = arith.constant 0 : index
    %c0_13 = arith.constant 0 : index
    %9 = vector.load %arg2[%c3, %c0_12, %c0_13] : memref<9x8x8xf32, #tpu.memory_space<vmem>>, vector<1x8x8xf32>
    %10 = vector.shape_cast %9 : vector<1x8x8xf32> to vector<8x8xf32>
    %c4 = arith.constant 4 : index
    %c0_14 = arith.constant 0 : index
    %c0_15 = arith.constant 0 : index
    %11 = vector.load %arg2[%c4, %c0_14, %c0_15] : memref<9x8x8xf32, #tpu.memory_space<vmem>>, vector<1x8x8xf32>
    %12 = vector.shape_cast %11 : vector<1x8x8xf32> to vector<8x8xf32>
    %c5 = arith.constant 5 : index
    %c0_16 = arith.constant 0 : index
    %c0_17 = arith.constant 0 : index
    %13 = vector.load %arg2[%c5, %c0_16, %c0_17] : memref<9x8x8xf32, #tpu.memory_space<vmem>>, vector<1x8x8xf32>
    %14 = vector.shape_cast %13 : vector<1x8x8xf32> to vector<8x8xf32>
    %c6 = arith.constant 6 : index
    %c0_18 = arith.constant 0 : index
    %c0_19 = arith.constant 0 : index
    %15 = vector.load %arg2[%c6, %c0_18, %c0_19] : memref<9x8x8xf32, #tpu.memory_space<vmem>>, vector<1x8x8xf32>
    %16 = vector.shape_cast %15 : vector<1x8x8xf32> to vector<8x8xf32>
    %c7 = arith.constant 7 : index
    %c0_20 = arith.constant 0 : index
    %c0_21 = arith.constant 0 : index
    %17 = vector.load %arg2[%c7, %c0_20, %c0_21] : memref<9x8x8xf32, #tpu.memory_space<vmem>>, vector<1x8x8xf32>
    %18 = vector.shape_cast %17 : vector<1x8x8xf32> to vector<8x8xf32>
    %c8 = arith.constant 8 : index
    %c0_22 = arith.constant 0 : index
    %c0_23 = arith.constant 0 : index
    %19 = vector.load %arg2[%c8, %c0_22, %c0_23] : memref<9x8x8xf32, #tpu.memory_space<vmem>>, vector<1x8x8xf32>
    %20 = vector.shape_cast %19 : vector<1x8x8xf32> to vector<8x8xf32>
    %cst = arith.constant 0.000000e+00 : f32
    %21 = vector.broadcast %cst : f32 to vector<8x1xf32>
    %cst_24 = arith.constant 0.000000e+00 : f32
    %22 = vector.broadcast %cst_24 : f32 to vector<8x1xf32>
    %cst_25 = arith.constant 0.000000e+00 : f32
    %23 = vector.broadcast %cst_25 : f32 to vector<8x384xf32>
    %c0_26 = arith.constant 0 : index
    %c0_27 = arith.constant 0 : index
    %c0_28 = arith.constant 0 : index
    %c0_29 = arith.constant 0 : index
    %24 = vector.load %arg6[%c0_26, %c0_27, %c0_28, %c0_29] : memref<1x8x8x384xf32, #tpu.memory_space<vmem>>, vector<1x1x8x384xf32>
    %25 = vector.shape_cast %24 : vector<1x1x8x384xf32> to vector<8x384xf32>
    %26 = vector.shape_cast %23 : vector<8x384xf32> to vector<1x1x8x384xf32>
    tpu.vector_store %arg6[%c0_26, %c0_27, %c0_28, %c0_29], %26 {strides = array<i32>} : memref<1x8x8x384xf32, #tpu.memory_space<vmem>>, vector<1x1x8x384xf32>,
    %c0_30 = arith.constant 0 : index
    %c0_31 = arith.constant 0 : index
    %c0_32 = arith.constant 0 : index
    %c0_33 = arith.constant 0 : index
    %27 = vector.load %arg1[%c0_30, %c0_31, %c0_32, %c0_33] : memref<1x6x8x384xf32, #tpu.memory_space<vmem>>, vector<1x1x8x384xf32>
    %28 = vector.shape_cast %27 : vector<1x1x8x384xf32> to vector<8x384xf32>
    %29 = vector.broadcast %1 : vector<8x1xf32> to vector<8x384xf32>
    %30 = arith.mulf %28, %29 : vector<8x384xf32>
    %31 = vector.broadcast %2 : vector<8x1xf32> to vector<8x384xf32>
    %32 = arith.addf %30, %31 : vector<8x384xf32>
    %33 = arith.negf %32 : vector<8x384xf32>
    %34 = math.exp %33 : vector<8x384xf32>
    %cst_34 = arith.constant 1.000000e+00 : f32
    %35 = vector.broadcast %cst_34 : f32 to vector<8x384xf32>
    %36 = arith.addf %35, %34 : vector<8x384xf32>
    %37 = arith.divf %35, %36 : vector<8x384xf32>
    %38 = arith.mulf %32, %37 : vector<8x384xf32>
    %39 = vector.broadcast %0 : vector<1x384xf32> to vector<8x384xf32>
    %40 = arith.mulf %38, %39 : vector<8x384xf32>
    %cst_35 = arith.constant 0.000000e+00 : f32
    %41 = vector.broadcast %cst_35 : f32 to vector<8x384xf32>
    %c19_i32 = arith.constant 19 : i32
    %42 = tpu.dynamic_rotate %40 by %c19_i32 dim 1 : vector<8x384xf32>, i32 -> vector<8x384xf32>
    %cst_36 = arith.constant dense<0.000000e+00> : vector<8x384xf32>
    %43 = tpu.matmul %4, %42, %cst_36 {dimension_numbers = #tpu.dot_dimension_numbers<[1], [0], [0], [1], [0, 0, 1, 1], [], []>} : vector<8x8xf32>, vector<8x384xf32>, vector<8x384xf32> -> vector<8x384xf32>
    %44 = arith.addf %41, %43 : vector<8x384xf32>
    %c18_i32 = arith.constant 18 : i32
    %45 = tpu.dynamic_rotate %40 by %c18_i32 dim 1 : vector<8x384xf32>, i32 -> vector<8x384xf32>
    %cst_37 = arith.constant dense<0.000000e+00> : vector<8x384xf32>
    %46 = tpu.matmul %6, %45, %cst_37 {dimension_numbers = #tpu.dot_dimension_numbers<[1], [0], [0], [1], [0, 0, 1, 1], [], []>} : vector<8x8xf32>, vector<8x384xf32>, vector<8x384xf32> -> vector<8x384xf32>
    %47 = arith.addf %44, %46 : vector<8x384xf32>
    %c17_i32 = arith.constant 17 : i32
    %48 = tpu.dynamic_rotate %40 by %c17_i32 dim 1 : vector<8x384xf32>, i32 -> vector<8x384xf32>
    %cst_38 = arith.constant dense<0.000000e+00> : vector<8x384xf32>
    %49 = tpu.matmul %8, %48, %cst_38 {dimension_numbers = #tpu.dot_dimension_numbers<[1], [0], [0], [1], [0, 0, 1, 1], [], []>} : vector<8x8xf32>, vector<8x384xf32>, vector<8x384xf32> -> vector<8x384xf32>
    %50 = arith.addf %47, %49 : vector<8x384xf32>
    %c1_i32 = arith.constant 1 : i32
    %51 = tpu.dynamic_rotate %40 by %c1_i32 dim 1 : vector<8x384xf32>, i32 -> vector<8x384xf32>
    %cst_39 = arith.constant dense<0.000000e+00> : vector<8x384xf32>
    %52 = tpu.matmul %10, %51, %cst_39 {dimension_numbers = #tpu.dot_dimension_numbers<[1], [0], [0], [1], [0, 0, 1, 1], [], []>} : vector<8x8xf32>, vector<8x384xf32>, vector<8x384xf32> -> vector<8x384xf32>
    %53 = arith.addf %50, %52 : vector<8x384xf32>
    %cst_40 = arith.constant dense<0.000000e+00> : vector<8x384xf32>
    %54 = tpu.matmul %12, %40, %cst_40 {dimension_numbers = #tpu.dot_dimension_numbers<[1], [0], [0], [1], [0, 0, 1, 1], [], []>} : vector<8x8xf32>, vector<8x384xf32>, vector<8x384xf32> -> vector<8x384xf32>
    %55 = arith.addf %53, %54 : vector<8x384xf32>
    %c383_i32 = arith.constant 383 : i32
    %56 = tpu.dynamic_rotate %40 by %c383_i32 dim 1 : vector<8x384xf32>, i32 -> vector<8x384xf32>
    %cst_41 = arith.constant dense<0.000000e+00> : vector<8x384xf32>
    %57 = tpu.matmul %14, %56, %cst_41 {dimension_numbers = #tpu.dot_dimension_numbers<[1], [0], [0], [1], [0, 0, 1, 1], [], []>} : vector<8x8xf32>, vector<8x384xf32>, vector<8x384xf32> -> vector<8x384xf32>
    %58 = arith.addf %55, %57 : vector<8x384xf32>
    %c367_i32 = arith.constant 367 : i32
    %59 = tpu.dynamic_rotate %40 by %c367_i32 dim 1 : vector<8x384xf32>, i32 -> vector<8x384xf32>
    %cst_42 = arith.constant dense<0.000000e+00> : vector<8x384xf32>
    %60 = tpu.matmul %16, %59, %cst_42 {dimension_numbers = #tpu.dot_dimension_numbers<[1], [0], [0], [1], [0, 0, 1, 1], [], []>} : vector<8x8xf32>, vector<8x384xf32>, vector<8x384xf32> -> vector<8x384xf32>
    %61 = arith.addf %58, %60 : vector<8x384xf32>
    %c366_i32 = arith.constant 366 : i32
    %62 = tpu.dynamic_rotate %40 by %c366_i32 dim 1 : vector<8x384xf32>, i32 -> vector<8x384xf32>
    %cst_43 = arith.constant dense<0.000000e+00> : vector<8x384xf32>
    %63 = tpu.matmul %18, %62, %cst_43 {dimension_numbers = #tpu.dot_dimension_numbers<[1], [0], [0], [1], [0, 0, 1, 1], [], []>} : vector<8x8xf32>, vector<8x384xf32>, vector<8x384xf32> -> vector<8x384xf32>
    %64 = arith.addf %61, %63 : vector<8x384xf32>
    %c365_i32 = arith.constant 365 : i32
    %65 = tpu.dynamic_rotate %40 by %c365_i32 dim 1 : vector<8x384xf32>, i32 -> vector<8x384xf32>
    %cst_44 = arith.constant dense<0.000000e+00> : vector<8x384xf32>
    %66 = tpu.matmul %20, %65, %cst_44 {dimension_numbers = #tpu.dot_dimension_numbers<[1], [0], [0], [1], [0, 0, 1, 1], [], []>} : vector<8x8xf32>, vector<8x384xf32>, vector<8x384xf32> -> vector<8x384xf32>
    %67 = arith.addf %64, %66 : vector<8x384xf32>
    %68 = vector.broadcast %0 : vector<1x384xf32> to vector<8x384xf32>
    %69 = arith.mulf %67, %68 : vector<8x384xf32>
    %c0_45 = arith.constant 0 : index
    %c1_46 = arith.constant 1 : index
    %c0_47 = arith.constant 0 : index
    %c0_48 = arith.constant 0 : index
    %70 = vector.load %arg6[%c0_45, %c1_46, %c0_47, %c0_48] : memref<1x8x8x384xf32, #tpu.memory_space<vmem>>, vector<1x1x8x384xf32>
    %71 = vector.shape_cast %70 : vector<1x1x8x384xf32> to vector<8x384xf32>
    %72 = vector.shape_cast %69 : vector<8x384xf32> to vector<1x1x8x384xf32>
    tpu.vector_store %arg6[%c0_45, %c1_46, %c0_47, %c0_48], %72 {strides = array<i32>} : memref<1x8x8x384xf32, #tpu.memory_space<vmem>>, vector<1x1x8x384xf32>,
    %cst_49 = arith.constant dense<0.000000e+00> : vector<8xf32>
    %73 = vector.multi_reduction <add>, %69, %cst_49 [1] : vector<8x384xf32> to vector<8xf32>
    %74 = vector.shape_cast %73 : vector<8xf32> to vector<8x1xf32>
    %75 = arith.addf %21, %74 : vector<8x1xf32>
    %76 = arith.mulf %69, %69 : vector<8x384xf32>
    %cst_50 = arith.constant dense<0.000000e+00> : vector<8xf32>
    %77 = vector.multi_reduction <add>, %76, %cst_50 [1] : vector<8x384xf32> to vector<8xf32>
    %78 = vector.shape_cast %77 : vector<8xf32> to vector<8x1xf32>
    %79 = arith.addf %22, %78 : vector<8x1xf32>
    %c0_51 = arith.constant 0 : index
    %c1_52 = arith.constant 1 : index
    %c0_53 = arith.constant 0 : index
    %c0_54 = arith.constant 0 : index
    %80 = vector.load %arg1[%c0_51, %c1_52, %c0_53, %c0_54] : memref<1x6x8x384xf32, #tpu.memory_space<vmem>>, vector<1x1x8x384xf32>
    %81 = vector.shape_cast %80 : vector<1x1x8x384xf32> to vector<8x384xf32>
    %82 = vector.broadcast %1 : vector<8x1xf32> to vector<8x384xf32>
    %83 = arith.mulf %81, %82 : vector<8x384xf32>
    %84 = vector.broadcast %2 : vector<8x1xf32> to vector<8x384xf32>
    %85 = arith.addf %83, %84 : vector<8x384xf32>
    %86 = arith.negf %85 : vector<8x384xf32>
    %87 = math.exp %86 : vector<8x384xf32>
    %cst_55 = arith.constant 1.000000e+00 : f32
    %88 = vector.broadcast %cst_55 : f32 to vector<8x384xf32>
    %89 = arith.addf %88, %87 : vector<8x384xf32>
    %90 = arith.divf %88, %89 : vector<8x384xf32>
    %91 = arith.mulf %85, %90 : vector<8x384xf32>
    %92 = vector.broadcast %0 : vector<1x384xf32> to vector<8x384xf32>
    %93 = arith.mulf %91, %92 : vector<8x384xf32>
    %cst_56 = arith.constant 0.000000e+00 : f32
    %94 = vector.broadcast %cst_56 : f32 to vector<8x384xf32>
    %c19_i32_57 = arith.constant 19 : i32
    %95 = tpu.dynamic_rotate %93 by %c19_i32_57 dim 1 : vector<8x384xf32>, i32 -> vector<8x384xf32>
    %cst_58 = arith.constant dense<0.000000e+00> : vector<8x384xf32>
    %96 = tpu.matmul %4, %95, %cst_58 {dimension_numbers = #tpu.dot_dimension_numbers<[1], [0], [0], [1], [0, 0, 1, 1], [], []>} : vector<8x8xf32>, vector<8x384xf32>, vector<8x384xf32> -> vector<8x384xf32>
    %97 = arith.addf %94, %96 : vector<8x384xf32>
    %c18_i32_59 = arith.constant 18 : i32
    %98 = tpu.dynamic_rotate %93 by %c18_i32_59 dim 1 : vector<8x384xf32>, i32 -> vector<8x384xf32>
    %cst_60 = arith.constant dense<0.000000e+00> : vector<8x384xf32>
    %99 = tpu.matmul %6, %98, %cst_60 {dimension_numbers = #tpu.dot_dimension_numbers<[1], [0], [0], [1], [0, 0, 1, 1], [], []>} : vector<8x8xf32>, vector<8x384xf32>, vector<8x384xf32> -> vector<8x384xf32>
    %100 = arith.addf %97, %99 : vector<8x384xf32>
    %c17_i32_61 = arith.constant 17 : i32
    %101 = tpu.dynamic_rotate %93 by %c17_i32_61 dim 1 : vector<8x384xf32>, i32 -> vector<8x384xf32>
    %cst_62 = arith.constant dense<0.000000e+00> : vector<8x384xf32>
    %102 = tpu.matmul %8, %101, %cst_62 {dimension_numbers = #tpu.dot_dimension_numbers<[1], [0], [0], [1], [0, 0, 1, 1], [], []>} : vector<8x8xf32>, vector<8x384xf32>, vector<8x384xf32> -> vector<8x384xf32>
    %103 = arith.addf %100, %102 : vector<8x384xf32>
    %c1_i32_63 = arith.constant 1 : i32
    %104 = tpu.dynamic_rotate %93 by %c1_i32_63 dim 1 : vector<8x384xf32>, i32 -> vector<8x384xf32>
    %cst_64 = arith.constant dense<0.000000e+00> : vector<8x384xf32>
    %105 = tpu.matmul %10, %104, %cst_64 {dimension_numbers = #tpu.dot_dimension_numbers<[1], [0], [0], [1], [0, 0, 1, 1], [], []>} : vector<8x8xf32>, vector<8x384xf32>, vector<8x384xf32> -> vector<8x384xf32>
    %106 = arith.addf %103, %105 : vector<8x384xf32>
    %cst_65 = arith.constant dense<0.000000e+00> : vector<8x384xf32>
    %107 = tpu.matmul %12, %93, %cst_65 {dimension_numbers = #tpu.dot_dimension_numbers<[1], [0], [0], [1], [0, 0, 1, 1], [], []>} : vector<8x8xf32>, vector<8x384xf32>, vector<8x384xf32> -> vector<8x384xf32>
    %108 = arith.addf %106, %107 : vector<8x384xf32>
    %c383_i32_66 = arith.constant 383 : i32
    %109 = tpu.dynamic_rotate %93 by %c383_i32_66 dim 1 : vector<8x384xf32>, i32 -> vector<8x384xf32>
    %cst_67 = arith.constant dense<0.000000e+00> : vector<8x384xf32>
    %110 = tpu.matmul %14, %109, %cst_67 {dimension_numbers = #tpu.dot_dimension_numbers<[1], [0], [0], [1], [0, 0, 1, 1], [], []>} : vector<8x8xf32>, vector<8x384xf32>, vector<8x384xf32> -> vector<8x384xf32>
    %111 = arith.addf %108, %110 : vector<8x384xf32>
    %c367_i32_68 = arith.constant 367 : i32
    %112 = tpu.dynamic_rotate %93 by %c367_i32_68 dim 1 : vector<8x384xf32>, i32 -> vector<8x384xf32>
    %cst_69 = arith.constant dense<0.000000e+00> : vector<8x384xf32>
    %113 = tpu.matmul %16, %112, %cst_69 {dimension_numbers = #tpu.dot_dimension_numbers<[1], [0], [0], [1], [0, 0, 1, 1], [], []>} : vector<8x8xf32>, vector<8x384xf32>, vector<8x384xf32> -> vector<8x384xf32>
    %114 = arith.addf %111, %113 : vector<8x384xf32>
    %c366_i32_70 = arith.constant 366 : i32
    %115 = tpu.dynamic_rotate %93 by %c366_i32_70 dim 1 : vector<8x384xf32>, i32 -> vector<8x384xf32>
    %cst_71 = arith.constant dense<0.000000e+00> : vector<8x384xf32>
    %116 = tpu.matmul %18, %115, %cst_71 {dimension_numbers = #tpu.dot_dimension_numbers<[1], [0], [0], [1], [0, 0, 1, 1], [], []>} : vector<8x8xf32>, vector<8x384xf32>, vector<8x384xf32> -> vector<8x384xf32>
    %117 = arith.addf %114, %116 : vector<8x384xf32>
    %c365_i32_72 = arith.constant 365 : i32
    %118 = tpu.dynamic_rotate %93 by %c365_i32_72 dim 1 : vector<8x384xf32>, i32 -> vector<8x384xf32>
    %cst_73 = arith.constant dense<0.000000e+00> : vector<8x384xf32>
    %119 = tpu.matmul %20, %118, %cst_73 {dimension_numbers = #tpu.dot_dimension_numbers<[1], [0], [0], [1], [0, 0, 1, 1], [], []>} : vector<8x8xf32>, vector<8x384xf32>, vector<8x384xf32> -> vector<8x384xf32>
    %120 = arith.addf %117, %119 : vector<8x384xf32>
    %121 = vector.broadcast %0 : vector<1x384xf32> to vector<8x384xf32>
    %122 = arith.mulf %120, %121 : vector<8x384xf32>
    %c0_74 = arith.constant 0 : index
    %c2_75 = arith.constant 2 : index
    %c0_76 = arith.constant 0 : index
    %c0_77 = arith.constant 0 : index
    %123 = vector.load %arg6[%c0_74, %c2_75, %c0_76, %c0_77] : memref<1x8x8x384xf32, #tpu.memory_space<vmem>>, vector<1x1x8x384xf32>
    %124 = vector.shape_cast %123 : vector<1x1x8x384xf32> to vector<8x384xf32>
    %125 = vector.shape_cast %122 : vector<8x384xf32> to vector<1x1x8x384xf32>
    tpu.vector_store %arg6[%c0_74, %c2_75, %c0_76, %c0_77], %125 {strides = array<i32>} : memref<1x8x8x384xf32, #tpu.memory_space<vmem>>, vector<1x1x8x384xf32>,
    %cst_78 = arith.constant dense<0.000000e+00> : vector<8xf32>
    %126 = vector.multi_reduction <add>, %122, %cst_78 [1] : vector<8x384xf32> to vector<8xf32>
    %127 = vector.shape_cast %126 : vector<8xf32> to vector<8x1xf32>
    %128 = arith.addf %75, %127 : vector<8x1xf32>
    %129 = arith.mulf %122, %122 : vector<8x384xf32>
    %cst_79 = arith.constant dense<0.000000e+00> : vector<8xf32>
    %130 = vector.multi_reduction <add>, %129, %cst_79 [1] : vector<8x384xf32> to vector<8xf32>
    %131 = vector.shape_cast %130 : vector<8xf32> to vector<8x1xf32>
    %132 = arith.addf %79, %131 : vector<8x1xf32>
    %c0_80 = arith.constant 0 : index
    %c2_81 = arith.constant 2 : index
    %c0_82 = arith.constant 0 : index
    %c0_83 = arith.constant 0 : index
    %133 = vector.load %arg1[%c0_80, %c2_81, %c0_82, %c0_83] : memref<1x6x8x384xf32, #tpu.memory_space<vmem>>, vector<1x1x8x384xf32>
    %134 = vector.shape_cast %133 : vector<1x1x8x384xf32> to vector<8x384xf32>
    %135 = vector.broadcast %1 : vector<8x1xf32> to vector<8x384xf32>
    %136 = arith.mulf %134, %135 : vector<8x384xf32>
    %137 = vector.broadcast %2 : vector<8x1xf32> to vector<8x384xf32>
    %138 = arith.addf %136, %137 : vector<8x384xf32>
    %139 = arith.negf %138 : vector<8x384xf32>
    %140 = math.exp %139 : vector<8x384xf32>
    %cst_84 = arith.constant 1.000000e+00 : f32
    %141 = vector.broadcast %cst_84 : f32 to vector<8x384xf32>
    %142 = arith.addf %141, %140 : vector<8x384xf32>
    %143 = arith.divf %141, %142 : vector<8x384xf32>
    %144 = arith.mulf %138, %143 : vector<8x384xf32>
    %145 = vector.broadcast %0 : vector<1x384xf32> to vector<8x384xf32>
    %146 = arith.mulf %144, %145 : vector<8x384xf32>
    %cst_85 = arith.constant 0.000000e+00 : f32
    %147 = vector.broadcast %cst_85 : f32 to vector<8x384xf32>
    %c19_i32_86 = arith.constant 19 : i32
    %148 = tpu.dynamic_rotate %146 by %c19_i32_86 dim 1 : vector<8x384xf32>, i32 -> vector<8x384xf32>
    %cst_87 = arith.constant dense<0.000000e+00> : vector<8x384xf32>
    %149 = tpu.matmul %4, %148, %cst_87 {dimension_numbers = #tpu.dot_dimension_numbers<[1], [0], [0], [1], [0, 0, 1, 1], [], []>} : vector<8x8xf32>, vector<8x384xf32>, vector<8x384xf32> -> vector<8x384xf32>
    %150 = arith.addf %147, %149 : vector<8x384xf32>
    %c18_i32_88 = arith.constant 18 : i32
    %151 = tpu.dynamic_rotate %146 by %c18_i32_88 dim 1 : vector<8x384xf32>, i32 -> vector<8x384xf32>
    %cst_89 = arith.constant dense<0.000000e+00> : vector<8x384xf32>
    %152 = tpu.matmul %6, %151, %cst_89 {dimension_numbers = #tpu.dot_dimension_numbers<[1], [0], [0], [1], [0, 0, 1, 1], [], []>} : vector<8x8xf32>, vector<8x384xf32>, vector<8x384xf32> -> vector<8x384xf32>
    %153 = arith.addf %150, %152 : vector<8x384xf32>
    %c17_i32_90 = arith.constant 17 : i32
    %154 = tpu.dynamic_rotate %146 by %c17_i32_90 dim 1 : vector<8x384xf32>, i32 -> vector<8x384xf32>
    %cst_91 = arith.constant dense<0.000000e+00> : vector<8x384xf32>
    %155 = tpu.matmul %8, %154, %cst_91 {dimension_numbers = #tpu.dot_dimension_numbers<[1], [0], [0], [1], [0, 0, 1, 1], [], []>} : vector<8x8xf32>, vector<8x384xf32>, vector<8x384xf32> -> vector<8x384xf32>
    %156 = arith.addf %153, %155 : vector<8x384xf32>
    %c1_i32_92 = arith.constant 1 : i32
    %157 = tpu.dynamic_rotate %146 by %c1_i32_92 dim 1 : vector<8x384xf32>, i32 -> vector<8x384xf32>
    %cst_93 = arith.constant dense<0.000000e+00> : vector<8x384xf32>
    %158 = tpu.matmul %10, %157, %cst_93 {dimension_numbers = #tpu.dot_dimension_numbers<[1], [0], [0], [1], [0, 0, 1, 1], [], []>} : vector<8x8xf32>, vector<8x384xf32>, vector<8x384xf32> -> vector<8x384xf32>
    %159 = arith.addf %156, %158 : vector<8x384xf32>
    %cst_94 = arith.constant dense<0.000000e+00> : vector<8x384xf32>
    %160 = tpu.matmul %12, %146, %cst_94 {dimension_numbers = #tpu.dot_dimension_numbers<[1], [0], [0], [1], [0, 0, 1, 1], [], []>} : vector<8x8xf32>, vector<8x384xf32>, vector<8x384xf32> -> vector<8x384xf32>
    %161 = arith.addf %159, %160 : vector<8x384xf32>
    %c383_i32_95 = arith.constant 383 : i32
    %162 = tpu.dynamic_rotate %146 by %c383_i32_95 dim 1 : vector<8x384xf32>, i32 -> vector<8x384xf32>
    %cst_96 = arith.constant dense<0.000000e+00> : vector<8x384xf32>
    %163 = tpu.matmul %14, %162, %cst_96 {dimension_numbers = #tpu.dot_dimension_numbers<[1], [0], [0], [1], [0, 0, 1, 1], [], []>} : vector<8x8xf32>, vector<8x384xf32>, vector<8x384xf32> -> vector<8x384xf32>
    %164 = arith.addf %161, %163 : vector<8x384xf32>
    %c367_i32_97 = arith.constant 367 : i32
    %165 = tpu.dynamic_rotate %146 by %c367_i32_97 dim 1 : vector<8x384xf32>, i32 -> vector<8x384xf32>
    %cst_98 = arith.constant dense<0.000000e+00> : vector<8x384xf32>
    %166 = tpu.matmul %16, %165, %cst_98 {dimension_numbers = #tpu.dot_dimension_numbers<[1], [0], [0], [1], [0, 0, 1, 1], [], []>} : vector<8x8xf32>, vector<8x384xf32>, vector<8x384xf32> -> vector<8x384xf32>
    %167 = arith.addf %164, %166 : vector<8x384xf32>
    %c366_i32_99 = arith.constant 366 : i32
    %168 = tpu.dynamic_rotate %146 by %c366_i32_99 dim 1 : vector<8x384xf32>, i32 -> vector<8x384xf32>
    %cst_100 = arith.constant dense<0.000000e+00> : vector<8x384xf32>
    %169 = tpu.matmul %18, %168, %cst_100 {dimension_numbers = #tpu.dot_dimension_numbers<[1], [0], [0], [1], [0, 0, 1, 1], [], []>} : vector<8x8xf32>, vector<8x384xf32>, vector<8x384xf32> -> vector<8x384xf32>
    %170 = arith.addf %167, %169 : vector<8x384xf32>
    %c365_i32_101 = arith.constant 365 : i32
    %171 = tpu.dynamic_rotate %146 by %c365_i32_101 dim 1 : vector<8x384xf32>, i32 -> vector<8x384xf32>
    %cst_102 = arith.constant dense<0.000000e+00> : vector<8x384xf32>
    %172 = tpu.matmul %20, %171, %cst_102 {dimension_numbers = #tpu.dot_dimension_numbers<[1], [0], [0], [1], [0, 0, 1, 1], [], []>} : vector<8x8xf32>, vector<8x384xf32>, vector<8x384xf32> -> vector<8x384xf32>
    %173 = arith.addf %170, %172 : vector<8x384xf32>
    %174 = vector.broadcast %0 : vector<1x384xf32> to vector<8x384xf32>
    %175 = arith.mulf %173, %174 : vector<8x384xf32>
    %c0_103 = arith.constant 0 : index
    %c3_104 = arith.constant 3 : index
    %c0_105 = arith.constant 0 : index
    %c0_106 = arith.constant 0 : index
    %176 = vector.load %arg6[%c0_103, %c3_104, %c0_105, %c0_106] : memref<1x8x8x384xf32, #tpu.memory_space<vmem>>, vector<1x1x8x384xf32>
    %177 = vector.shape_cast %176 : vector<1x1x8x384xf32> to vector<8x384xf32>
    %178 = vector.shape_cast %175 : vector<8x384xf32> to vector<1x1x8x384xf32>
    tpu.vector_store %arg6[%c0_103, %c3_104, %c0_105, %c0_106], %178 {strides = array<i32>} : memref<1x8x8x384xf32, #tpu.memory_space<vmem>>, vector<1x1x8x384xf32>,
    %cst_107 = arith.constant dense<0.000000e+00> : vector<8xf32>
    %179 = vector.multi_reduction <add>, %175, %cst_107 [1] : vector<8x384xf32> to vector<8xf32>
    %180 = vector.shape_cast %179 : vector<8xf32> to vector<8x1xf32>
    %181 = arith.addf %128, %180 : vector<8x1xf32>
    %182 = arith.mulf %175, %175 : vector<8x384xf32>
    %cst_108 = arith.constant dense<0.000000e+00> : vector<8xf32>
    %183 = vector.multi_reduction <add>, %182, %cst_108 [1] : vector<8x384xf32> to vector<8xf32>
    %184 = vector.shape_cast %183 : vector<8xf32> to vector<8x1xf32>
    %185 = arith.addf %132, %184 : vector<8x1xf32>
    %c0_109 = arith.constant 0 : index
    %c3_110 = arith.constant 3 : index
    %c0_111 = arith.constant 0 : index
    %c0_112 = arith.constant 0 : index
    %186 = vector.load %arg1[%c0_109, %c3_110, %c0_111, %c0_112] : memref<1x6x8x384xf32, #tpu.memory_space<vmem>>, vector<1x1x8x384xf32>
    %187 = vector.shape_cast %186 : vector<1x1x8x384xf32> to vector<8x384xf32>
    %188 = vector.broadcast %1 : vector<8x1xf32> to vector<8x384xf32>
    %189 = arith.mulf %187, %188 : vector<8x384xf32>
    %190 = vector.broadcast %2 : vector<8x1xf32> to vector<8x384xf32>
    %191 = arith.addf %189, %190 : vector<8x384xf32>
    %192 = arith.negf %191 : vector<8x384xf32>
    %193 = math.exp %192 : vector<8x384xf32>
    %cst_113 = arith.constant 1.000000e+00 : f32
    %194 = vector.broadcast %cst_113 : f32 to vector<8x384xf32>
    %195 = arith.addf %194, %193 : vector<8x384xf32>
    %196 = arith.divf %194, %195 : vector<8x384xf32>
    %197 = arith.mulf %191, %196 : vector<8x384xf32>
    %198 = vector.broadcast %0 : vector<1x384xf32> to vector<8x384xf32>
    %199 = arith.mulf %197, %198 : vector<8x384xf32>
    %cst_114 = arith.constant 0.000000e+00 : f32
    %200 = vector.broadcast %cst_114 : f32 to vector<8x384xf32>
    %c19_i32_115 = arith.constant 19 : i32
    %201 = tpu.dynamic_rotate %199 by %c19_i32_115 dim 1 : vector<8x384xf32>, i32 -> vector<8x384xf32>
    %cst_116 = arith.constant dense<0.000000e+00> : vector<8x384xf32>
    %202 = tpu.matmul %4, %201, %cst_116 {dimension_numbers = #tpu.dot_dimension_numbers<[1], [0], [0], [1], [0, 0, 1, 1], [], []>} : vector<8x8xf32>, vector<8x384xf32>, vector<8x384xf32> -> vector<8x384xf32>
    %203 = arith.addf %200, %202 : vector<8x384xf32>
    %c18_i32_117 = arith.constant 18 : i32
    %204 = tpu.dynamic_rotate %199 by %c18_i32_117 dim 1 : vector<8x384xf32>, i32 -> vector<8x384xf32>
    %cst_118 = arith.constant dense<0.000000e+00> : vector<8x384xf32>
    %205 = tpu.matmul %6, %204, %cst_118 {dimension_numbers = #tpu.dot_dimension_numbers<[1], [0], [0], [1], [0, 0, 1, 1], [], []>} : vector<8x8xf32>, vector<8x384xf32>, vector<8x384xf32> -> vector<8x384xf32>
    %206 = arith.addf %203, %205 : vector<8x384xf32>
    %c17_i32_119 = arith.constant 17 : i32
    %207 = tpu.dynamic_rotate %199 by %c17_i32_119 dim 1 : vector<8x384xf32>, i32 -> vector<8x384xf32>
    %cst_120 = arith.constant dense<0.000000e+00> : vector<8x384xf32>
    %208 = tpu.matmul %8, %207, %cst_120 {dimension_numbers = #tpu.dot_dimension_numbers<[1], [0], [0], [1], [0, 0, 1, 1], [], []>} : vector<8x8xf32>, vector<8x384xf32>, vector<8x384xf32> -> vector<8x384xf32>
    %209 = arith.addf %206, %208 : vector<8x384xf32>
    %c1_i32_121 = arith.constant 1 : i32
    %210 = tpu.dynamic_rotate %199 by %c1_i32_121 dim 1 : vector<8x384xf32>, i32 -> vector<8x384xf32>
    %cst_122 = arith.constant dense<0.000000e+00> : vector<8x384xf32>
    %211 = tpu.matmul %10, %210, %cst_122 {dimension_numbers = #tpu.dot_dimension_numbers<[1], [0], [0], [1], [0, 0, 1, 1], [], []>} : vector<8x8xf32>, vector<8x384xf32>, vector<8x384xf32> -> vector<8x384xf32>
    %212 = arith.addf %209, %211 : vector<8x384xf32>
    %cst_123 = arith.constant dense<0.000000e+00> : vector<8x384xf32>
    %213 = tpu.matmul %12, %199, %cst_123 {dimension_numbers = #tpu.dot_dimension_numbers<[1], [0], [0], [1], [0, 0, 1, 1], [], []>} : vector<8x8xf32>, vector<8x384xf32>, vector<8x384xf32> -> vector<8x384xf32>
    %214 = arith.addf %212, %213 : vector<8x384xf32>
    %c383_i32_124 = arith.constant 383 : i32
    %215 = tpu.dynamic_rotate %199 by %c383_i32_124 dim 1 : vector<8x384xf32>, i32 -> vector<8x384xf32>
    %cst_125 = arith.constant dense<0.000000e+00> : vector<8x384xf32>
    %216 = tpu.matmul %14, %215, %cst_125 {dimension_numbers = #tpu.dot_dimension_numbers<[1], [0], [0], [1], [0, 0, 1, 1], [], []>} : vector<8x8xf32>, vector<8x384xf32>, vector<8x384xf32> -> vector<8x384xf32>
    %217 = arith.addf %214, %216 : vector<8x384xf32>
    %c367_i32_126 = arith.constant 367 : i32
    %218 = tpu.dynamic_rotate %199 by %c367_i32_126 dim 1 : vector<8x384xf32>, i32 -> vector<8x384xf32>
    %cst_127 = arith.constant dense<0.000000e+00> : vector<8x384xf32>
    %219 = tpu.matmul %16, %218, %cst_127 {dimension_numbers = #tpu.dot_dimension_numbers<[1], [0], [0], [1], [0, 0, 1, 1], [], []>} : vector<8x8xf32>, vector<8x384xf32>, vector<8x384xf32> -> vector<8x384xf32>
    %220 = arith.addf %217, %219 : vector<8x384xf32>
    %c366_i32_128 = arith.constant 366 : i32
    %221 = tpu.dynamic_rotate %199 by %c366_i32_128 dim 1 : vector<8x384xf32>, i32 -> vector<8x384xf32>
    %cst_129 = arith.constant dense<0.000000e+00> : vector<8x384xf32>
    %222 = tpu.matmul %18, %221, %cst_129 {dimension_numbers = #tpu.dot_dimension_numbers<[1], [0], [0], [1], [0, 0, 1, 1], [], []>} : vector<8x8xf32>, vector<8x384xf32>, vector<8x384xf32> -> vector<8x384xf32>
    %223 = arith.addf %220, %222 : vector<8x384xf32>
    %c365_i32_130 = arith.constant 365 : i32
    %224 = tpu.dynamic_rotate %199 by %c365_i32_130 dim 1 : vector<8x384xf32>, i32 -> vector<8x384xf32>
    %cst_131 = arith.constant dense<0.000000e+00> : vector<8x384xf32>
    %225 = tpu.matmul %20, %224, %cst_131 {dimension_numbers = #tpu.dot_dimension_numbers<[1], [0], [0], [1], [0, 0, 1, 1], [], []>} : vector<8x8xf32>, vector<8x384xf32>, vector<8x384xf32> -> vector<8x384xf32>
    %226 = arith.addf %223, %225 : vector<8x384xf32>
    %227 = vector.broadcast %0 : vector<1x384xf32> to vector<8x384xf32>
    %228 = arith.mulf %226, %227 : vector<8x384xf32>
    %c0_132 = arith.constant 0 : index
    %c4_133 = arith.constant 4 : index
    %c0_134 = arith.constant 0 : index
    %c0_135 = arith.constant 0 : index
    %229 = vector.load %arg6[%c0_132, %c4_133, %c0_134, %c0_135] : memref<1x8x8x384xf32, #tpu.memory_space<vmem>>, vector<1x1x8x384xf32>
    %230 = vector.shape_cast %229 : vector<1x1x8x384xf32> to vector<8x384xf32>
    %231 = vector.shape_cast %228 : vector<8x384xf32> to vector<1x1x8x384xf32>
    tpu.vector_store %arg6[%c0_132, %c4_133, %c0_134, %c0_135], %231 {strides = array<i32>} : memref<1x8x8x384xf32, #tpu.memory_space<vmem>>, vector<1x1x8x384xf32>,
    %cst_136 = arith.constant dense<0.000000e+00> : vector<8xf32>
    %232 = vector.multi_reduction <add>, %228, %cst_136 [1] : vector<8x384xf32> to vector<8xf32>
    %233 = vector.shape_cast %232 : vector<8xf32> to vector<8x1xf32>
    %234 = arith.addf %181, %233 : vector<8x1xf32>
    %235 = arith.mulf %228, %228 : vector<8x384xf32>
    %cst_137 = arith.constant dense<0.000000e+00> : vector<8xf32>
    %236 = vector.multi_reduction <add>, %235, %cst_137 [1] : vector<8x384xf32> to vector<8xf32>
    %237 = vector.shape_cast %236 : vector<8xf32> to vector<8x1xf32>
    %238 = arith.addf %185, %237 : vector<8x1xf32>
    %c0_138 = arith.constant 0 : index
    %c4_139 = arith.constant 4 : index
    %c0_140 = arith.constant 0 : index
    %c0_141 = arith.constant 0 : index
    %239 = vector.load %arg1[%c0_138, %c4_139, %c0_140, %c0_141] : memref<1x6x8x384xf32, #tpu.memory_space<vmem>>, vector<1x1x8x384xf32>
    %240 = vector.shape_cast %239 : vector<1x1x8x384xf32> to vector<8x384xf32>
    %241 = vector.broadcast %1 : vector<8x1xf32> to vector<8x384xf32>
    %242 = arith.mulf %240, %241 : vector<8x384xf32>
    %243 = vector.broadcast %2 : vector<8x1xf32> to vector<8x384xf32>
    %244 = arith.addf %242, %243 : vector<8x384xf32>
    %245 = arith.negf %244 : vector<8x384xf32>
    %246 = math.exp %245 : vector<8x384xf32>
    %cst_142 = arith.constant 1.000000e+00 : f32
    %247 = vector.broadcast %cst_142 : f32 to vector<8x384xf32>
    %248 = arith.addf %247, %246 : vector<8x384xf32>
    %249 = arith.divf %247, %248 : vector<8x384xf32>
    %250 = arith.mulf %244, %249 : vector<8x384xf32>
    %251 = vector.broadcast %0 : vector<1x384xf32> to vector<8x384xf32>
    %252 = arith.mulf %250, %251 : vector<8x384xf32>
    %cst_143 = arith.constant 0.000000e+00 : f32
    %253 = vector.broadcast %cst_143 : f32 to vector<8x384xf32>
    %c19_i32_144 = arith.constant 19 : i32
    %254 = tpu.dynamic_rotate %252 by %c19_i32_144 dim 1 : vector<8x384xf32>, i32 -> vector<8x384xf32>
    %cst_145 = arith.constant dense<0.000000e+00> : vector<8x384xf32>
    %255 = tpu.matmul %4, %254, %cst_145 {dimension_numbers = #tpu.dot_dimension_numbers<[1], [0], [0], [1], [0, 0, 1, 1], [], []>} : vector<8x8xf32>, vector<8x384xf32>, vector<8x384xf32> -> vector<8x384xf32>
    %256 = arith.addf %253, %255 : vector<8x384xf32>
    %c18_i32_146 = arith.constant 18 : i32
    %257 = tpu.dynamic_rotate %252 by %c18_i32_146 dim 1 : vector<8x384xf32>, i32 -> vector<8x384xf32>
    %cst_147 = arith.constant dense<0.000000e+00> : vector<8x384xf32>
    %258 = tpu.matmul %6, %257, %cst_147 {dimension_numbers = #tpu.dot_dimension_numbers<[1], [0], [0], [1], [0, 0, 1, 1], [], []>} : vector<8x8xf32>, vector<8x384xf32>, vector<8x384xf32> -> vector<8x384xf32>
    %259 = arith.addf %256, %258 : vector<8x384xf32>
    %c17_i32_148 = arith.constant 17 : i32
    %260 = tpu.dynamic_rotate %252 by %c17_i32_148 dim 1 : vector<8x384xf32>, i32 -> vector<8x384xf32>
    %cst_149 = arith.constant dense<0.000000e+00> : vector<8x384xf32>
    %261 = tpu.matmul %8, %260, %cst_149 {dimension_numbers = #tpu.dot_dimension_numbers<[1], [0], [0], [1], [0, 0, 1, 1], [], []>} : vector<8x8xf32>, vector<8x384xf32>, vector<8x384xf32> -> vector<8x384xf32>
    %262 = arith.addf %259, %261 : vector<8x384xf32>
    %c1_i32_150 = arith.constant 1 : i32
    %263 = tpu.dynamic_rotate %252 by %c1_i32_150 dim 1 : vector<8x384xf32>, i32 -> vector<8x384xf32>
    %cst_151 = arith.constant dense<0.000000e+00> : vector<8x384xf32>
    %264 = tpu.matmul %10, %263, %cst_151 {dimension_numbers = #tpu.dot_dimension_numbers<[1], [0], [0], [1], [0, 0, 1, 1], [], []>} : vector<8x8xf32>, vector<8x384xf32>, vector<8x384xf32> -> vector<8x384xf32>
    %265 = arith.addf %262, %264 : vector<8x384xf32>
    %cst_152 = arith.constant dense<0.000000e+00> : vector<8x384xf32>
    %266 = tpu.matmul %12, %252, %cst_152 {dimension_numbers = #tpu.dot_dimension_numbers<[1], [0], [0], [1], [0, 0, 1, 1], [], []>} : vector<8x8xf32>, vector<8x384xf32>, vector<8x384xf32> -> vector<8x384xf32>
    %267 = arith.addf %265, %266 : vector<8x384xf32>
    %c383_i32_153 = arith.constant 383 : i32
    %268 = tpu.dynamic_rotate %252 by %c383_i32_153 dim 1 : vector<8x384xf32>, i32 -> vector<8x384xf32>
    %cst_154 = arith.constant dense<0.000000e+00> : vector<8x384xf32>
    %269 = tpu.matmul %14, %268, %cst_154 {dimension_numbers = #tpu.dot_dimension_numbers<[1], [0], [0], [1], [0, 0, 1, 1], [], []>} : vector<8x8xf32>, vector<8x384xf32>, vector<8x384xf32> -> vector<8x384xf32>
    %270 = arith.addf %267, %269 : vector<8x384xf32>
    %c367_i32_155 = arith.constant 367 : i32
    %271 = tpu.dynamic_rotate %252 by %c367_i32_155 dim 1 : vector<8x384xf32>, i32 -> vector<8x384xf32>
    %cst_156 = arith.constant dense<0.000000e+00> : vector<8x384xf32>
    %272 = tpu.matmul %16, %271, %cst_156 {dimension_numbers = #tpu.dot_dimension_numbers<[1], [0], [0], [1], [0, 0, 1, 1], [], []>} : vector<8x8xf32>, vector<8x384xf32>, vector<8x384xf32> -> vector<8x384xf32>
    %273 = arith.addf %270, %272 : vector<8x384xf32>
    %c366_i32_157 = arith.constant 366 : i32
    %274 = tpu.dynamic_rotate %252 by %c366_i32_157 dim 1 : vector<8x384xf32>, i32 -> vector<8x384xf32>
    %cst_158 = arith.constant dense<0.000000e+00> : vector<8x384xf32>
    %275 = tpu.matmul %18, %274, %cst_158 {dimension_numbers = #tpu.dot_dimension_numbers<[1], [0], [0], [1], [0, 0, 1, 1], [], []>} : vector<8x8xf32>, vector<8x384xf32>, vector<8x384xf32> -> vector<8x384xf32>
    %276 = arith.addf %273, %275 : vector<8x384xf32>
    %c365_i32_159 = arith.constant 365 : i32
    %277 = tpu.dynamic_rotate %252 by %c365_i32_159 dim 1 : vector<8x384xf32>, i32 -> vector<8x384xf32>
    %cst_160 = arith.constant dense<0.000000e+00> : vector<8x384xf32>
    %278 = tpu.matmul %20, %277, %cst_160 {dimension_numbers = #tpu.dot_dimension_numbers<[1], [0], [0], [1], [0, 0, 1, 1], [], []>} : vector<8x8xf32>, vector<8x384xf32>, vector<8x384xf32> -> vector<8x384xf32>
    %279 = arith.addf %276, %278 : vector<8x384xf32>
    %280 = vector.broadcast %0 : vector<1x384xf32> to vector<8x384xf32>
    %281 = arith.mulf %279, %280 : vector<8x384xf32>
    %c0_161 = arith.constant 0 : index
    %c5_162 = arith.constant 5 : index
    %c0_163 = arith.constant 0 : index
    %c0_164 = arith.constant 0 : index
    %282 = vector.load %arg6[%c0_161, %c5_162, %c0_163, %c0_164] : memref<1x8x8x384xf32, #tpu.memory_space<vmem>>, vector<1x1x8x384xf32>
    %283 = vector.shape_cast %282 : vector<1x1x8x384xf32> to vector<8x384xf32>
    %284 = vector.shape_cast %281 : vector<8x384xf32> to vector<1x1x8x384xf32>
    tpu.vector_store %arg6[%c0_161, %c5_162, %c0_163, %c0_164], %284 {strides = array<i32>} : memref<1x8x8x384xf32, #tpu.memory_space<vmem>>, vector<1x1x8x384xf32>,
    %cst_165 = arith.constant dense<0.000000e+00> : vector<8xf32>
    %285 = vector.multi_reduction <add>, %281, %cst_165 [1] : vector<8x384xf32> to vector<8xf32>
    %286 = vector.shape_cast %285 : vector<8xf32> to vector<8x1xf32>
    %287 = arith.addf %234, %286 : vector<8x1xf32>
    %288 = arith.mulf %281, %281 : vector<8x384xf32>
    %cst_166 = arith.constant dense<0.000000e+00> : vector<8xf32>
    %289 = vector.multi_reduction <add>, %288, %cst_166 [1] : vector<8x384xf32> to vector<8xf32>
    %290 = vector.shape_cast %289 : vector<8xf32> to vector<8x1xf32>
    %291 = arith.addf %238, %290 : vector<8x1xf32>
    %c0_167 = arith.constant 0 : index
    %c5_168 = arith.constant 5 : index
    %c0_169 = arith.constant 0 : index
    %c0_170 = arith.constant 0 : index
    %292 = vector.load %arg1[%c0_167, %c5_168, %c0_169, %c0_170] : memref<1x6x8x384xf32, #tpu.memory_space<vmem>>, vector<1x1x8x384xf32>
    %293 = vector.shape_cast %292 : vector<1x1x8x384xf32> to vector<8x384xf32>
    %294 = vector.broadcast %1 : vector<8x1xf32> to vector<8x384xf32>
    %295 = arith.mulf %293, %294 : vector<8x384xf32>
    %296 = vector.broadcast %2 : vector<8x1xf32> to vector<8x384xf32>
    %297 = arith.addf %295, %296 : vector<8x384xf32>
    %298 = arith.negf %297 : vector<8x384xf32>
    %299 = math.exp %298 : vector<8x384xf32>
    %cst_171 = arith.constant 1.000000e+00 : f32
    %300 = vector.broadcast %cst_171 : f32 to vector<8x384xf32>
    %301 = arith.addf %300, %299 : vector<8x384xf32>
    %302 = arith.divf %300, %301 : vector<8x384xf32>
    %303 = arith.mulf %297, %302 : vector<8x384xf32>
    %304 = vector.broadcast %0 : vector<1x384xf32> to vector<8x384xf32>
    %305 = arith.mulf %303, %304 : vector<8x384xf32>
    %cst_172 = arith.constant 0.000000e+00 : f32
    %306 = vector.broadcast %cst_172 : f32 to vector<8x384xf32>
    %c19_i32_173 = arith.constant 19 : i32
    %307 = tpu.dynamic_rotate %305 by %c19_i32_173 dim 1 : vector<8x384xf32>, i32 -> vector<8x384xf32>
    %cst_174 = arith.constant dense<0.000000e+00> : vector<8x384xf32>
    %308 = tpu.matmul %4, %307, %cst_174 {dimension_numbers = #tpu.dot_dimension_numbers<[1], [0], [0], [1], [0, 0, 1, 1], [], []>} : vector<8x8xf32>, vector<8x384xf32>, vector<8x384xf32> -> vector<8x384xf32>
    %309 = arith.addf %306, %308 : vector<8x384xf32>
    %c18_i32_175 = arith.constant 18 : i32
    %310 = tpu.dynamic_rotate %305 by %c18_i32_175 dim 1 : vector<8x384xf32>, i32 -> vector<8x384xf32>
    %cst_176 = arith.constant dense<0.000000e+00> : vector<8x384xf32>
    %311 = tpu.matmul %6, %310, %cst_176 {dimension_numbers = #tpu.dot_dimension_numbers<[1], [0], [0], [1], [0, 0, 1, 1], [], []>} : vector<8x8xf32>, vector<8x384xf32>, vector<8x384xf32> -> vector<8x384xf32>
    %312 = arith.addf %309, %311 : vector<8x384xf32>
    %c17_i32_177 = arith.constant 17 : i32
    %313 = tpu.dynamic_rotate %305 by %c17_i32_177 dim 1 : vector<8x384xf32>, i32 -> vector<8x384xf32>
    %cst_178 = arith.constant dense<0.000000e+00> : vector<8x384xf32>
    %314 = tpu.matmul %8, %313, %cst_178 {dimension_numbers = #tpu.dot_dimension_numbers<[1], [0], [0], [1], [0, 0, 1, 1], [], []>} : vector<8x8xf32>, vector<8x384xf32>, vector<8x384xf32> -> vector<8x384xf32>
    %315 = arith.addf %312, %314 : vector<8x384xf32>
    %c1_i32_179 = arith.constant 1 : i32
    %316 = tpu.dynamic_rotate %305 by %c1_i32_179 dim 1 : vector<8x384xf32>, i32 -> vector<8x384xf32>
    %cst_180 = arith.constant dense<0.000000e+00> : vector<8x384xf32>
    %317 = tpu.matmul %10, %316, %cst_180 {dimension_numbers = #tpu.dot_dimension_numbers<[1], [0], [0], [1], [0, 0, 1, 1], [], []>} : vector<8x8xf32>, vector<8x384xf32>, vector<8x384xf32> -> vector<8x384xf32>
    %318 = arith.addf %315, %317 : vector<8x384xf32>
    %cst_181 = arith.constant dense<0.000000e+00> : vector<8x384xf32>
    %319 = tpu.matmul %12, %305, %cst_181 {dimension_numbers = #tpu.dot_dimension_numbers<[1], [0], [0], [1], [0, 0, 1, 1], [], []>} : vector<8x8xf32>, vector<8x384xf32>, vector<8x384xf32> -> vector<8x384xf32>
    %320 = arith.addf %318, %319 : vector<8x384xf32>
    %c383_i32_182 = arith.constant 383 : i32
    %321 = tpu.dynamic_rotate %305 by %c383_i32_182 dim 1 : vector<8x384xf32>, i32 -> vector<8x384xf32>
    %cst_183 = arith.constant dense<0.000000e+00> : vector<8x384xf32>
    %322 = tpu.matmul %14, %321, %cst_183 {dimension_numbers = #tpu.dot_dimension_numbers<[1], [0], [0], [1], [0, 0, 1, 1], [], []>} : vector<8x8xf32>, vector<8x384xf32>, vector<8x384xf32> -> vector<8x384xf32>
    %323 = arith.addf %320, %322 : vector<8x384xf32>
    %c367_i32_184 = arith.constant 367 : i32
    %324 = tpu.dynamic_rotate %305 by %c367_i32_184 dim 1 : vector<8x384xf32>, i32 -> vector<8x384xf32>
    %cst_185 = arith.constant dense<0.000000e+00> : vector<8x384xf32>
    %325 = tpu.matmul %16, %324, %cst_185 {dimension_numbers = #tpu.dot_dimension_numbers<[1], [0], [0], [1], [0, 0, 1, 1], [], []>} : vector<8x8xf32>, vector<8x384xf32>, vector<8x384xf32> -> vector<8x384xf32>
    %326 = arith.addf %323, %325 : vector<8x384xf32>
    %c366_i32_186 = arith.constant 366 : i32
    %327 = tpu.dynamic_rotate %305 by %c366_i32_186 dim 1 : vector<8x384xf32>, i32 -> vector<8x384xf32>
    %cst_187 = arith.constant dense<0.000000e+00> : vector<8x384xf32>
    %328 = tpu.matmul %18, %327, %cst_187 {dimension_numbers = #tpu.dot_dimension_numbers<[1], [0], [0], [1], [0, 0, 1, 1], [], []>} : vector<8x8xf32>, vector<8x384xf32>, vector<8x384xf32> -> vector<8x384xf32>
    %329 = arith.addf %326, %328 : vector<8x384xf32>
    %c365_i32_188 = arith.constant 365 : i32
    %330 = tpu.dynamic_rotate %305 by %c365_i32_188 dim 1 : vector<8x384xf32>, i32 -> vector<8x384xf32>
    %cst_189 = arith.constant dense<0.000000e+00> : vector<8x384xf32>
    %331 = tpu.matmul %20, %330, %cst_189 {dimension_numbers = #tpu.dot_dimension_numbers<[1], [0], [0], [1], [0, 0, 1, 1], [], []>} : vector<8x8xf32>, vector<8x384xf32>, vector<8x384xf32> -> vector<8x384xf32>
    %332 = arith.addf %329, %331 : vector<8x384xf32>
    %333 = vector.broadcast %0 : vector<1x384xf32> to vector<8x384xf32>
    %334 = arith.mulf %332, %333 : vector<8x384xf32>
    %c0_190 = arith.constant 0 : index
    %c6_191 = arith.constant 6 : index
    %c0_192 = arith.constant 0 : index
    %c0_193 = arith.constant 0 : index
    %335 = vector.load %arg6[%c0_190, %c6_191, %c0_192, %c0_193] : memref<1x8x8x384xf32, #tpu.memory_space<vmem>>, vector<1x1x8x384xf32>
    %336 = vector.shape_cast %335 : vector<1x1x8x384xf32> to vector<8x384xf32>
    %337 = vector.shape_cast %334 : vector<8x384xf32> to vector<1x1x8x384xf32>
    tpu.vector_store %arg6[%c0_190, %c6_191, %c0_192, %c0_193], %337 {strides = array<i32>} : memref<1x8x8x384xf32, #tpu.memory_space<vmem>>, vector<1x1x8x384xf32>,
    %cst_194 = arith.constant dense<0.000000e+00> : vector<8xf32>
    %338 = vector.multi_reduction <add>, %334, %cst_194 [1] : vector<8x384xf32> to vector<8xf32>
    %339 = vector.shape_cast %338 : vector<8xf32> to vector<8x1xf32>
    %340 = arith.addf %287, %339 : vector<8x1xf32>
    %341 = arith.mulf %334, %334 : vector<8x384xf32>
    %cst_195 = arith.constant dense<0.000000e+00> : vector<8xf32>
    %342 = vector.multi_reduction <add>, %341, %cst_195 [1] : vector<8x384xf32> to vector<8xf32>
    %343 = vector.shape_cast %342 : vector<8xf32> to vector<8x1xf32>
    %344 = arith.addf %291, %343 : vector<8x1xf32>
    %cst_196 = arith.constant 0.000000e+00 : f32
    %345 = vector.broadcast %cst_196 : f32 to vector<8x384xf32>
    %c0_197 = arith.constant 0 : index
    %c7_198 = arith.constant 7 : index
    %c0_199 = arith.constant 0 : index
    %c0_200 = arith.constant 0 : index
    %346 = vector.load %arg6[%c0_197, %c7_198, %c0_199, %c0_200] : memref<1x8x8x384xf32, #tpu.memory_space<vmem>>, vector<1x1x8x384xf32>
    %347 = vector.shape_cast %346 : vector<1x1x8x384xf32> to vector<8x384xf32>
    %348 = vector.shape_cast %345 : vector<8x384xf32> to vector<1x1x8x384xf32>
    tpu.vector_store %arg6[%c0_197, %c7_198, %c0_199, %c0_200], %348 {strides = array<i32>} : memref<1x8x8x384xf32, #tpu.memory_space<vmem>>, vector<1x1x8x384xf32>,
    %c0_201 = arith.constant 0 : index
    %c0_202 = arith.constant 0 : index
    %c0_203 = arith.constant 0 : index
    %349 = vector.load %arg7[%c0_201, %c0_202, %c0_203] : memref<1x8x1xf32, #tpu.memory_space<vmem>>, vector<1x8x1xf32>
    %350 = vector.shape_cast %349 : vector<1x8x1xf32> to vector<8x1xf32>
    %351 = vector.shape_cast %340 : vector<8x1xf32> to vector<1x8x1xf32>
    tpu.vector_store %arg7[%c0_201, %c0_202, %c0_203], %351 {strides = array<i32>} : memref<1x8x1xf32, #tpu.memory_space<vmem>>, vector<1x8x1xf32>,
    %c0_204 = arith.constant 0 : index
    %c0_205 = arith.constant 0 : index
    %c0_206 = arith.constant 0 : index
    %352 = vector.load %arg8[%c0_204, %c0_205, %c0_206] : memref<1x8x1xf32, #tpu.memory_space<vmem>>, vector<1x8x1xf32>
    %353 = vector.shape_cast %352 : vector<1x8x1xf32> to vector<8x1xf32>
    %354 = vector.shape_cast %344 : vector<8x1xf32> to vector<1x8x1xf32>
    tpu.vector_store %arg8[%c0_204, %c0_205, %c0_206], %354 {strides = array<i32>} : memref<1x8x1xf32, #tpu.memory_space<vmem>>, vector<1x8x1xf32>,
    return
  }
  func.func @transform_0(%arg0: i32) -> (i32, i32, i32, i32) {
    %c0_i32 = arith.constant 0 : i32
    %c0_i32_0 = arith.constant 0 : i32
    %c0_i32_1 = arith.constant 0 : i32
    %c0_i32_2 = arith.constant 0 : i32
    return %arg0, %c0_i32, %c0_i32_0, %c0_i32_1 : i32, i32, i32, i32
  }
  func.func @transform_1(%arg0: i32) -> (i32, i32, i32) {
    %c0_i32 = arith.constant 0 : i32
    %c0_i32_0 = arith.constant 0 : i32
    %c0_i32_1 = arith.constant 0 : i32
    %c0_i32_2 = arith.constant 0 : i32
    return %c0_i32, %c0_i32_0, %c0_i32_1 : i32, i32, i32
  }
  func.func @transform_2(%arg0: i32) -> (i32, i32) {
    %c0_i32 = arith.constant 0 : i32
    %c0_i32_0 = arith.constant 0 : i32
    %c0_i32_1 = arith.constant 0 : i32
    return %c0_i32, %c0_i32_0 : i32, i32
  }
  func.func @transform_3(%arg0: i32) -> (i32, i32) {
    %c0_i32 = arith.constant 0 : i32
    %c0_i32_0 = arith.constant 0 : i32
    %c0_i32_1 = arith.constant 0 : i32
    return %c0_i32, %c0_i32_0 : i32, i32
  }
  func.func @transform_4(%arg0: i32) -> (i32, i32) {
    %c0_i32 = arith.constant 0 : i32
    %c0_i32_0 = arith.constant 0 : i32
    %c0_i32_1 = arith.constant 0 : i32
    return %c0_i32, %c0_i32_0 : i32, i32
  }
  func.func @transform_5(%arg0: i32) -> (i32, i32, i32, i32) {
    %c0_i32 = arith.constant 0 : i32
    %c0_i32_0 = arith.constant 0 : i32
    %c0_i32_1 = arith.constant 0 : i32
    %c0_i32_2 = arith.constant 0 : i32
    return %arg0, %c0_i32, %c0_i32_0, %c0_i32_1 : i32, i32, i32, i32
  }
  func.func @transform_6(%arg0: i32) -> (i32, i32, i32) {
    %c0_i32 = arith.constant 0 : i32
    %c0_i32_0 = arith.constant 0 : i32
    %c0_i32_1 = arith.constant 0 : i32
    return %arg0, %c0_i32, %c0_i32_0 : i32, i32, i32
  }
  func.func @transform_7(%arg0: i32) -> (i32, i32, i32) {
    %c0_i32 = arith.constant 0 : i32
    %c0_i32_0 = arith.constant 0 : i32
    %c0_i32_1 = arith.constant 0 : i32
    return %arg0, %c0_i32, %c0_i32_0 : i32, i32, i32
  }
}

module attributes {stable_mosaic.version = 11 : i64} {
  func.func @_bn_silu_kernel(%arg0: i32, %arg1: memref<1x8x8x384xf32, #tpu.memory_space<vmem>>, %arg2: memref<8x1xf32, #tpu.memory_space<vmem>>, %arg3: memref<8x1xf32, #tpu.memory_space<vmem>>, %arg4: memref<1x8x8x384xf32, #tpu.memory_space<vmem>>) attributes {dimension_semantics = [#tpu.dimension_semantics<parallel>], iteration_bounds = array<i64: 2>, scalar_prefetch = 0 : i64, scratch_operands = 0 : i64, tpu.core_type = #tpu.core_type<tc>, window_params = [{transform_indices = @transform_0, window_bounds = array<i64: 1, 8, 8, 384>}, {pipeline_mode = #tpu.pipeline_mode<synchronous>, transform_indices = @transform_1, window_bounds = array<i64: 8, 1>}, {pipeline_mode = #tpu.pipeline_mode<synchronous>, transform_indices = @transform_2, window_bounds = array<i64: 8, 1>}, {transform_indices = @transform_3, window_bounds = array<i64: 1, 8, 8, 384>}]} {
    %c0 = arith.constant 0 : index
    %c0_0 = arith.constant 0 : index
    %c0_1 = arith.constant 0 : index
    %c0_2 = arith.constant 0 : index
    %0 = vector.load %arg1[%c0, %c0_0, %c0_1, %c0_2] : memref<1x8x8x384xf32, #tpu.memory_space<vmem>>, vector<1x8x8x384xf32>
    %1 = vector.shape_cast %0 : vector<1x8x8x384xf32> to vector<8x8x384xf32>
    %c0_3 = arith.constant 0 : index
    %c0_4 = arith.constant 0 : index
    %2 = vector.load %arg2[%c0_3, %c0_4] : memref<8x1xf32, #tpu.memory_space<vmem>>, vector<8x1xf32>
    %3 = vector.shape_cast %2 : vector<8x1xf32> to vector<1x8x1xf32>
    %4 = vector.broadcast %3 : vector<1x8x1xf32> to vector<8x8x384xf32>
    %5 = arith.mulf %1, %4 : vector<8x8x384xf32>
    %c0_5 = arith.constant 0 : index
    %c0_6 = arith.constant 0 : index
    %6 = vector.load %arg3[%c0_5, %c0_6] : memref<8x1xf32, #tpu.memory_space<vmem>>, vector<8x1xf32>
    %7 = vector.shape_cast %6 : vector<8x1xf32> to vector<1x8x1xf32>
    %8 = vector.broadcast %7 : vector<1x8x1xf32> to vector<8x8x384xf32>
    %9 = arith.addf %5, %8 : vector<8x8x384xf32>
    %10 = arith.negf %9 : vector<8x8x384xf32>
    %11 = math.exp %10 : vector<8x8x384xf32>
    %cst = arith.constant 1.000000e+00 : f32
    %12 = vector.broadcast %cst : f32 to vector<8x8x384xf32>
    %13 = arith.addf %12, %11 : vector<8x8x384xf32>
    %14 = arith.divf %12, %13 : vector<8x8x384xf32>
    %15 = arith.mulf %9, %14 : vector<8x8x384xf32>
    %c0_7 = arith.constant 0 : index
    %c0_8 = arith.constant 0 : index
    %c0_9 = arith.constant 0 : index
    %c0_10 = arith.constant 0 : index
    %16 = vector.load %arg4[%c0_7, %c0_8, %c0_9, %c0_10] : memref<1x8x8x384xf32, #tpu.memory_space<vmem>>, vector<1x8x8x384xf32>
    %17 = vector.shape_cast %16 : vector<1x8x8x384xf32> to vector<8x8x384xf32>
    %18 = vector.shape_cast %15 : vector<8x8x384xf32> to vector<1x8x8x384xf32>
    tpu.vector_store %arg4[%c0_7, %c0_8, %c0_9, %c0_10], %18 {strides = array<i32>} : memref<1x8x8x384xf32, #tpu.memory_space<vmem>>, vector<1x8x8x384xf32>,
    return
  }
  func.func @transform_0(%arg0: i32) -> (i32, i32, i32, i32) {
    %c0_i32 = arith.constant 0 : i32
    %c0_i32_0 = arith.constant 0 : i32
    %c0_i32_1 = arith.constant 0 : i32
    %c0_i32_2 = arith.constant 0 : i32
    return %arg0, %c0_i32, %c0_i32_0, %c0_i32_1 : i32, i32, i32, i32
  }
  func.func @transform_1(%arg0: i32) -> (i32, i32) {
    %c0_i32 = arith.constant 0 : i32
    %c0_i32_0 = arith.constant 0 : i32
    %c0_i32_1 = arith.constant 0 : i32
    return %c0_i32, %c0_i32_0 : i32, i32
  }
  func.func @transform_2(%arg0: i32) -> (i32, i32) {
    %c0_i32 = arith.constant 0 : i32
    %c0_i32_0 = arith.constant 0 : i32
    %c0_i32_1 = arith.constant 0 : i32
    return %c0_i32, %c0_i32_0 : i32, i32
  }
  func.func @transform_3(%arg0: i32) -> (i32, i32, i32, i32) {
    %c0_i32 = arith.constant 0 : i32
    %c0_i32_0 = arith.constant 0 : i32
    %c0_i32_1 = arith.constant 0 : i32
    %c0_i32_2 = arith.constant 0 : i32
    return %arg0, %c0_i32, %c0_i32_0, %c0_i32_1 : i32, i32, i32, i32
  }
}

module attributes {stable_mosaic.version = 11 : i64} {
  func.func @_fused_conv_kernel(%arg0: i32, %arg1: memref<1x4x4x384xf32, #tpu.memory_space<vmem>>, %arg2: memref<9x8x4xf32, #tpu.memory_space<vmem>>, %arg3: memref<4x1xf32, #tpu.memory_space<vmem>>, %arg4: memref<4x1xf32, #tpu.memory_space<vmem>>, %arg5: memref<1x384xf32, #tpu.memory_space<vmem>>, %arg6: memref<1x6x8x384xf32, #tpu.memory_space<vmem>>, %arg7: memref<1x8x1xf32, #tpu.memory_space<vmem>>, %arg8: memref<1x8x1xf32, #tpu.memory_space<vmem>>) attributes {dimension_semantics = [#tpu.dimension_semantics<parallel>], iteration_bounds = array<i64: 2>, scalar_prefetch = 0 : i64, scratch_operands = 0 : i64, tpu.core_type = #tpu.core_type<tc>, window_params = [{transform_indices = @transform_0, window_bounds = array<i64: 1, 4, 4, 384>}, {pipeline_mode = #tpu.pipeline_mode<synchronous>, transform_indices = @transform_1, window_bounds = array<i64: 9, 8, 4>}, {pipeline_mode = #tpu.pipeline_mode<synchronous>, transform_indices = @transform_2, window_bounds = array<i64: 4, 1>}, {pipeline_mode = #tpu.pipeline_mode<synchronous>, transform_indices = @transform_3, window_bounds = array<i64: 4, 1>}, {pipeline_mode = #tpu.pipeline_mode<synchronous>, transform_indices = @transform_4, window_bounds = array<i64: 1, 384>}, {transform_indices = @transform_5, window_bounds = array<i64: 1, 6, 8, 384>}, {transform_indices = @transform_6, window_bounds = array<i64: 1, 8, 1>}, {transform_indices = @transform_7, window_bounds = array<i64: 1, 8, 1>}]} {
    %c0 = arith.constant 0 : index
    %c0_0 = arith.constant 0 : index
    %0 = vector.load %arg5[%c0, %c0_0] : memref<1x384xf32, #tpu.memory_space<vmem>>, vector<1x384xf32>
    %c0_1 = arith.constant 0 : index
    %c0_2 = arith.constant 0 : index
    %c0_3 = arith.constant 0 : index
    %1 = vector.load %arg2[%c0_1, %c0_2, %c0_3] : memref<9x8x4xf32, #tpu.memory_space<vmem>>, vector<1x8x4xf32>
    %2 = vector.shape_cast %1 : vector<1x8x4xf32> to vector<8x4xf32>
    %c1 = arith.constant 1 : index
    %c0_4 = arith.constant 0 : index
    %c0_5 = arith.constant 0 : index
    %3 = vector.load %arg2[%c1, %c0_4, %c0_5] : memref<9x8x4xf32, #tpu.memory_space<vmem>>, vector<1x8x4xf32>
    %4 = vector.shape_cast %3 : vector<1x8x4xf32> to vector<8x4xf32>
    %c2 = arith.constant 2 : index
    %c0_6 = arith.constant 0 : index
    %c0_7 = arith.constant 0 : index
    %5 = vector.load %arg2[%c2, %c0_6, %c0_7] : memref<9x8x4xf32, #tpu.memory_space<vmem>>, vector<1x8x4xf32>
    %6 = vector.shape_cast %5 : vector<1x8x4xf32> to vector<8x4xf32>
    %c3 = arith.constant 3 : index
    %c0_8 = arith.constant 0 : index
    %c0_9 = arith.constant 0 : index
    %7 = vector.load %arg2[%c3, %c0_8, %c0_9] : memref<9x8x4xf32, #tpu.memory_space<vmem>>, vector<1x8x4xf32>
    %8 = vector.shape_cast %7 : vector<1x8x4xf32> to vector<8x4xf32>
    %c4 = arith.constant 4 : index
    %c0_10 = arith.constant 0 : index
    %c0_11 = arith.constant 0 : index
    %9 = vector.load %arg2[%c4, %c0_10, %c0_11] : memref<9x8x4xf32, #tpu.memory_space<vmem>>, vector<1x8x4xf32>
    %10 = vector.shape_cast %9 : vector<1x8x4xf32> to vector<8x4xf32>
    %c5 = arith.constant 5 : index
    %c0_12 = arith.constant 0 : index
    %c0_13 = arith.constant 0 : index
    %11 = vector.load %arg2[%c5, %c0_12, %c0_13] : memref<9x8x4xf32, #tpu.memory_space<vmem>>, vector<1x8x4xf32>
    %12 = vector.shape_cast %11 : vector<1x8x4xf32> to vector<8x4xf32>
    %c6 = arith.constant 6 : index
    %c0_14 = arith.constant 0 : index
    %c0_15 = arith.constant 0 : index
    %13 = vector.load %arg2[%c6, %c0_14, %c0_15] : memref<9x8x4xf32, #tpu.memory_space<vmem>>, vector<1x8x4xf32>
    %14 = vector.shape_cast %13 : vector<1x8x4xf32> to vector<8x4xf32>
    %c7 = arith.constant 7 : index
    %c0_16 = arith.constant 0 : index
    %c0_17 = arith.constant 0 : index
    %15 = vector.load %arg2[%c7, %c0_16, %c0_17] : memref<9x8x4xf32, #tpu.memory_space<vmem>>, vector<1x8x4xf32>
    %16 = vector.shape_cast %15 : vector<1x8x4xf32> to vector<8x4xf32>
    %c8 = arith.constant 8 : index
    %c0_18 = arith.constant 0 : index
    %c0_19 = arith.constant 0 : index
    %17 = vector.load %arg2[%c8, %c0_18, %c0_19] : memref<9x8x4xf32, #tpu.memory_space<vmem>>, vector<1x8x4xf32>
    %18 = vector.shape_cast %17 : vector<1x8x4xf32> to vector<8x4xf32>
    %cst = arith.constant 0.000000e+00 : f32
    %19 = vector.broadcast %cst : f32 to vector<8x1xf32>
    %cst_20 = arith.constant 0.000000e+00 : f32
    %20 = vector.broadcast %cst_20 : f32 to vector<8x1xf32>
    %cst_21 = arith.constant 0.000000e+00 : f32
    %21 = vector.broadcast %cst_21 : f32 to vector<8x384xf32>
    %c0_22 = arith.constant 0 : index
    %c0_23 = arith.constant 0 : index
    %c0_24 = arith.constant 0 : index
    %c0_25 = arith.constant 0 : index
    %22 = vector.load %arg6[%c0_22, %c0_23, %c0_24, %c0_25] : memref<1x6x8x384xf32, #tpu.memory_space<vmem>>, vector<1x1x8x384xf32>
    %23 = vector.shape_cast %22 : vector<1x1x8x384xf32> to vector<8x384xf32>
    %24 = vector.shape_cast %21 : vector<8x384xf32> to vector<1x1x8x384xf32>
    tpu.vector_store %arg6[%c0_22, %c0_23, %c0_24, %c0_25], %24 {strides = array<i32>} : memref<1x6x8x384xf32, #tpu.memory_space<vmem>>, vector<1x1x8x384xf32>,
    %c0_26 = arith.constant 0 : index
    %c0_27 = arith.constant 0 : index
    %c0_28 = arith.constant 0 : index
    %c0_29 = arith.constant 0 : index
    %25 = vector.load %arg1[%c0_26, %c0_27, %c0_28, %c0_29] : memref<1x4x4x384xf32, #tpu.memory_space<vmem>>, vector<1x1x4x384xf32>
    %26 = vector.shape_cast %25 : vector<1x1x4x384xf32> to vector<4x384xf32>
    %cst_30 = arith.constant 0.000000e+00 : f32
    %27 = vector.broadcast %cst_30 : f32 to vector<8x384xf32>
    %c19_i32 = arith.constant 19 : i32
    %28 = tpu.dynamic_rotate %26 by %c19_i32 dim 1 : vector<4x384xf32>, i32 -> vector<4x384xf32>
    %cst_31 = arith.constant dense<0.000000e+00> : vector<8x384xf32>
    %29 = tpu.matmul %2, %28, %cst_31 {dimension_numbers = #tpu.dot_dimension_numbers<[1], [0], [0], [1], [0, 0, 1, 1], [], []>} : vector<8x4xf32>, vector<4x384xf32>, vector<8x384xf32> -> vector<8x384xf32>
    %30 = arith.addf %27, %29 : vector<8x384xf32>
    %c18_i32 = arith.constant 18 : i32
    %31 = tpu.dynamic_rotate %26 by %c18_i32 dim 1 : vector<4x384xf32>, i32 -> vector<4x384xf32>
    %cst_32 = arith.constant dense<0.000000e+00> : vector<8x384xf32>
    %32 = tpu.matmul %4, %31, %cst_32 {dimension_numbers = #tpu.dot_dimension_numbers<[1], [0], [0], [1], [0, 0, 1, 1], [], []>} : vector<8x4xf32>, vector<4x384xf32>, vector<8x384xf32> -> vector<8x384xf32>
    %33 = arith.addf %30, %32 : vector<8x384xf32>
    %c17_i32 = arith.constant 17 : i32
    %34 = tpu.dynamic_rotate %26 by %c17_i32 dim 1 : vector<4x384xf32>, i32 -> vector<4x384xf32>
    %cst_33 = arith.constant dense<0.000000e+00> : vector<8x384xf32>
    %35 = tpu.matmul %6, %34, %cst_33 {dimension_numbers = #tpu.dot_dimension_numbers<[1], [0], [0], [1], [0, 0, 1, 1], [], []>} : vector<8x4xf32>, vector<4x384xf32>, vector<8x384xf32> -> vector<8x384xf32>
    %36 = arith.addf %33, %35 : vector<8x384xf32>
    %c1_i32 = arith.constant 1 : i32
    %37 = tpu.dynamic_rotate %26 by %c1_i32 dim 1 : vector<4x384xf32>, i32 -> vector<4x384xf32>
    %cst_34 = arith.constant dense<0.000000e+00> : vector<8x384xf32>
    %38 = tpu.matmul %8, %37, %cst_34 {dimension_numbers = #tpu.dot_dimension_numbers<[1], [0], [0], [1], [0, 0, 1, 1], [], []>} : vector<8x4xf32>, vector<4x384xf32>, vector<8x384xf32> -> vector<8x384xf32>
    %39 = arith.addf %36, %38 : vector<8x384xf32>
    %cst_35 = arith.constant dense<0.000000e+00> : vector<8x384xf32>
    %40 = tpu.matmul %10, %26, %cst_35 {dimension_numbers = #tpu.dot_dimension_numbers<[1], [0], [0], [1], [0, 0, 1, 1], [], []>} : vector<8x4xf32>, vector<4x384xf32>, vector<8x384xf32> -> vector<8x384xf32>
    %41 = arith.addf %39, %40 : vector<8x384xf32>
    %c383_i32 = arith.constant 383 : i32
    %42 = tpu.dynamic_rotate %26 by %c383_i32 dim 1 : vector<4x384xf32>, i32 -> vector<4x384xf32>
    %cst_36 = arith.constant dense<0.000000e+00> : vector<8x384xf32>
    %43 = tpu.matmul %12, %42, %cst_36 {dimension_numbers = #tpu.dot_dimension_numbers<[1], [0], [0], [1], [0, 0, 1, 1], [], []>} : vector<8x4xf32>, vector<4x384xf32>, vector<8x384xf32> -> vector<8x384xf32>
    %44 = arith.addf %41, %43 : vector<8x384xf32>
    %c367_i32 = arith.constant 367 : i32
    %45 = tpu.dynamic_rotate %26 by %c367_i32 dim 1 : vector<4x384xf32>, i32 -> vector<4x384xf32>
    %cst_37 = arith.constant dense<0.000000e+00> : vector<8x384xf32>
    %46 = tpu.matmul %14, %45, %cst_37 {dimension_numbers = #tpu.dot_dimension_numbers<[1], [0], [0], [1], [0, 0, 1, 1], [], []>} : vector<8x4xf32>, vector<4x384xf32>, vector<8x384xf32> -> vector<8x384xf32>
    %47 = arith.addf %44, %46 : vector<8x384xf32>
    %c366_i32 = arith.constant 366 : i32
    %48 = tpu.dynamic_rotate %26 by %c366_i32 dim 1 : vector<4x384xf32>, i32 -> vector<4x384xf32>
    %cst_38 = arith.constant dense<0.000000e+00> : vector<8x384xf32>
    %49 = tpu.matmul %16, %48, %cst_38 {dimension_numbers = #tpu.dot_dimension_numbers<[1], [0], [0], [1], [0, 0, 1, 1], [], []>} : vector<8x4xf32>, vector<4x384xf32>, vector<8x384xf32> -> vector<8x384xf32>
    %50 = arith.addf %47, %49 : vector<8x384xf32>
    %c365_i32 = arith.constant 365 : i32
    %51 = tpu.dynamic_rotate %26 by %c365_i32 dim 1 : vector<4x384xf32>, i32 -> vector<4x384xf32>
    %cst_39 = arith.constant dense<0.000000e+00> : vector<8x384xf32>
    %52 = tpu.matmul %18, %51, %cst_39 {dimension_numbers = #tpu.dot_dimension_numbers<[1], [0], [0], [1], [0, 0, 1, 1], [], []>} : vector<8x4xf32>, vector<4x384xf32>, vector<8x384xf32> -> vector<8x384xf32>
    %53 = arith.addf %50, %52 : vector<8x384xf32>
    %54 = vector.broadcast %0 : vector<1x384xf32> to vector<8x384xf32>
    %55 = arith.mulf %53, %54 : vector<8x384xf32>
    %c0_40 = arith.constant 0 : index
    %c1_41 = arith.constant 1 : index
    %c0_42 = arith.constant 0 : index
    %c0_43 = arith.constant 0 : index
    %56 = vector.load %arg6[%c0_40, %c1_41, %c0_42, %c0_43] : memref<1x6x8x384xf32, #tpu.memory_space<vmem>>, vector<1x1x8x384xf32>
    %57 = vector.shape_cast %56 : vector<1x1x8x384xf32> to vector<8x384xf32>
    %58 = vector.shape_cast %55 : vector<8x384xf32> to vector<1x1x8x384xf32>
    tpu.vector_store %arg6[%c0_40, %c1_41, %c0_42, %c0_43], %58 {strides = array<i32>} : memref<1x6x8x384xf32, #tpu.memory_space<vmem>>, vector<1x1x8x384xf32>,
    %cst_44 = arith.constant dense<0.000000e+00> : vector<8xf32>
    %59 = vector.multi_reduction <add>, %55, %cst_44 [1] : vector<8x384xf32> to vector<8xf32>
    %60 = vector.shape_cast %59 : vector<8xf32> to vector<8x1xf32>
    %61 = arith.addf %19, %60 : vector<8x1xf32>
    %62 = arith.mulf %55, %55 : vector<8x384xf32>
    %cst_45 = arith.constant dense<0.000000e+00> : vector<8xf32>
    %63 = vector.multi_reduction <add>, %62, %cst_45 [1] : vector<8x384xf32> to vector<8xf32>
    %64 = vector.shape_cast %63 : vector<8xf32> to vector<8x1xf32>
    %65 = arith.addf %20, %64 : vector<8x1xf32>
    %c0_46 = arith.constant 0 : index
    %c1_47 = arith.constant 1 : index
    %c0_48 = arith.constant 0 : index
    %c0_49 = arith.constant 0 : index
    %66 = vector.load %arg1[%c0_46, %c1_47, %c0_48, %c0_49] : memref<1x4x4x384xf32, #tpu.memory_space<vmem>>, vector<1x1x4x384xf32>
    %67 = vector.shape_cast %66 : vector<1x1x4x384xf32> to vector<4x384xf32>
    %cst_50 = arith.constant 0.000000e+00 : f32
    %68 = vector.broadcast %cst_50 : f32 to vector<8x384xf32>
    %c19_i32_51 = arith.constant 19 : i32
    %69 = tpu.dynamic_rotate %67 by %c19_i32_51 dim 1 : vector<4x384xf32>, i32 -> vector<4x384xf32>
    %cst_52 = arith.constant dense<0.000000e+00> : vector<8x384xf32>
    %70 = tpu.matmul %2, %69, %cst_52 {dimension_numbers = #tpu.dot_dimension_numbers<[1], [0], [0], [1], [0, 0, 1, 1], [], []>} : vector<8x4xf32>, vector<4x384xf32>, vector<8x384xf32> -> vector<8x384xf32>
    %71 = arith.addf %68, %70 : vector<8x384xf32>
    %c18_i32_53 = arith.constant 18 : i32
    %72 = tpu.dynamic_rotate %67 by %c18_i32_53 dim 1 : vector<4x384xf32>, i32 -> vector<4x384xf32>
    %cst_54 = arith.constant dense<0.000000e+00> : vector<8x384xf32>
    %73 = tpu.matmul %4, %72, %cst_54 {dimension_numbers = #tpu.dot_dimension_numbers<[1], [0], [0], [1], [0, 0, 1, 1], [], []>} : vector<8x4xf32>, vector<4x384xf32>, vector<8x384xf32> -> vector<8x384xf32>
    %74 = arith.addf %71, %73 : vector<8x384xf32>
    %c17_i32_55 = arith.constant 17 : i32
    %75 = tpu.dynamic_rotate %67 by %c17_i32_55 dim 1 : vector<4x384xf32>, i32 -> vector<4x384xf32>
    %cst_56 = arith.constant dense<0.000000e+00> : vector<8x384xf32>
    %76 = tpu.matmul %6, %75, %cst_56 {dimension_numbers = #tpu.dot_dimension_numbers<[1], [0], [0], [1], [0, 0, 1, 1], [], []>} : vector<8x4xf32>, vector<4x384xf32>, vector<8x384xf32> -> vector<8x384xf32>
    %77 = arith.addf %74, %76 : vector<8x384xf32>
    %c1_i32_57 = arith.constant 1 : i32
    %78 = tpu.dynamic_rotate %67 by %c1_i32_57 dim 1 : vector<4x384xf32>, i32 -> vector<4x384xf32>
    %cst_58 = arith.constant dense<0.000000e+00> : vector<8x384xf32>
    %79 = tpu.matmul %8, %78, %cst_58 {dimension_numbers = #tpu.dot_dimension_numbers<[1], [0], [0], [1], [0, 0, 1, 1], [], []>} : vector<8x4xf32>, vector<4x384xf32>, vector<8x384xf32> -> vector<8x384xf32>
    %80 = arith.addf %77, %79 : vector<8x384xf32>
    %cst_59 = arith.constant dense<0.000000e+00> : vector<8x384xf32>
    %81 = tpu.matmul %10, %67, %cst_59 {dimension_numbers = #tpu.dot_dimension_numbers<[1], [0], [0], [1], [0, 0, 1, 1], [], []>} : vector<8x4xf32>, vector<4x384xf32>, vector<8x384xf32> -> vector<8x384xf32>
    %82 = arith.addf %80, %81 : vector<8x384xf32>
    %c383_i32_60 = arith.constant 383 : i32
    %83 = tpu.dynamic_rotate %67 by %c383_i32_60 dim 1 : vector<4x384xf32>, i32 -> vector<4x384xf32>
    %cst_61 = arith.constant dense<0.000000e+00> : vector<8x384xf32>
    %84 = tpu.matmul %12, %83, %cst_61 {dimension_numbers = #tpu.dot_dimension_numbers<[1], [0], [0], [1], [0, 0, 1, 1], [], []>} : vector<8x4xf32>, vector<4x384xf32>, vector<8x384xf32> -> vector<8x384xf32>
    %85 = arith.addf %82, %84 : vector<8x384xf32>
    %c367_i32_62 = arith.constant 367 : i32
    %86 = tpu.dynamic_rotate %67 by %c367_i32_62 dim 1 : vector<4x384xf32>, i32 -> vector<4x384xf32>
    %cst_63 = arith.constant dense<0.000000e+00> : vector<8x384xf32>
    %87 = tpu.matmul %14, %86, %cst_63 {dimension_numbers = #tpu.dot_dimension_numbers<[1], [0], [0], [1], [0, 0, 1, 1], [], []>} : vector<8x4xf32>, vector<4x384xf32>, vector<8x384xf32> -> vector<8x384xf32>
    %88 = arith.addf %85, %87 : vector<8x384xf32>
    %c366_i32_64 = arith.constant 366 : i32
    %89 = tpu.dynamic_rotate %67 by %c366_i32_64 dim 1 : vector<4x384xf32>, i32 -> vector<4x384xf32>
    %cst_65 = arith.constant dense<0.000000e+00> : vector<8x384xf32>
    %90 = tpu.matmul %16, %89, %cst_65 {dimension_numbers = #tpu.dot_dimension_numbers<[1], [0], [0], [1], [0, 0, 1, 1], [], []>} : vector<8x4xf32>, vector<4x384xf32>, vector<8x384xf32> -> vector<8x384xf32>
    %91 = arith.addf %88, %90 : vector<8x384xf32>
    %c365_i32_66 = arith.constant 365 : i32
    %92 = tpu.dynamic_rotate %67 by %c365_i32_66 dim 1 : vector<4x384xf32>, i32 -> vector<4x384xf32>
    %cst_67 = arith.constant dense<0.000000e+00> : vector<8x384xf32>
    %93 = tpu.matmul %18, %92, %cst_67 {dimension_numbers = #tpu.dot_dimension_numbers<[1], [0], [0], [1], [0, 0, 1, 1], [], []>} : vector<8x4xf32>, vector<4x384xf32>, vector<8x384xf32> -> vector<8x384xf32>
    %94 = arith.addf %91, %93 : vector<8x384xf32>
    %95 = vector.broadcast %0 : vector<1x384xf32> to vector<8x384xf32>
    %96 = arith.mulf %94, %95 : vector<8x384xf32>
    %c0_68 = arith.constant 0 : index
    %c2_69 = arith.constant 2 : index
    %c0_70 = arith.constant 0 : index
    %c0_71 = arith.constant 0 : index
    %97 = vector.load %arg6[%c0_68, %c2_69, %c0_70, %c0_71] : memref<1x6x8x384xf32, #tpu.memory_space<vmem>>, vector<1x1x8x384xf32>
    %98 = vector.shape_cast %97 : vector<1x1x8x384xf32> to vector<8x384xf32>
    %99 = vector.shape_cast %96 : vector<8x384xf32> to vector<1x1x8x384xf32>
    tpu.vector_store %arg6[%c0_68, %c2_69, %c0_70, %c0_71], %99 {strides = array<i32>} : memref<1x6x8x384xf32, #tpu.memory_space<vmem>>, vector<1x1x8x384xf32>,
    %cst_72 = arith.constant dense<0.000000e+00> : vector<8xf32>
    %100 = vector.multi_reduction <add>, %96, %cst_72 [1] : vector<8x384xf32> to vector<8xf32>
    %101 = vector.shape_cast %100 : vector<8xf32> to vector<8x1xf32>
    %102 = arith.addf %61, %101 : vector<8x1xf32>
    %103 = arith.mulf %96, %96 : vector<8x384xf32>
    %cst_73 = arith.constant dense<0.000000e+00> : vector<8xf32>
    %104 = vector.multi_reduction <add>, %103, %cst_73 [1] : vector<8x384xf32> to vector<8xf32>
    %105 = vector.shape_cast %104 : vector<8xf32> to vector<8x1xf32>
    %106 = arith.addf %65, %105 : vector<8x1xf32>
    %c0_74 = arith.constant 0 : index
    %c2_75 = arith.constant 2 : index
    %c0_76 = arith.constant 0 : index
    %c0_77 = arith.constant 0 : index
    %107 = vector.load %arg1[%c0_74, %c2_75, %c0_76, %c0_77] : memref<1x4x4x384xf32, #tpu.memory_space<vmem>>, vector<1x1x4x384xf32>
    %108 = vector.shape_cast %107 : vector<1x1x4x384xf32> to vector<4x384xf32>
    %cst_78 = arith.constant 0.000000e+00 : f32
    %109 = vector.broadcast %cst_78 : f32 to vector<8x384xf32>
    %c19_i32_79 = arith.constant 19 : i32
    %110 = tpu.dynamic_rotate %108 by %c19_i32_79 dim 1 : vector<4x384xf32>, i32 -> vector<4x384xf32>
    %cst_80 = arith.constant dense<0.000000e+00> : vector<8x384xf32>
    %111 = tpu.matmul %2, %110, %cst_80 {dimension_numbers = #tpu.dot_dimension_numbers<[1], [0], [0], [1], [0, 0, 1, 1], [], []>} : vector<8x4xf32>, vector<4x384xf32>, vector<8x384xf32> -> vector<8x384xf32>
    %112 = arith.addf %109, %111 : vector<8x384xf32>
    %c18_i32_81 = arith.constant 18 : i32
    %113 = tpu.dynamic_rotate %108 by %c18_i32_81 dim 1 : vector<4x384xf32>, i32 -> vector<4x384xf32>
    %cst_82 = arith.constant dense<0.000000e+00> : vector<8x384xf32>
    %114 = tpu.matmul %4, %113, %cst_82 {dimension_numbers = #tpu.dot_dimension_numbers<[1], [0], [0], [1], [0, 0, 1, 1], [], []>} : vector<8x4xf32>, vector<4x384xf32>, vector<8x384xf32> -> vector<8x384xf32>
    %115 = arith.addf %112, %114 : vector<8x384xf32>
    %c17_i32_83 = arith.constant 17 : i32
    %116 = tpu.dynamic_rotate %108 by %c17_i32_83 dim 1 : vector<4x384xf32>, i32 -> vector<4x384xf32>
    %cst_84 = arith.constant dense<0.000000e+00> : vector<8x384xf32>
    %117 = tpu.matmul %6, %116, %cst_84 {dimension_numbers = #tpu.dot_dimension_numbers<[1], [0], [0], [1], [0, 0, 1, 1], [], []>} : vector<8x4xf32>, vector<4x384xf32>, vector<8x384xf32> -> vector<8x384xf32>
    %118 = arith.addf %115, %117 : vector<8x384xf32>
    %c1_i32_85 = arith.constant 1 : i32
    %119 = tpu.dynamic_rotate %108 by %c1_i32_85 dim 1 : vector<4x384xf32>, i32 -> vector<4x384xf32>
    %cst_86 = arith.constant dense<0.000000e+00> : vector<8x384xf32>
    %120 = tpu.matmul %8, %119, %cst_86 {dimension_numbers = #tpu.dot_dimension_numbers<[1], [0], [0], [1], [0, 0, 1, 1], [], []>} : vector<8x4xf32>, vector<4x384xf32>, vector<8x384xf32> -> vector<8x384xf32>
    %121 = arith.addf %118, %120 : vector<8x384xf32>
    %cst_87 = arith.constant dense<0.000000e+00> : vector<8x384xf32>
    %122 = tpu.matmul %10, %108, %cst_87 {dimension_numbers = #tpu.dot_dimension_numbers<[1], [0], [0], [1], [0, 0, 1, 1], [], []>} : vector<8x4xf32>, vector<4x384xf32>, vector<8x384xf32> -> vector<8x384xf32>
    %123 = arith.addf %121, %122 : vector<8x384xf32>
    %c383_i32_88 = arith.constant 383 : i32
    %124 = tpu.dynamic_rotate %108 by %c383_i32_88 dim 1 : vector<4x384xf32>, i32 -> vector<4x384xf32>
    %cst_89 = arith.constant dense<0.000000e+00> : vector<8x384xf32>
    %125 = tpu.matmul %12, %124, %cst_89 {dimension_numbers = #tpu.dot_dimension_numbers<[1], [0], [0], [1], [0, 0, 1, 1], [], []>} : vector<8x4xf32>, vector<4x384xf32>, vector<8x384xf32> -> vector<8x384xf32>
    %126 = arith.addf %123, %125 : vector<8x384xf32>
    %c367_i32_90 = arith.constant 367 : i32
    %127 = tpu.dynamic_rotate %108 by %c367_i32_90 dim 1 : vector<4x384xf32>, i32 -> vector<4x384xf32>
    %cst_91 = arith.constant dense<0.000000e+00> : vector<8x384xf32>
    %128 = tpu.matmul %14, %127, %cst_91 {dimension_numbers = #tpu.dot_dimension_numbers<[1], [0], [0], [1], [0, 0, 1, 1], [], []>} : vector<8x4xf32>, vector<4x384xf32>, vector<8x384xf32> -> vector<8x384xf32>
    %129 = arith.addf %126, %128 : vector<8x384xf32>
    %c366_i32_92 = arith.constant 366 : i32
    %130 = tpu.dynamic_rotate %108 by %c366_i32_92 dim 1 : vector<4x384xf32>, i32 -> vector<4x384xf32>
    %cst_93 = arith.constant dense<0.000000e+00> : vector<8x384xf32>
    %131 = tpu.matmul %16, %130, %cst_93 {dimension_numbers = #tpu.dot_dimension_numbers<[1], [0], [0], [1], [0, 0, 1, 1], [], []>} : vector<8x4xf32>, vector<4x384xf32>, vector<8x384xf32> -> vector<8x384xf32>
    %132 = arith.addf %129, %131 : vector<8x384xf32>
    %c365_i32_94 = arith.constant 365 : i32
    %133 = tpu.dynamic_rotate %108 by %c365_i32_94 dim 1 : vector<4x384xf32>, i32 -> vector<4x384xf32>
    %cst_95 = arith.constant dense<0.000000e+00> : vector<8x384xf32>
    %134 = tpu.matmul %18, %133, %cst_95 {dimension_numbers = #tpu.dot_dimension_numbers<[1], [0], [0], [1], [0, 0, 1, 1], [], []>} : vector<8x4xf32>, vector<4x384xf32>, vector<8x384xf32> -> vector<8x384xf32>
    %135 = arith.addf %132, %134 : vector<8x384xf32>
    %136 = vector.broadcast %0 : vector<1x384xf32> to vector<8x384xf32>
    %137 = arith.mulf %135, %136 : vector<8x384xf32>
    %c0_96 = arith.constant 0 : index
    %c3_97 = arith.constant 3 : index
    %c0_98 = arith.constant 0 : index
    %c0_99 = arith.constant 0 : index
    %138 = vector.load %arg6[%c0_96, %c3_97, %c0_98, %c0_99] : memref<1x6x8x384xf32, #tpu.memory_space<vmem>>, vector<1x1x8x384xf32>
    %139 = vector.shape_cast %138 : vector<1x1x8x384xf32> to vector<8x384xf32>
    %140 = vector.shape_cast %137 : vector<8x384xf32> to vector<1x1x8x384xf32>
    tpu.vector_store %arg6[%c0_96, %c3_97, %c0_98, %c0_99], %140 {strides = array<i32>} : memref<1x6x8x384xf32, #tpu.memory_space<vmem>>, vector<1x1x8x384xf32>,
    %cst_100 = arith.constant dense<0.000000e+00> : vector<8xf32>
    %141 = vector.multi_reduction <add>, %137, %cst_100 [1] : vector<8x384xf32> to vector<8xf32>
    %142 = vector.shape_cast %141 : vector<8xf32> to vector<8x1xf32>
    %143 = arith.addf %102, %142 : vector<8x1xf32>
    %144 = arith.mulf %137, %137 : vector<8x384xf32>
    %cst_101 = arith.constant dense<0.000000e+00> : vector<8xf32>
    %145 = vector.multi_reduction <add>, %144, %cst_101 [1] : vector<8x384xf32> to vector<8xf32>
    %146 = vector.shape_cast %145 : vector<8xf32> to vector<8x1xf32>
    %147 = arith.addf %106, %146 : vector<8x1xf32>
    %c0_102 = arith.constant 0 : index
    %c3_103 = arith.constant 3 : index
    %c0_104 = arith.constant 0 : index
    %c0_105 = arith.constant 0 : index
    %148 = vector.load %arg1[%c0_102, %c3_103, %c0_104, %c0_105] : memref<1x4x4x384xf32, #tpu.memory_space<vmem>>, vector<1x1x4x384xf32>
    %149 = vector.shape_cast %148 : vector<1x1x4x384xf32> to vector<4x384xf32>
    %cst_106 = arith.constant 0.000000e+00 : f32
    %150 = vector.broadcast %cst_106 : f32 to vector<8x384xf32>
    %c19_i32_107 = arith.constant 19 : i32
    %151 = tpu.dynamic_rotate %149 by %c19_i32_107 dim 1 : vector<4x384xf32>, i32 -> vector<4x384xf32>
    %cst_108 = arith.constant dense<0.000000e+00> : vector<8x384xf32>
    %152 = tpu.matmul %2, %151, %cst_108 {dimension_numbers = #tpu.dot_dimension_numbers<[1], [0], [0], [1], [0, 0, 1, 1], [], []>} : vector<8x4xf32>, vector<4x384xf32>, vector<8x384xf32> -> vector<8x384xf32>
    %153 = arith.addf %150, %152 : vector<8x384xf32>
    %c18_i32_109 = arith.constant 18 : i32
    %154 = tpu.dynamic_rotate %149 by %c18_i32_109 dim 1 : vector<4x384xf32>, i32 -> vector<4x384xf32>
    %cst_110 = arith.constant dense<0.000000e+00> : vector<8x384xf32>
    %155 = tpu.matmul %4, %154, %cst_110 {dimension_numbers = #tpu.dot_dimension_numbers<[1], [0], [0], [1], [0, 0, 1, 1], [], []>} : vector<8x4xf32>, vector<4x384xf32>, vector<8x384xf32> -> vector<8x384xf32>
    %156 = arith.addf %153, %155 : vector<8x384xf32>
    %c17_i32_111 = arith.constant 17 : i32
    %157 = tpu.dynamic_rotate %149 by %c17_i32_111 dim 1 : vector<4x384xf32>, i32 -> vector<4x384xf32>
    %cst_112 = arith.constant dense<0.000000e+00> : vector<8x384xf32>
    %158 = tpu.matmul %6, %157, %cst_112 {dimension_numbers = #tpu.dot_dimension_numbers<[1], [0], [0], [1], [0, 0, 1, 1], [], []>} : vector<8x4xf32>, vector<4x384xf32>, vector<8x384xf32> -> vector<8x384xf32>
    %159 = arith.addf %156, %158 : vector<8x384xf32>
    %c1_i32_113 = arith.constant 1 : i32
    %160 = tpu.dynamic_rotate %149 by %c1_i32_113 dim 1 : vector<4x384xf32>, i32 -> vector<4x384xf32>
    %cst_114 = arith.constant dense<0.000000e+00> : vector<8x384xf32>
    %161 = tpu.matmul %8, %160, %cst_114 {dimension_numbers = #tpu.dot_dimension_numbers<[1], [0], [0], [1], [0, 0, 1, 1], [], []>} : vector<8x4xf32>, vector<4x384xf32>, vector<8x384xf32> -> vector<8x384xf32>
    %162 = arith.addf %159, %161 : vector<8x384xf32>
    %cst_115 = arith.constant dense<0.000000e+00> : vector<8x384xf32>
    %163 = tpu.matmul %10, %149, %cst_115 {dimension_numbers = #tpu.dot_dimension_numbers<[1], [0], [0], [1], [0, 0, 1, 1], [], []>} : vector<8x4xf32>, vector<4x384xf32>, vector<8x384xf32> -> vector<8x384xf32>
    %164 = arith.addf %162, %163 : vector<8x384xf32>
    %c383_i32_116 = arith.constant 383 : i32
    %165 = tpu.dynamic_rotate %149 by %c383_i32_116 dim 1 : vector<4x384xf32>, i32 -> vector<4x384xf32>
    %cst_117 = arith.constant dense<0.000000e+00> : vector<8x384xf32>
    %166 = tpu.matmul %12, %165, %cst_117 {dimension_numbers = #tpu.dot_dimension_numbers<[1], [0], [0], [1], [0, 0, 1, 1], [], []>} : vector<8x4xf32>, vector<4x384xf32>, vector<8x384xf32> -> vector<8x384xf32>
    %167 = arith.addf %164, %166 : vector<8x384xf32>
    %c367_i32_118 = arith.constant 367 : i32
    %168 = tpu.dynamic_rotate %149 by %c367_i32_118 dim 1 : vector<4x384xf32>, i32 -> vector<4x384xf32>
    %cst_119 = arith.constant dense<0.000000e+00> : vector<8x384xf32>
    %169 = tpu.matmul %14, %168, %cst_119 {dimension_numbers = #tpu.dot_dimension_numbers<[1], [0], [0], [1], [0, 0, 1, 1], [], []>} : vector<8x4xf32>, vector<4x384xf32>, vector<8x384xf32> -> vector<8x384xf32>
    %170 = arith.addf %167, %169 : vector<8x384xf32>
    %c366_i32_120 = arith.constant 366 : i32
    %171 = tpu.dynamic_rotate %149 by %c366_i32_120 dim 1 : vector<4x384xf32>, i32 -> vector<4x384xf32>
    %cst_121 = arith.constant dense<0.000000e+00> : vector<8x384xf32>
    %172 = tpu.matmul %16, %171, %cst_121 {dimension_numbers = #tpu.dot_dimension_numbers<[1], [0], [0], [1], [0, 0, 1, 1], [], []>} : vector<8x4xf32>, vector<4x384xf32>, vector<8x384xf32> -> vector<8x384xf32>
    %173 = arith.addf %170, %172 : vector<8x384xf32>
    %c365_i32_122 = arith.constant 365 : i32
    %174 = tpu.dynamic_rotate %149 by %c365_i32_122 dim 1 : vector<4x384xf32>, i32 -> vector<4x384xf32>
    %cst_123 = arith.constant dense<0.000000e+00> : vector<8x384xf32>
    %175 = tpu.matmul %18, %174, %cst_123 {dimension_numbers = #tpu.dot_dimension_numbers<[1], [0], [0], [1], [0, 0, 1, 1], [], []>} : vector<8x4xf32>, vector<4x384xf32>, vector<8x384xf32> -> vector<8x384xf32>
    %176 = arith.addf %173, %175 : vector<8x384xf32>
    %177 = vector.broadcast %0 : vector<1x384xf32> to vector<8x384xf32>
    %178 = arith.mulf %176, %177 : vector<8x384xf32>
    %c0_124 = arith.constant 0 : index
    %c4_125 = arith.constant 4 : index
    %c0_126 = arith.constant 0 : index
    %c0_127 = arith.constant 0 : index
    %179 = vector.load %arg6[%c0_124, %c4_125, %c0_126, %c0_127] : memref<1x6x8x384xf32, #tpu.memory_space<vmem>>, vector<1x1x8x384xf32>
    %180 = vector.shape_cast %179 : vector<1x1x8x384xf32> to vector<8x384xf32>
    %181 = vector.shape_cast %178 : vector<8x384xf32> to vector<1x1x8x384xf32>
    tpu.vector_store %arg6[%c0_124, %c4_125, %c0_126, %c0_127], %181 {strides = array<i32>} : memref<1x6x8x384xf32, #tpu.memory_space<vmem>>, vector<1x1x8x384xf32>,
    %cst_128 = arith.constant dense<0.000000e+00> : vector<8xf32>
    %182 = vector.multi_reduction <add>, %178, %cst_128 [1] : vector<8x384xf32> to vector<8xf32>
    %183 = vector.shape_cast %182 : vector<8xf32> to vector<8x1xf32>
    %184 = arith.addf %143, %183 : vector<8x1xf32>
    %185 = arith.mulf %178, %178 : vector<8x384xf32>
    %cst_129 = arith.constant dense<0.000000e+00> : vector<8xf32>
    %186 = vector.multi_reduction <add>, %185, %cst_129 [1] : vector<8x384xf32> to vector<8xf32>
    %187 = vector.shape_cast %186 : vector<8xf32> to vector<8x1xf32>
    %188 = arith.addf %147, %187 : vector<8x1xf32>
    %cst_130 = arith.constant 0.000000e+00 : f32
    %189 = vector.broadcast %cst_130 : f32 to vector<8x384xf32>
    %c0_131 = arith.constant 0 : index
    %c5_132 = arith.constant 5 : index
    %c0_133 = arith.constant 0 : index
    %c0_134 = arith.constant 0 : index
    %190 = vector.load %arg6[%c0_131, %c5_132, %c0_133, %c0_134] : memref<1x6x8x384xf32, #tpu.memory_space<vmem>>, vector<1x1x8x384xf32>
    %191 = vector.shape_cast %190 : vector<1x1x8x384xf32> to vector<8x384xf32>
    %192 = vector.shape_cast %189 : vector<8x384xf32> to vector<1x1x8x384xf32>
    tpu.vector_store %arg6[%c0_131, %c5_132, %c0_133, %c0_134], %192 {strides = array<i32>} : memref<1x6x8x384xf32, #tpu.memory_space<vmem>>, vector<1x1x8x384xf32>,
    %c0_135 = arith.constant 0 : index
    %c0_136 = arith.constant 0 : index
    %c0_137 = arith.constant 0 : index
    %193 = vector.load %arg7[%c0_135, %c0_136, %c0_137] : memref<1x8x1xf32, #tpu.memory_space<vmem>>, vector<1x8x1xf32>
    %194 = vector.shape_cast %193 : vector<1x8x1xf32> to vector<8x1xf32>
    %195 = vector.shape_cast %184 : vector<8x1xf32> to vector<1x8x1xf32>
    tpu.vector_store %arg7[%c0_135, %c0_136, %c0_137], %195 {strides = array<i32>} : memref<1x8x1xf32, #tpu.memory_space<vmem>>, vector<1x8x1xf32>,
    %c0_138 = arith.constant 0 : index
    %c0_139 = arith.constant 0 : index
    %c0_140 = arith.constant 0 : index
    %196 = vector.load %arg8[%c0_138, %c0_139, %c0_140] : memref<1x8x1xf32, #tpu.memory_space<vmem>>, vector<1x8x1xf32>
    %197 = vector.shape_cast %196 : vector<1x8x1xf32> to vector<8x1xf32>
    %198 = vector.shape_cast %188 : vector<8x1xf32> to vector<1x8x1xf32>
    tpu.vector_store %arg8[%c0_138, %c0_139, %c0_140], %198 {strides = array<i32>} : memref<1x8x1xf32, #tpu.memory_space<vmem>>, vector<1x8x1xf32>,
    return
  }
  func.func @transform_0(%arg0: i32) -> (i32, i32, i32, i32) {
    %c0_i32 = arith.constant 0 : i32
    %c0_i32_0 = arith.constant 0 : i32
    %c0_i32_1 = arith.constant 0 : i32
    %c0_i32_2 = arith.constant 0 : i32
    return %arg0, %c0_i32, %c0_i32_0, %c0_i32_1 : i32, i32, i32, i32
  }
  func.func @transform_1(%arg0: i32) -> (i32, i32, i32) {
    %c0_i32 = arith.constant 0 : i32
    %c0_i32_0 = arith.constant 0 : i32
    %c0_i32_1 = arith.constant 0 : i32
    %c0_i32_2 = arith.constant 0 : i32
    return %c0_i32, %c0_i32_0, %c0_i32_1 : i32, i32, i32
  }
  func.func @transform_2(%arg0: i32) -> (i32, i32) {
    %c0_i32 = arith.constant 0 : i32
    %c0_i32_0 = arith.constant 0 : i32
    %c0_i32_1 = arith.constant 0 : i32
    return %c0_i32, %c0_i32_0 : i32, i32
  }
  func.func @transform_3(%arg0: i32) -> (i32, i32) {
    %c0_i32 = arith.constant 0 : i32
    %c0_i32_0 = arith.constant 0 : i32
    %c0_i32_1 = arith.constant 0 : i32
    return %c0_i32, %c0_i32_0 : i32, i32
  }
  func.func @transform_4(%arg0: i32) -> (i32, i32) {
    %c0_i32 = arith.constant 0 : i32
    %c0_i32_0 = arith.constant 0 : i32
    %c0_i32_1 = arith.constant 0 : i32
    return %c0_i32, %c0_i32_0 : i32, i32
  }
  func.func @transform_5(%arg0: i32) -> (i32, i32, i32, i32) {
    %c0_i32 = arith.constant 0 : i32
    %c0_i32_0 = arith.constant 0 : i32
    %c0_i32_1 = arith.constant 0 : i32
    %c0_i32_2 = arith.constant 0 : i32
    return %arg0, %c0_i32, %c0_i32_0, %c0_i32_1 : i32, i32, i32, i32
  }
  func.func @transform_6(%arg0: i32) -> (i32, i32, i32) {
    %c0_i32 = arith.constant 0 : i32
    %c0_i32_0 = arith.constant 0 : i32
    %c0_i32_1 = arith.constant 0 : i32
    return %arg0, %c0_i32, %c0_i32_0 : i32, i32, i32
  }
  func.func @transform_7(%arg0: i32) -> (i32, i32, i32) {
    %c0_i32 = arith.constant 0 : i32
    %c0_i32_0 = arith.constant 0 : i32
    %c0_i32_1 = arith.constant 0 : i32
    return %arg0, %c0_i32, %c0_i32_0 : i32, i32, i32
  }
}

</mosaic_0001>

<bundles_post_ra>
// kernel: tpu_custom_call.1
= control target key start
LH: loop header
LB: loop body
LE: loop exit
PB: predicated region body
PF: predicated region fallthrough
CT: control target
= control target key end

     0   :  { %6 = vsyncpa [#allocation3], 0  ;;  %s128_s0 = inlined_call_operand.hbm [shape: f32[8,128], index: 0, kind: input, shape index: {}]   ;;  %s129_s1 = inlined_call_operand.hbm [shape: f32[8,128], index: 1, kind: output, shape index: {}]  }
   0x1   :  { %7 = vsyncpa [#allocation4], 0  ;;  %s91_s6 = smov [#allocation2]   ;;  %s43_s10 = scalar_lea.hbm %s128_s0, 128 }
   0x2   :  { %s14_s7 = sshll.u32 %s91_s6, 4  ;;  %p44_p0 = scmp.ne.s32.totalorder %s128_s0, %s43_s10  ;;  %s15_s7 = int_to_ptr.vmem [resolvable:$true] %s14_s7 }
   0x3   :  { %p47_p1 = scmp.lt.u32.totalorder %s43_s10, %s128_s0 }
   0x5   :  { %p49_p2 = pnand %p47_p1, %p44_p0 }
   0x7   :  { %52 = shalt.err (!%p49_p2)
}
   0x8   :  { %s53_s15 = scalar_lea.vmem %s15_s7, 128  ;;  %p58_p4 = scmp.lt.s32.totalorder %s15_s7, %s15_s7 }
   0x9   :  { %p54_p3 = scmp.ne.s32.totalorder %s15_s7, %s53_s15  ;;  %p59_p5 = scmp.lt.s32.totalorder %s53_s15, %s53_s15 }
   0xb   :  { %p60_p6 = por %p59_p5, %p58_p4 }
   0xd   :  { %p61_p7 = pnand %p60_p6, %p54_p3 }
   0xf   :  { %64 = shalt.err (!%p61_p7)
}
  0x10   :  { %17 = dma.hbm_to_vmem [thread:$0]  %s128_s0, 128, %s15_s7, [#allocation3]  }
  0x11   :  { %87 = dma.done.wait [#allocation3], 128  }
  0x12   :  { %88 = vsyncadd [#allocation3], 4294967168  ;;  %v21_v0 = vld [vmem:[#allocation2] sm:$0xff]  ;;  %s92_s18 = smov 1   ;;  %s93_s19 = smov [#allocation5]  }
  0x13   :  { %22 = vrot.lane.b32.xlu0 %v21_v0, %s92_s18  ;;  %s31_s20 = sshll.u32 %s93_s19, 4  ;;  %s32_s20 = int_to_ptr.vmem [resolvable:$true] %s31_s20 }
  0x14   :  { %s65_s21 = scalar_lea.vmem %s32_s20, 128  ;;  %p70_p9 = scmp.lt.s32.totalorder %s32_s20, %s32_s20 }
  0x15   :  { %p66_p8 = scmp.ne.s32.totalorder %s32_s20, %s65_s21  ;;  %p71_p10 = scmp.lt.s32.totalorder %s65_s21, %s65_s21 }
  0x17   :  { %p72_p11 = por %p71_p10, %p70_p9 }
  0x19   :  { %p73_p12 = pnand %p72_p11, %p66_p8 }
  0x85   :  { %v23_v1 = vpop.permute.xlu0 %22 }
  0x86   :  { %24 = vst [vmem:[#allocation5] sm:$0xff] %v23_v1 }
  0x87   :  { %76 = shalt.err (!%p73_p12)
}
  0x88   :  { %s77_s0 = scalar_lea.hbm %s129_s1, 128 }
  0x89   :  { %p78_p13 = scmp.ne.s32.totalorder %s129_s1, %s77_s0  ;;  %p81_p0 = scmp.lt.u32.totalorder %s77_s0, %s129_s1 }
  0x8b   :  { %p83_p1 = pnand %p81_p0, %p78_p13 }
  0x8d   :  { %86 = shalt.err (!%p83_p1)
}
  0x8e   :  { %34 = dma.vmem_to_hbm [thread:$0]  %s32_s20, 128, %s129_s1, [#allocation4]  }
  0x8f   :  { %89 = dma.done.wait [#allocation4], 128  }
  0x90   :  { %90 = vsyncadd [#allocation4], 4294967168 }
  0x91   :  { %38 = vsyncpa [#allocation3], 1 }
  0x92   :  { %39 = vsyncpa [#allocation4], 1 }

// kernel: conv_block_group_forward.5
= control target key start
LH: loop header
LB: loop body
LE: loop exit
PB: predicated region body
PF: predicated region fallthrough
CT: control target
= control target key end

     0   :  { %s671_s12 = smov 0   ;;  %s901_s0 = inlined_call_operand.vmem [shape: f32[2,8,8,384], index: 0, kind: input, shape index: {}]   ;;  %s902_s1 = inlined_call_operand.vmem [shape: f32[8,1], index: 1, kind: input, shape index: {}]   ;;  %s903_s2 = inlined_call_operand.vmem [shape: f32[8,1], index: 2, kind: input, shape index: {}]   ;;  %s904_s3 = inlined_call_operand.vmem [shape: f32[2,8,8,384], index: 3, kind: output, shape index: {}]  }
   0x1 LB: > { %s502_s13 = sadd.s32 4294967295, %s648_s12   ;;  %p506_p0 = scmp.ge.s32.totalorder %s648_s12, 1  ;;  %s648_s12 = sphi %s671_s12, %s13_s12  }
   0x2   : > { %p137_p1 = scmp.lt.s32.totalorder %s648_s12, 3 }
   0x4   : > { %p138_p2 = pnand %p506_p0, %p137_p1 }
   0x5   : > { %v195_v0 = vld [vmem:[%s902_s1] sm:$0xff] (!%p138_p2)  ;;  %v650_v1 = vmov (!%p138_p2), 0   ;;  %p161_p3 = scmp.lt.s32.totalorder (!%p138_p2), %s502_s13, 1 }
   0x6   : > { %141 = sbr.rel (%p138_p2) target bundleno = 204 (0xcc), region = 32  ;;  %545 = vset.pattern.permute.xlu0 (!%p138_p2), %v650_v1  ;;  %v225_v2 = vld [vmem:[%s903_s2] sm:$0xff] (!%p138_p2) }
   0x7   : > { %198 = vperm.xlu0 (!%p138_p2), %545, %v195_v0  }
   0xb   : > { %228 = vperm.xlu0 (!%p138_p2), %545, %v225_v2  }
   0xd   : > { %s906_s13 = smov (!%p161_p3, %s502_s13), 1 }
   0xe   : > { %s535_s18 = smul.u32 192, %s906_s13 }
  0x10   : > { %s695_s21 = scalar_lea.vmem %s901_s0, %s535_s18  ;;  %s848_s24 = scalar_lea.vmem %s904_s3, %s535_s18 }
  0x11   : > { %v171_v4 = vld [vmem:[%s695_s21] sm:$0xff]  ;;  %v172_v5 = vld [vmem:[%s695_s21 + $0x8] sm:$0xff]  ;;  %v173_v6 = vld [vmem:[%s695_s21 + $0x10] sm:$0xff] }
  0x12   : > { %v174_v7 = vld [vmem:[%s695_s21 + $0x18] sm:$0xff]  ;;  %v175_v9 = vld [vmem:[%s695_s21 + $0x20] sm:$0xff]  ;;  %v176_v10 = vld [vmem:[%s695_s21 + $0x28] sm:$0xff] }
  0x13   : > { %v177_v14 = vld [vmem:[%s695_s21 + $0x30] sm:$0xff]  ;;  %v178_v16 = vld [vmem:[%s695_s21 + $0x38] sm:$0xff]  ;;  %v179_v17 = vld [vmem:[%s695_s21 + $0x40] sm:$0xff] }
  0x14   : > { %v180_v24 = vld [vmem:[%s695_s21 + $0x48] sm:$0xff]  ;;  %v181_v27 = vld [vmem:[%s695_s21 + $0x50] sm:$0xff]  ;;  %v182_v28 = vld [vmem:[%s695_s21 + $0x58] sm:$0xff] }
  0x15   : > { %v183_v36 = vld [vmem:[%s695_s21 + $0x60] sm:$0xff]  ;;  %v184_v40 = vld [vmem:[%s695_s21 + $0x68] sm:$0xff]  ;;  %v185_v44 = vld [vmem:[%s695_s21 + $0x70] sm:$0xff] }
  0x16   : > { %v186_v48 = vld [vmem:[%s695_s21 + $0x78] sm:$0xff]  ;;  %v187_v52 = vld [vmem:[%s695_s21 + $0x80] sm:$0xff]  ;;  %v188_v56 = vld [vmem:[%s695_s21 + $0x88] sm:$0xff] }
  0x17   : > { %v189_v60 = vld [vmem:[%s695_s21 + $0x90] sm:$0xff]  ;;  %v190_v0 = vld [vmem:[%s695_s21 + $0x98] sm:$0xff] }
  0x86   : > { %v688_v3 = vpop.permute.xlu0 %198 }
  0x87   : > { %v201_v11 = vmul.f32 %v688_v3, %v171_v4  ;;  %v202_v12 = vmul.f32 %v688_v3, %v172_v5  ;;  %v203_v13 = vmul.f32 %v688_v3, %v173_v6  ;;  %v204_v15 = vmul.f32 %v688_v3, %v174_v7  ;;  %v191_v5 = vld [vmem:[%s695_s21 + $0xa0] sm:$0xff] }
  0x88   : > { %v205_v18 = vmul.f32 %v688_v3, %v175_v9  ;;  %v206_v22 = vmul.f32 %v688_v3, %v176_v10  ;;  %v207_v25 = vmul.f32 %v688_v3, %v177_v14  ;;  %v208_v29 = vmul.f32 %v688_v3, %v178_v16  ;;  %v192_v10 = vld [vmem:[%s695_s21 + $0xa8] sm:$0xff]  ;;  %v193_v14 = vld [vmem:[%s695_s21 + $0xb0] sm:$0xff] }
  0x89   : > { %v209_v30 = vmul.f32 %v688_v3, %v179_v17  ;;  %v210_v37 = vmul.f32 %v688_v3, %v180_v24  ;;  %v211_v41 = vmul.f32 %v688_v3, %v181_v27  ;;  %v212_v45 = vmul.f32 %v688_v3, %v182_v28 }
  0x8a   : > { %v701_v8 = vpop.permute.xlu0 %228  ;;  %v213_v49 = vmul.f32 %v688_v3, %v183_v36  ;;  %v214_v53 = vmul.f32 %v688_v3, %v184_v40  ;;  %v215_v57 = vmul.f32 %v688_v3, %v185_v44  ;;  %v216_v61 = vmul.f32 %v688_v3, %v186_v48 }
  0x8b   : > { %v714_v19 = vadd.f32 %v701_v8, %v201_v11  ;;  %v717_v20 = vadd.f32 %v701_v8, %v202_v12  ;;  %v720_v21 = vadd.f32 %v701_v8, %v203_v13  ;;  %v724_v23 = vadd.f32 %v701_v8, %v204_v15 }
  0x8c   : > { %v729_v26 = vadd.f32 %v701_v8, %v205_v18  ;;  %v736_v31 = vadd.f32 %v701_v8, %v206_v22  ;;  %v739_v32 = vadd.f32 %v701_v8, %v207_v25  ;;  %v747_v38 = vadd.f32 %v701_v8, %v208_v29  ;;  %v194_v22 = vld [vmem:[%s695_s21 + $0xb8] sm:$0xff] }
  0x8d   : > { %v509_v33 = vmul.f32 -1.442695, %v714_v19  ;;  %v510_v34 = vmul.f32 -1.442695, %v717_v20  ;;  %v511_v35 = vmul.f32 -1.442695, %v720_v21  ;;  %v753_v42 = vadd.f32 %v701_v8, %v209_v30 }
  0x8e   : > { %v512_v39 = vmul.f32 -1.442695, %v724_v23  ;;  %v513_v43 = vmul.f32 -1.442695, %v729_v26  ;;  %v759_v46 = vadd.f32 %v701_v8, %v210_v37  ;;  %v514_v47 = vmul.f32 -1.442695, %v736_v31 }
  0x8f   : > { %546 = vpow2.f32 %v509_v33  ;;  %v765_v50 = vadd.f32 %v701_v8, %v211_v41  ;;  %v515_v51 = vmul.f32 -1.442695, %v739_v32  ;;  %v771_v54 = vadd.f32 %v701_v8, %v212_v45 }
  0x90   : > { %548 = vpow2.f32 %v510_v34  ;;  %v516_v55 = vmul.f32 -1.442695, %v747_v38  ;;  %v777_v58 = vadd.f32 %v701_v8, %v213_v49  ;;  %v517_v59 = vmul.f32 -1.442695, %v753_v42 }
  0x91   : > { %550 = vpow2.f32 %v511_v35  ;;  %v783_v62 = vadd.f32 %v701_v8, %v214_v53  ;;  %v518_v63 = vmul.f32 -1.442695, %v759_v46  ;;  %v217_v1 = vmul.f32 %v688_v3, %v187_v52 }
  0x92   : > { %552 = vpow2.f32 %v512_v39  ;;  %v789_v2 = vadd.f32 %v701_v8, %v215_v57  ;;  %v519_v4 = vmul.f32 -1.442695, %v765_v50  ;;  %v218_v6 = vmul.f32 %v688_v3, %v188_v56 }
  0x93   : > { %554 = vpow2.f32 %v513_v43  ;;  %v795_v7 = vadd.f32 %v701_v8, %v216_v61  ;;  %v520_v9 = vmul.f32 -1.442695, %v771_v54  ;;  %v219_v11 = vmul.f32 %v688_v3, %v189_v60 }
  0x94   : > { %556 = vpow2.f32 %v514_v47  ;;  %v801_v12 = vadd.f32 %v701_v8, %v217_v1  ;;  %v521_v13 = vmul.f32 -1.442695, %v777_v58  ;;  %v220_v15 = vmul.f32 %v688_v3, %v190_v0 }
  0x95   : > { %558 = vpow2.f32 %v515_v51  ;;  %v807_v16 = vadd.f32 %v701_v8, %v218_v6  ;;  %v522_v17 = vmul.f32 -1.442695, %v783_v62  ;;  %v221_v24 = vmul.f32 %v688_v3, %v191_v5 }
  0x96   : > { %560 = vpow2.f32 %v516_v55  ;;  %v813_v25 = vadd.f32 %v701_v8, %v219_v11  ;;  %v523_v27 = vmul.f32 -1.442695, %v789_v2  ;;  %v222_v29 = vmul.f32 %v688_v3, %v192_v10 }
  0x97   : > { %562 = vpow2.f32 %v517_v59  ;;  %v818_v30 = vadd.f32 %v701_v8, %v220_v15  ;;  %v524_v33 = vmul.f32 -1.442695, %v795_v7  ;;  %v223_v35 = vmul.f32 %v688_v3, %v193_v14 }
  0x98   : > { %564 = vpow2.f32 %v518_v63  ;;  %v823_v36 = vadd.f32 %v701_v8, %v221_v24  ;;  %v525_v37 = vmul.f32 -1.442695, %v801_v12  ;;  %v224_v40 = vmul.f32 %v688_v3, %v194_v22 }
  0x99   : > { %v547_v18 = vpop.eup %546  ;;  %566 = vpow2.f32 %v519_v4  ;;  %v828_v41 = vadd.f32 %v701_v8, %v222_v29  ;;  %v526_v43 = vmul.f32 -1.442695, %v807_v16  ;;  %v832_v45 = vadd.f32 %v701_v8, %v223_v35 }
  0x9a   : > { %v549_v28 = vpop.eup %548  ;;  %568 = vpow2.f32 %v520_v9  ;;  %v527_v47 = vmul.f32 -1.442695, %v813_v25  ;;  %v836_v49 = vadd.f32 %v701_v8, %v224_v40  ;;  %v528_v3 = vmul.f32 -1.442695, %v818_v30 }
  0x9b   : > { %v551_v34 = vpop.eup %550  ;;  %570 = vpow2.f32 %v521_v13  ;;  %v529_v52 = vmul.f32 -1.442695, %v823_v36  ;;  %v530_v55 = vmul.f32 -1.442695, %v828_v41  ;;  %v531_v57 = vmul.f32 -1.442695, %v832_v45 }
  0x9c   : > { %v553_v39 = vpop.eup %552  ;;  %572 = vpow2.f32 %v522_v17  ;;  %v532_v8 = vmul.f32 -1.442695, %v836_v49  ;;  %v327_v61 = vadd.f32 1.0, %v547_v18  ;;  %v328_v0 = vadd.f32 1.0, %v549_v28 }
  0x9d   : > { %v555_v44 = vpop.eup %554  ;;  %574 = vpow2.f32 %v523_v27  ;;  %v329_v4 = vadd.f32 1.0, %v551_v34  ;;  %v330_v6 = vadd.f32 1.0, %v553_v39 }
  0x9e   : > { %v557_v48 = vpop.eup %556  ;;  %576 = vpow2.f32 %v524_v33  ;;  %v331_v10 = vadd.f32 1.0, %v555_v44 }
  0x9f   : > { %v559_v51 = vpop.eup %558  ;;  %578 = vpow2.f32 %v525_v37  ;;  %v332_v13 = vadd.f32 1.0, %v557_v48 }
  0xa0   : > { %v561_v53 = vpop.eup %560  ;;  %580 = vpow2.f32 %v526_v43  ;;  %v333_v15 = vadd.f32 1.0, %v559_v51 }
  0xa1   : > { %v563_v56 = vpop.eup %562  ;;  %582 = vpow2.f32 %v527_v47  ;;  %v334_v18 = vadd.f32 1.0, %v561_v53 }
  0xa2   : > { %v565_v59 = vpop.eup %564  ;;  %584 = vpow2.f32 %v528_v3  ;;  %v335_v24 = vadd.f32 1.0, %v563_v56 }
  0xa3   : > { %v567_v60 = vpop.eup %566  ;;  %586 = vpow2.f32 %v529_v52  ;;  %v336_v28 = vadd.f32 1.0, %v565_v59 }
  0xa4   : > { %v569_v63 = vpop.eup %568  ;;  %588 = vpow2.f32 %v530_v55  ;;  %v337_v33 = vadd.f32 1.0, %v567_v60 }
  0xa5   : > { %v571_v1 = vpop.eup %570  ;;  %590 = vpow2.f32 %v531_v57  ;;  %v338_v35 = vadd.f32 1.0, %v569_v63 }
  0xa6   : > { %v573_v5 = vpop.eup %572  ;;  %592 = vpow2.f32 %v532_v8  ;;  %v339_v39 = vadd.f32 1.0, %v571_v1 }
  0xa7   : > { %v575_v9 = vpop.eup %574  ;;  %594 = vrcp.f32 %v327_v61  ;;  %v340_v43 = vadd.f32 1.0, %v573_v5 }
  0xa8   : > { %v577_v11 = vpop.eup %576  ;;  %596 = vrcp.f32 %v328_v0  ;;  %v341_v47 = vadd.f32 1.0, %v575_v9 }
  0xa9   : > { %v579_v14 = vpop.eup %578  ;;  %598 = vrcp.f32 %v329_v4  ;;  %v342_v3 = vadd.f32 1.0, %v577_v11 }
  0xaa   : > { %v581_v17 = vpop.eup %580  ;;  %600 = vrcp.f32 %v330_v6  ;;  %v343_v53 = vadd.f32 1.0, %v579_v14 }
  0xab   : > { %v583_v22 = vpop.eup %582  ;;  %602 = vrcp.f32 %v331_v10  ;;  %v344_v57 = vadd.f32 1.0, %v581_v17 }
  0xac   : > { %v585_v27 = vpop.eup %584  ;;  %604 = vrcp.f32 %v332_v13  ;;  %v345_v60 = vadd.f32 1.0, %v583_v22 }
  0xad   : > { %v587_v29 = vpop.eup %586  ;;  %606 = vrcp.f32 %v333_v15  ;;  %v346_v63 = vadd.f32 1.0, %v585_v27 }
  0xae   : > { %v589_v34 = vpop.eup %588  ;;  %608 = vrcp.f32 %v334_v18  ;;  %v347_v1 = vadd.f32 1.0, %v587_v29 }
  0xaf   : > { %v591_v37 = vpop.eup %590  ;;  %610 = vrcp.f32 %v335_v24  ;;  %v348_v5 = vadd.f32 1.0, %v589_v34 }
  0xb0   : > { %v593_v40 = vpop.eup %592  ;;  %612 = vrcp.f32 %v336_v28  ;;  %v349_v9 = vadd.f32 1.0, %v591_v37 }
  0xb1   : > { %v595_v44 = vpop.eup %594  ;;  %614 = vrcp.f32 %v337_v33  ;;  %v350_v11 = vadd.f32 1.0, %v593_v40 }
  0xb2   : > { %v597_v48 = vpop.eup %596  ;;  %616 = vrcp.f32 %v338_v35  ;;  %v399_v51 = vmul.f32 %v595_v44, %v714_v19 }
  0xb3   : > { %v599_v52 = vpop.eup %598  ;;  %618 = vrcp.f32 %v339_v39  ;;  %v400_v55 = vmul.f32 %v597_v48, %v717_v20 }
  0xb4   : > { %v601_v56 = vpop.eup %600  ;;  %620 = vrcp.f32 %v340_v43  ;;  %v401_v59 = vmul.f32 %v599_v52, %v720_v21  ;;  %423 = vst [vmem:[%s848_s24] sm:$0xff] %v399_v51 }
  0xb5   : > { %v603_v8 = vpop.eup %602  ;;  %622 = vrcp.f32 %v341_v47  ;;  %v402_v61 = vmul.f32 %v601_v56, %v724_v23  ;;  %424 = vst [vmem:[%s848_s24 + $0x8] sm:$0xff] %v400_v55 }
  0xb6   : > { %v605_v19 = vpop.eup %604  ;;  %624 = vrcp.f32 %v342_v3  ;;  %v403_v0 = vmul.f32 %v603_v8, %v729_v26  ;;  %425 = vst [vmem:[%s848_s24 + $0x10] sm:$0xff] %v401_v59 }
  0xb7   : > { %v607_v20 = vpop.eup %606  ;;  %626 = vrcp.f32 %v343_v53  ;;  %v404_v21 = vmul.f32 %v605_v19, %v736_v31  ;;  %426 = vst [vmem:[%s848_s24 + $0x18] sm:$0xff] %v402_v61 }
  0xb8   : > { %v609_v4 = vpop.eup %608  ;;  %628 = vrcp.f32 %v344_v57  ;;  %v405_v23 = vmul.f32 %v607_v20, %v739_v32  ;;  %427 = vst [vmem:[%s848_s24 + $0x20] sm:$0xff] %v403_v0 }
  0xb9   : > { %v611_v6 = vpop.eup %610  ;;  %630 = vrcp.f32 %v345_v60  ;;  %v406_v26 = vmul.f32 %v609_v4, %v747_v38  ;;  %428 = vst [vmem:[%s848_s24 + $0x28] sm:$0xff] %v404_v21 }
  0xba   : > { %v613_v10 = vpop.eup %612  ;;  %632 = vrcp.f32 %v346_v63  ;;  %v407_v31 = vmul.f32 %v611_v6, %v753_v42  ;;  %429 = vst [vmem:[%s848_s24 + $0x30] sm:$0xff] %v405_v23 }
  0xbb   : > { %v615_v13 = vpop.eup %614  ;;  %634 = vrcp.f32 %v347_v1  ;;  %v408_v32 = vmul.f32 %v613_v10, %v759_v46  ;;  %430 = vst [vmem:[%s848_s24 + $0x38] sm:$0xff] %v406_v26 }
  0xbc   : > { %v617_v14 = vpop.eup %616  ;;  %636 = vrcp.f32 %v348_v5  ;;  %v409_v38 = vmul.f32 %v615_v13, %v765_v50  ;;  %431 = vst [vmem:[%s848_s24 + $0x40] sm:$0xff] %v407_v31 }
  0xbd   : > { %v619_v15 = vpop.eup %618  ;;  %638 = vrcp.f32 %v349_v9  ;;  %v410_v17 = vmul.f32 %v617_v14, %v771_v54  ;;  %432 = vst [vmem:[%s848_s24 + $0x48] sm:$0xff] %v408_v32 }
  0xbe   : > { %v621_v42 = vpop.eup %620  ;;  %640 = vrcp.f32 %v350_v11  ;;  %v411_v18 = vmul.f32 %v619_v15, %v777_v58  ;;  %433 = vst [vmem:[%s848_s24 + $0x50] sm:$0xff] %v409_v38 }
  0xbf   : > { %v623_v46 = vpop.eup %622  ;;  %v412_v22 = vmul.f32 %v621_v42, %v783_v62  ;;  %434 = vst [vmem:[%s848_s24 + $0x58] sm:$0xff] %v410_v17 }
  0xc0   : > { %v625_v50 = vpop.eup %624  ;;  %v413_v24 = vmul.f32 %v623_v46, %v789_v2  ;;  %435 = vst [vmem:[%s848_s24 + $0x60] sm:$0xff] %v411_v18 }
  0xc1   : > { %v627_v27 = vpop.eup %626  ;;  %v414_v54 = vmul.f32 %v625_v50, %v795_v7  ;;  %436 = vst [vmem:[%s848_s24 + $0x68] sm:$0xff] %v412_v22 }
  0xc2   : > { %v629_v28 = vpop.eup %628  ;;  %v415_v58 = vmul.f32 %v627_v27, %v801_v12  ;;  %437 = vst [vmem:[%s848_s24 + $0x70] sm:$0xff] %v413_v24 }
  0xc3   : > { %v631_v29 = vpop.eup %630  ;;  %v416_v62 = vmul.f32 %v629_v28, %v807_v16  ;;  %438 = vst [vmem:[%s848_s24 + $0x78] sm:$0xff] %v414_v54 }
  0xc4   : > { %v633_v33 = vpop.eup %632  ;;  %v417_v2 = vmul.f32 %v631_v29, %v813_v25  ;;  %439 = vst [vmem:[%s848_s24 + $0x80] sm:$0xff] %v415_v58 }
  0xc5   : > { %v635_v7 = vpop.eup %634  ;;  %v418_v34 = vmul.f32 %v633_v33, %v818_v30  ;;  %440 = vst [vmem:[%s848_s24 + $0x88] sm:$0xff] %v416_v62 }
  0xc6   : > { %v637_v35 = vpop.eup %636  ;;  %v419_v12 = vmul.f32 %v635_v7, %v823_v36  ;;  %441 = vst [vmem:[%s848_s24 + $0x90] sm:$0xff] %v417_v2 }
  0xc7   : > { %v639_v37 = vpop.eup %638  ;;  %v420_v16 = vmul.f32 %v637_v35, %v828_v41  ;;  %442 = vst [vmem:[%s848_s24 + $0x98] sm:$0xff] %v418_v34 }
  0xc8   : > { %v641_v39 = vpop.eup %640  ;;  %v421_v40 = vmul.f32 %v639_v37, %v832_v45  ;;  %443 = vst [vmem:[%s848_s24 + $0xa0] sm:$0xff] %v419_v12 }
  0xc9   : > { %v422_v25 = vmul.f32 %v641_v39, %v836_v49  ;;  %444 = vst [vmem:[%s848_s24 + $0xa8] sm:$0xff] %v420_v16 }
  0xca   : > { %445 = vst [vmem:[%s848_s24 + $0xb0] sm:$0xff] %v421_v40 }
  0xcb   : > { %446 = vst [vmem:[%s848_s24 + $0xb8] sm:$0xff] %v422_v25 }
  0xcc PF: > { %s13_s12 = sadd.s32 1, %s648_s12  }
  0xcd   : > { %p10_p4 = scmp.ge.s32.totalorder %s13_s12, 4  }
  0xcf   :  { %12 = sbr.rel (!%p10_p4) target bundleno = 1 (0x1), region = 62 }

// kernel: conv_block_group_forward.3
= control target key start
LH: loop header
LB: loop body
LE: loop exit
PB: predicated region body
PF: predicated region fallthrough
CT: control target
= control target key end

     0   :  { %s7050_s24 = smov 0   ;;  %s8013_s0 = inlined_call_operand.vmem [shape: f32[2,4,4,384], index: 0, kind: input, shape index: {}]   ;;  %s8014_s1 = inlined_call_operand.vmem [shape: f32[9,8,4], index: 1, kind: input, shape index: {}]   ;;  %s8015_s2 = inlined_call_operand.vmem [shape: f32[4,1], index: 2, kind: input, shape index: {}]   ;;  %s8016_s3 = inlined_call_operand.vmem [shape: f32[4,1], index: 3, kind: input, shape index: {}]   ;;  %s8017_s4 = inlined_call_operand.vmem [shape: f32[1,384], index: 4, kind: input, shape index: {}]   ;;  %s8018_s5 = inlined_call_operand.vmem [shape: f32[2,6,8,384], index: 5, kind: output, shape index: {0}]   ;;  %s8019_s6 = inlined_call_operand.vmem [shape: f32[2,8,1], index: 6, kind: output, shape index: {1}]   ;;  %s8020_s7 = inlined_call_operand.vmem [shape: f32[2,8,1], index: 7, kind: output, shape index: {2}]  }
   0x1 LB: > { %s6367_s2 = sadd.s32 4294967295, %s6998_s24   ;;  %p6371_p0 = scmp.ge.s32.totalorder %s6998_s24, 1  ;;  %s6998_s24 = sphi %s7050_s24, %s18_s24  }
   0x2   : > { %p242_p1 = scmp.lt.s32.totalorder %s6998_s24, 3 }
   0x4   : > { %p243_p2 = pnand %p6371_p0, %p242_p1 }
   0x5   : > { %p282_p3 = scmp.lt.s32.totalorder (!%p243_p2), %s6367_s2, 1  ;;  %v7000_v0 = vmov (!%p243_p2), 0.0   ;;  %vm7001_vm0 = vmmov (!%p243_p2), 0   ;;  %s7002_s9 = smov (!%p243_p2), 18   ;;  %v333_v10 = vlaneseq (!%p243_p2)  ;;  %vm353_vm2 = vcmask (!%p243_p2), 1043456   ;;  %v7245_v16 = vld [vmem:[%s8014_s1 + $0x8] sm:$0xff] (!%p243_p2) }
   0x6   : > { %246 = sbr.rel (%p243_p2) target bundleno = 774 (0x306), region = 40  ;;  %6659 = vmatprep.subr.mxu1 (!%p243_p2), %v7000_v0  ;;  %6661 = vmatprep.mubr.msk.f32.mxu1 (!%p243_p2), %vm7001_vm0, %v7000_v0  ;;  %s7003_s10 = smov (!%p243_p2), 19   ;;  %vm349_vm3 = vcmask (!%p243_p2), 31744   ;;  %v7279_v27 = vld [vmem:[%s8014_s1] sm:$0xff] (!%p243_p2)  ;;  %v7310_v35 = vld [vmem:[%s8014_s1 + $0x10] sm:$0xff] (!%p243_p2)  ;;  %v7340_v41 = vld [vmem:[%s8014_s1 + $0x18] sm:$0xff] (!%p243_p2) }
   0x7   : > { %427 = vmatprep.mubr.f32.mxu0 (!%p243_p2), %v7000_v0  ;;  %s7004_s11 = smov (!%p243_p2), 17   ;;  %s7005_s12 = smov (!%p243_p2), 1   ;;  %v7235_v11 = vand.u32 (!%p243_p2), 127, %v333_v10  ;;  %v7367_v47 = vld [vmem:[%s8014_s1 + $0x20] sm:$0xff] (!%p243_p2)  ;;  %v7403_v56 = vld [vmem:[%s8014_s1 + $0x28] sm:$0xff] (!%p243_p2)  ;;  %vm6247_vm11 = vcmask (!%p243_p2), 7168  }
   0x8   : > { %s7006_s13 = smov (!%p243_p2), 127   ;;  %s7007_s14 = smov (!%p243_p2), 111  }
   0x9   : > { %s7008_s15 = smov (!%p243_p2), 110   ;;  %s7009_s16 = smov (!%p243_p2), 109   ;;  %vm345_vm1 = vcmp.lt.s32.totalorder (!%p243_p2), %v7235_v11, 18  ;;  %vm335_vm4 = vcmp.lt.s32.totalorder (!%p243_p2), %v7235_v11, 19  ;;  %vm663_vm5 = vcmp.lt.s32.totalorder (!%p243_p2), %v7235_v11, 17  ;;  %vm829_vm6 = vcmp.lt.s32.totalorder (!%p243_p2), %v7235_v11, 1 }
   0xa   : > { %vm1148_vm7 = vcmp.lt.s32.totalorder (!%p243_p2), %v7235_v11, 127  ;;  %vm1314_vm8 = vcmp.lt.s32.totalorder (!%p243_p2), %v7235_v11, 111  ;;  %vm1480_vm9 = vcmp.lt.s32.totalorder (!%p243_p2), %v7235_v11, 110  ;;  %vm1646_vm10 = vcmp.lt.s32.totalorder (!%p243_p2), %v7235_v11, 109 }
   0xd   : > { %s8022_s2 = smov (!%p282_p3, %s6367_s2), 1 }
   0xe   : > { %s6967_s3 = smul.u32 48, %s8022_s2 }
   0xf   : > { %s6968_s25 = smul.u32 144, %s8022_s2 }
  0x10   : > { %s7069_s28 = scalar_lea.vmem %s8013_s0, %s6967_s3 }
  0x11   : > { %s7074_s8 = scalar_lea.vmem %s8018_s5, %s6968_s25  ;;  %v7077_v1 = vld [vmem:[%s7069_s28 + $0x8] sm:$0xf]  ;;  %v7080_v2 = vld [vmem:[%s7069_s28] sm:$0xff]  ;;  %v7143_v4 = vld [vmem:[%s7069_s28 + $0xc] sm:$0xff] }
  0x12   : > { %318 = vst [vmem:[%s7074_s8] sm:$0xff] %v7000_v0  ;;  %319 = vst [vmem:[%s7074_s8 + $0x8] sm:$0xff] %v7000_v0  ;;  %343 = vrot.lane.b32.xlu1 %v7077_v1, %s7002_s9  ;;  %339 = vrot.lane.b32.xlu0 %v7080_v2, %s7002_s9  ;;  %v7100_v3 = vcombine.high %v7080_v2, %v7080_v2  ;;  %v7151_v5 = vcombine.high %v7143_v4, %v7143_v4 }
  0x13   : > { %320 = vst [vmem:[%s7074_s8 + $0x10] sm:$0xff] %v7000_v0  ;;  %6582 = vst [vmem:[%s7074_s8 + $0x78] sm:$0xff] %v7000_v0  ;;  %v7158_v6 = vld [vmem:[%s7069_s28 + $0x14] sm:$0xf]  ;;  %v7201_v7 = vld [vmem:[%s7069_s28 + $0x18] sm:$0xff] }
  0x14   : > { %6583 = vst [vmem:[%s7074_s8 + $0x80] sm:$0xff] %v7000_v0  ;;  %6584 = vst [vmem:[%s7074_s8 + $0x88] sm:$0xff] %v7000_v0  ;;  %v7209_v8 = vcombine.high %v7201_v7, %v7201_v7  ;;  %v7216_v9 = vld [vmem:[%s7069_s28 + $0x20] sm:$0xf]  ;;  %v7383_v53 = vld [vmem:[%s7069_s28 + $0x24] sm:$0xff] }
  0x15   : > { %v7390_v54 = vcombine.high %v7383_v53, %v7383_v53  ;;  %v7409_v58 = vld [vmem:[%s7069_s28 + $0x2c] sm:$0xf] }
  0x16   : > { %327 = vrot.lane.b32.xlu1 %v7080_v2, %s7003_s10  ;;  %341 = vrot.lane.b32.xlu0 %v7100_v3, %s7002_s9 }
  0x1a   : > { %331 = vrot.lane.b32.xlu1 %v7077_v1, %s7003_s10  ;;  %329 = vrot.lane.b32.xlu0 %v7100_v3, %s7003_s10 }
  0x1e   : > { %657 = vrot.lane.b32.xlu0 %v7080_v2, %s7004_s11  ;;  %659 = vrot.lane.b32.xlu1 %v7100_v3, %s7004_s11 }
  0x22   : > { %661 = vrot.lane.b32.xlu0 %v7077_v1, %s7004_s11  ;;  %823 = vrot.lane.b32.xlu1 %v7080_v2, %s7005_s12 }
  0x26   : > { %827 = vrot.lane.b32.xlu1 %v7077_v1, %s7005_s12  ;;  %825 = vrot.lane.b32.xlu0 %v7100_v3, %s7005_s12 }
  0x2a   : > { %1144 = vrot.lane.b32.xlu0 %v7100_v3, %s7006_s13  ;;  %1146 = vrot.lane.b32.xlu1 %v7077_v1, %s7006_s13 }
  0x2e   : > { %1142 = vrot.lane.b32.xlu0 %v7080_v2, %s7006_s13  ;;  %1310 = vrot.lane.b32.xlu1 %v7100_v3, %s7007_s14 }
  0x32   : > { %1308 = vrot.lane.b32.xlu1 %v7080_v2, %s7007_s14  ;;  %1312 = vrot.lane.b32.xlu0 %v7077_v1, %s7007_s14 }
  0x36   : > { %1476 = vrot.lane.b32.xlu0 %v7100_v3, %s7008_s15  ;;  %1478 = vrot.lane.b32.xlu1 %v7077_v1, %s7008_s15 }
  0x3a   : > { %1474 = vrot.lane.b32.xlu0 %v7080_v2, %s7008_s15  ;;  %1642 = vrot.lane.b32.xlu1 %v7100_v3, %s7009_s16 }
  0x3e   : > { %1644 = vrot.lane.b32.xlu0 %v7077_v1, %s7009_s16  ;;  %1640 = vrot.lane.b32.xlu1 %v7080_v2, %s7009_s16 }
  0x42   : > { %1858 = vrot.lane.b32.xlu0 %v7143_v4, %s7002_s9  ;;  %1860 = vrot.lane.b32.xlu1 %v7151_v5, %s7002_s9 }
  0x46   : > { %1862 = vrot.lane.b32.xlu0 %v7158_v6, %s7002_s9  ;;  %1849 = vrot.lane.b32.xlu1 %v7143_v4, %s7003_s10 }
  0x4a   : > { %1853 = vrot.lane.b32.xlu1 %v7158_v6, %s7003_s10  ;;  %1851 = vrot.lane.b32.xlu0 %v7151_v5, %s7003_s10 }
  0x4e   : > { %2167 = vrot.lane.b32.xlu0 %v7143_v4, %s7004_s11  ;;  %2169 = vrot.lane.b32.xlu1 %v7151_v5, %s7004_s11 }
  0x52   : > { %2171 = vrot.lane.b32.xlu0 %v7158_v6, %s7004_s11  ;;  %2329 = vrot.lane.b32.xlu1 %v7143_v4, %s7005_s12 }
  0x56   : > { %2333 = vrot.lane.b32.xlu1 %v7158_v6, %s7005_s12  ;;  %2331 = vrot.lane.b32.xlu0 %v7151_v5, %s7005_s12 }
  0x5a   : > { %2643 = vrot.lane.b32.xlu0 %v7151_v5, %s7006_s13  ;;  %2645 = vrot.lane.b32.xlu1 %v7158_v6, %s7006_s13 }
  0x5e   : > { %2641 = vrot.lane.b32.xlu0 %v7143_v4, %s7006_s13  ;;  %2805 = vrot.lane.b32.xlu1 %v7151_v5, %s7007_s14 }
  0x62   : > { %2803 = vrot.lane.b32.xlu1 %v7143_v4, %s7007_s14  ;;  %2807 = vrot.lane.b32.xlu0 %v7158_v6, %s7007_s14 }
  0x66   : > { %2967 = vrot.lane.b32.xlu0 %v7151_v5, %s7008_s15  ;;  %2969 = vrot.lane.b32.xlu1 %v7158_v6, %s7008_s15 }
  0x6a   : > { %2965 = vrot.lane.b32.xlu0 %v7143_v4, %s7008_s15  ;;  %3129 = vrot.lane.b32.xlu1 %v7151_v5, %s7009_s16 }
  0x6e   : > { %3131 = vrot.lane.b32.xlu0 %v7158_v6, %s7009_s16  ;;  %3127 = vrot.lane.b32.xlu1 %v7143_v4, %s7009_s16 }
  0x72   : > { %3325 = vrot.lane.b32.xlu0 %v7201_v7, %s7002_s9  ;;  %3327 = vrot.lane.b32.xlu1 %v7209_v8, %s7002_s9 }
  0x76   : > { %3329 = vrot.lane.b32.xlu0 %v7216_v9, %s7002_s9  ;;  %3316 = vrot.lane.b32.xlu1 %v7201_v7, %s7003_s10 }
  0x7a   : > { %3320 = vrot.lane.b32.xlu1 %v7216_v9, %s7003_s10  ;;  %3318 = vrot.lane.b32.xlu0 %v7209_v8, %s7003_s10 }
  0x7e   : > { %3634 = vrot.lane.b32.xlu0 %v7201_v7, %s7004_s11  ;;  %3636 = vrot.lane.b32.xlu1 %v7209_v8, %s7004_s11 }
  0x82   : > { %3638 = vrot.lane.b32.xlu0 %v7216_v9, %s7004_s11  ;;  %3796 = vrot.lane.b32.xlu1 %v7201_v7, %s7005_s12 }
  0x84   : > { %v344_v12 = vpop.permute.xlu1 %343  ;;  %v340_v13 = vpop.permute.xlu0 %339 }
  0x85   : > { %v348_v19 = vsel %vm345_vm1, %v344_v12, %v340_v13 }
  0x86   : > { %3800 = vrot.lane.b32.xlu1 %v7216_v9, %s7005_s12  ;;  %3798 = vrot.lane.b32.xlu0 %v7209_v8, %s7005_s12 }
  0x88   : > { %v328_v14 = vpop.permute.xlu1 %327  ;;  %v342_v15 = vpop.permute.xlu0 %341 }
  0x89   : > { %v347_v17 = vsel %vm345_vm1, %v340_v13, %v342_v15  ;;  %v346_v18 = vsel %vm345_vm1, %v342_v15, %v344_v12  ;;  %v7464_v15 = vld [vmem:[%s8014_s1 + $0x38] sm:$0xff] }
  0x8a   : > { %6384 = vmatprep.subr.msk.mxu0 %vm353_vm2, %v347_v17  ;;  %6660 = vmatpush3.msk.msra.mxu1 %vm353_vm2, %v346_v18 }
  0x8b   : > { %6385 = vmatpush1.msk.msra.mxu0 %vm353_vm2, %v348_v19  ;;  %6662 = vmatmul.mubr.msk.f32.vlgmr.msra.gmra.mrb[0].mxu1 %vm349_vm3, %v7245_v16 }
  0x8c   : > { %v332_v20 = vpop.permute.xlu1 %331  ;;  %6386 = vmatmul.mubr.msk.f32.vlgmr.msra.gmra.mrb[0].mxu0 %vm349_vm3, %v7245_v16  ;;  %v330_v21 = vpop.permute.xlu0 %329  ;;  %6664 = vmatprep.subr.mxu1 %v7000_v0 }
  0x8d   : > { %v338_v22 = vsel %vm335_vm4, %v332_v20, %v328_v14  ;;  %v336_v23 = vsel %vm335_vm4, %v330_v21, %v332_v20  ;;  %v337_v24 = vsel %vm335_vm4, %v328_v14, %v330_v21  ;;  %6666 = vmatprep.mubr.msk.f32.mxu1 %vm7001_vm0, %v7000_v0  ;;  %580 = vmatprep.mubr.f32.mxu0 %v7000_v0 }
  0x8e   : > { %6389 = vmatprep.subr.msk.mxu0 %vm353_vm2, %v337_v24  ;;  %6665 = vmatpush3.msk.msra.mxu1 %vm353_vm2, %v336_v23  ;;  %v7492_v23 = vld [vmem:[%s8014_s1 + $0x40] sm:$0xff] }
  0x8f   : > { %6390 = vmatpush1.msk.msra.mxu0 %vm353_vm2, %v338_v22  ;;  %6669 = vmatprep.subr.mxu1 %v7000_v0 }
  0x90   : > { %v658_v25 = vpop.permute.xlu0 %657  ;;  %v660_v26 = vpop.permute.xlu1 %659  ;;  %4110 = vrot.lane.b32.xlu0 %v7209_v8, %s7006_s13  ;;  %4112 = vrot.lane.b32.xlu1 %v7216_v9, %s7006_s13 }
  0x91   : > { %v665_v28 = vsel %vm663_vm5, %v658_v25, %v660_v26 }
  0x92   : > { %6394 = vmatprep.subr.msk.mxu0 %vm353_vm2, %v665_v28 }
  0x93   : > { %6667 = vmatmul.mubr.msk.f32.vlgmr.msra.gmra.mrb[0].mxu1 %vm349_vm3, %v7279_v27 }
  0x94   : > { %6391 = vmatmul.mubr.msk.f32.vlgmr.msra.gmra.mrb[0].mxu0 %vm349_vm3, %v7279_v27  ;;  %v662_v29 = vpop.permute.xlu0 %661  ;;  %v824_v30 = vpop.permute.xlu1 %823  ;;  %6671 = vmatprep.mubr.msk.f32.mxu1 %vm7001_vm0, %v7000_v0 }
  0x95   : > { %v664_v31 = vsel %vm663_vm5, %v660_v26, %v662_v29  ;;  %v666_v32 = vsel %vm663_vm5, %v662_v29, %v658_v25  ;;  %743 = vmatprep.mubr.f32.mxu0 %v7000_v0  ;;  %4108 = vrot.lane.b32.xlu0 %v7201_v7, %s7006_s13 }
  0x96   : > { %6395 = vmatpush1.msk.msra.mxu0 %vm353_vm2, %v666_v32  ;;  %6670 = vmatpush3.msk.msra.mxu1 %vm353_vm2, %v664_v31 }
  0x97   : > { %6674 = vmatprep.subr.mxu1 %v7000_v0  ;;  %4272 = vrot.lane.b32.xlu1 %v7209_v8, %s7007_s14 }
  0x98   : > { %v828_v33 = vpop.permute.xlu1 %827  ;;  %v826_v34 = vpop.permute.xlu0 %825 }
  0x99   : > { %v830_v36 = vsel %vm829_vm6, %v826_v34, %v828_v33  ;;  %v831_v37 = vsel %vm829_vm6, %v824_v30, %v826_v34  ;;  %4274 = vrot.lane.b32.xlu0 %v7216_v9, %s7007_s14  ;;  %v832_v38 = vsel %vm829_vm6, %v828_v33, %v824_v30 }
  0x9a   : > { %6399 = vmatprep.subr.msk.mxu0 %vm353_vm2, %v831_v37 }
  0x9b   : > { %6672 = vmatmul.mubr.msk.f32.vlgmr.msra.gmra.mrb[0].mxu1 %vm349_vm3, %v7310_v35  ;;  %4270 = vrot.lane.b32.xlu1 %v7201_v7, %s7007_s14 }
  0x9c   : > { %6396 = vmatmul.mubr.msk.f32.vlgmr.msra.gmra.mrb[0].mxu0 %vm349_vm3, %v7310_v35  ;;  %6675 = vmatpush3.msk.msra.mxu1 %vm353_vm2, %v830_v36  ;;  %v1145_v39 = vpop.permute.xlu0 %1144  ;;  %v1147_v40 = vpop.permute.xlu1 %1146 }
  0x9d   : > { %6400 = vmatpush1.msk.msra.mxu0 %vm353_vm2, %v832_v38  ;;  %6676 = vmatprep.mubr.msk.f32.mxu1 %vm7001_vm0, %v7000_v0  ;;  %v1149_v44 = vsel %vm1148_vm7, %v1145_v39, %v1147_v40 }
  0x9e   : > { %909 = vmatprep.mubr.f32.mxu0 %v7000_v0  ;;  %6404 = vmatprep.subr.msk.mxu0 %vm353_vm2, %v7100_v3 }
  0x9f   : > { %6679 = vmatprep.subr.mxu1 %v7000_v0  ;;  %4434 = vrot.lane.b32.xlu0 %v7209_v8, %s7008_s15 }
  0xa0   : > { %v1143_v42 = vpop.permute.xlu0 %1142  ;;  %v1311_v43 = vpop.permute.xlu1 %1310  ;;  %4436 = vrot.lane.b32.xlu1 %v7216_v9, %s7008_s15 }
  0xa1   : > { %v1151_v49 = vsel %vm1148_vm7, %v1147_v40, %v1143_v42  ;;  %v1150_v50 = vsel %vm1148_vm7, %v1143_v42, %v1145_v39 }
  0xa3   : > { %6677 = vmatmul.mubr.msk.f32.vlgmr.msra.gmra.mrb[0].mxu1 %vm349_vm3, %v7340_v41  ;;  %4432 = vrot.lane.b32.xlu0 %v7201_v7, %s7008_s15 }
  0xa4   : > { %6401 = vmatmul.mubr.msk.f32.vlgmr.msra.gmra.mrb[0].mxu0 %vm349_vm3, %v7340_v41  ;;  %6680 = vmatpush3.msk.msra.mxu1 %vm353_vm2, %v7077_v1  ;;  %v1313_v45 = vpop.permute.xlu0 %1312  ;;  %v1309_v46 = vpop.permute.xlu1 %1308  ;;  %v7435_v1 = vld [vmem:[%s8014_s1 + $0x30] sm:$0xff] }
  0xa5   : > { %6405 = vmatpush1.msk.msra.mxu0 %vm353_vm2, %v7080_v2  ;;  %6681 = vmatprep.mubr.msk.f32.mxu1 %vm7001_vm0, %v7000_v0  ;;  %v1315_v52 = vsel %vm1314_vm8, %v1311_v43, %v1313_v45  ;;  %v1317_v59 = vsel %vm1314_vm8, %v1313_v45, %v1309_v46  ;;  %v1316_v60 = vsel %vm1314_vm8, %v1309_v46, %v1311_v43 }
  0xa6   : > { %1062 = vmatprep.mubr.f32.mxu0 %v7000_v0  ;;  %6409 = vmatprep.subr.msk.mxu0 %vm353_vm2, %v1149_v44 }
  0xa7   : > { %6684 = vmatprep.subr.mxu1 %v7000_v0  ;;  %4596 = vrot.lane.b32.xlu1 %v7209_v8, %s7009_s16 }
  0xa8   : > { %v1477_v48 = vpop.permute.xlu0 %1476  ;;  %4598 = vrot.lane.b32.xlu0 %v7216_v9, %s7009_s16  ;;  %v1479_v51 = vpop.permute.xlu1 %1478 }
  0xa9   : > { %v1481_v61 = vsel %vm1480_vm9, %v1477_v48, %v1479_v51 }
  0xab   : > { %6682 = vmatmul.mubr.msk.f32.vlgmr.msra.gmra.mrb[0].mxu1 %vm349_vm3, %v7367_v47  ;;  %4594 = vrot.lane.b32.xlu1 %v7201_v7, %s7009_s16 }
  0xac   : > { %6406 = vmatmul.mubr.msk.f32.vlgmr.msra.gmra.mrb[0].mxu0 %vm349_vm3, %v7367_v47  ;;  %6685 = vmatpush3.msk.msra.mxu1 %vm353_vm2, %v1151_v49  ;;  %v1475_v55 = vpop.permute.xlu0 %1474  ;;  %v1643_v57 = vpop.permute.xlu1 %1642 }
  0xad   : > { %6410 = vmatpush1.msk.msra.mxu0 %vm353_vm2, %v1150_v50  ;;  %6686 = vmatprep.mubr.msk.f32.mxu1 %vm7001_vm0, %v7000_v0  ;;  %v1483_v2 = vsel %vm1480_vm9, %v1479_v51, %v1475_v55  ;;  %v1482_v3 = vsel %vm1480_vm9, %v1475_v55, %v1477_v48 }
  0xae   : > { %1228 = vmatprep.mubr.f32.mxu0 %v7000_v0  ;;  %6414 = vmatprep.subr.msk.mxu0 %vm353_vm2, %v1315_v52 }
  0xaf   : > { %6689 = vmatprep.subr.mxu1 %v7000_v0  ;;  %4792 = vrot.lane.b32.xlu0 %v7383_v53, %s7002_s9 }
  0xb0   : > { %4794 = vrot.lane.b32.xlu1 %v7390_v54, %s7002_s9  ;;  %v1645_v62 = vpop.permute.xlu0 %1644  ;;  %v1641_v63 = vpop.permute.xlu1 %1640 }
  0xb1   : > { %v1647_v13 = vsel %vm1646_vm10, %v1643_v57, %v1645_v62  ;;  %v1649_v18 = vsel %vm1646_vm10, %v1645_v62, %v1641_v63  ;;  %v1648_v19 = vsel %vm1646_vm10, %v1641_v63, %v1643_v57 }
  0xb3   : > { %6687 = vmatmul.mubr.msk.f32.vlgmr.msra.gmra.mrb[0].mxu1 %vm349_vm3, %v7403_v56  ;;  %4796 = vrot.lane.b32.xlu0 %v7409_v58, %s7002_s9 }
  0xb4   : > { %6411 = vmatmul.mubr.msk.f32.vlgmr.msra.gmra.mrb[0].mxu0 %vm349_vm3, %v7403_v56  ;;  %6690 = vmatpush3.msk.msra.mxu1 %vm353_vm2, %v1317_v59  ;;  %v1859_v12 = vpop.permute.xlu0 %1858  ;;  %v1861_v14 = vpop.permute.xlu1 %1860 }
  0xb5   : > { %6415 = vmatpush1.msk.msra.mxu0 %vm353_vm2, %v1316_v60  ;;  %6691 = vmatprep.mubr.msk.f32.mxu1 %vm7001_vm0, %v7000_v0  ;;  %v1865_v21 = vsel %vm345_vm1, %v1859_v12, %v1861_v14 }
  0xb6   : > { %1394 = vmatprep.mubr.f32.mxu0 %v7000_v0  ;;  %6419 = vmatprep.subr.msk.mxu0 %vm353_vm2, %v1481_v61 }
  0xb7   : > { %6694 = vmatprep.subr.mxu1 %v7000_v0  ;;  %4783 = vrot.lane.b32.xlu1 %v7383_v53, %s7003_s10 }
  0xb8   : > { %4785 = vrot.lane.b32.xlu0 %v7390_v54, %s7003_s10  ;;  %v1863_v17 = vpop.permute.xlu0 %1862  ;;  %v1850_v20 = vpop.permute.xlu1 %1849 }
  0xb9   : > { %v1864_v25 = vsel %vm345_vm1, %v1861_v14, %v1863_v17  ;;  %v1866_v26 = vsel %vm345_vm1, %v1863_v17, %v1859_v12 }
  0xbb   : > { %6692 = vmatmul.mubr.msk.f32.vlgmr.msra.gmra.mrb[0].mxu1 %vm349_vm3, %v7435_v1  ;;  %4787 = vrot.lane.b32.xlu1 %v7409_v58, %s7003_s10 }
  0xbc   : > { %6416 = vmatmul.mubr.msk.f32.vlgmr.msra.gmra.mrb[0].mxu0 %vm349_vm3, %v7435_v1  ;;  %6695 = vmatpush3.msk.msra.mxu1 %vm353_vm2, %v1483_v2  ;;  %v1852_v22 = vpop.permute.xlu0 %1851  ;;  %v1854_v24 = vpop.permute.xlu1 %1853 }
  0xbd   : > { %6420 = vmatpush1.msk.msra.mxu0 %vm353_vm2, %v1482_v3  ;;  %6696 = vmatprep.mubr.msk.f32.mxu1 %vm7001_vm0, %v7000_v0  ;;  %v1856_v29 = vsel %vm335_vm4, %v1850_v20, %v1852_v22  ;;  %v1855_v31 = vsel %vm335_vm4, %v1852_v22, %v1854_v24  ;;  %v1857_v32 = vsel %vm335_vm4, %v1854_v24, %v1850_v20 }
  0xbe   : > { %1560 = vmatprep.mubr.f32.mxu0 %v7000_v0  ;;  %6424 = vmatprep.subr.msk.mxu0 %vm353_vm2, %v1647_v13 }
  0xbf   : > { %6699 = vmatprep.subr.mxu1 %v7000_v0  ;;  %5101 = vrot.lane.b32.xlu0 %v7383_v53, %s7004_s11 }
  0xc0   : > { %5103 = vrot.lane.b32.xlu1 %v7390_v54, %s7004_s11  ;;  %v2168_v28 = vpop.permute.xlu0 %2167  ;;  %v2170_v30 = vpop.permute.xlu1 %2169 }
  0xc1   : > { %v2174_v33 = vsel %vm663_vm5, %v2168_v28, %v2170_v30 }
  0xc3   : > { %6697 = vmatmul.mubr.msk.f32.vlgmr.msra.gmra.mrb[0].mxu1 %vm349_vm3, %v7464_v15  ;;  %5105 = vrot.lane.b32.xlu0 %v7409_v58, %s7004_s11 }
  0xc4   : > { %6421 = vmatmul.mubr.msk.f32.vlgmr.msra.gmra.mrb[0].mxu0 %vm349_vm3, %v7464_v15  ;;  %6700 = vmatpush3.msk.msra.mxu1 %vm353_vm2, %v1649_v18  ;;  %v2172_v34 = vpop.permute.xlu0 %2171  ;;  %v2330_v36 = vpop.permute.xlu1 %2329 }
  0xc5   : > { %6425 = vmatpush1.msk.msra.mxu0 %vm353_vm2, %v1648_v19  ;;  %6701 = vmatprep.mubr.msk.f32.mxu1 %vm7001_vm0, %v7000_v0  ;;  %v2173_v38 = vsel %vm663_vm5, %v2170_v30, %v2172_v34  ;;  %v2175_v39 = vsel %vm663_vm5, %v2172_v34, %v2168_v28 }
  0xc6   : > { %6434 = vmatprep.subr.msk.mxu0 %vm353_vm2, %v1865_v21  ;;  %6704 = vmatprep.subr.mxu1 %v7000_v0 }
  0xc7   : > { %1726 = vmatprep.mubr.f32.mxu0 %v7000_v0  ;;  %5263 = vrot.lane.b32.xlu1 %v7383_v53, %s7005_s12 }
  0xc8   : > { %5265 = vrot.lane.b32.xlu0 %v7390_v54, %s7005_s12  ;;  %v2332_v37 = vpop.permute.xlu0 %2331  ;;  %v2334_v42 = vpop.permute.xlu1 %2333 }
  0xc9   : > { %v2336_v40 = vsel %vm829_vm6, %v2330_v36, %v2332_v37  ;;  %v2335_v44 = vsel %vm829_vm6, %v2332_v37, %v2334_v42  ;;  %v2337_v45 = vsel %vm829_vm6, %v2334_v42, %v2330_v36 }
  0xcb   : > { %6702 = vmatmul.mubr.msk.f32.vlgmr.msra.gmra.mrb[0].mxu1 %vm349_vm3, %v7492_v23  ;;  %5267 = vrot.lane.b32.xlu1 %v7409_v58, %s7005_s12 }
  0xcc   : > { %6705 = vmatpush3.msk.msra.mxu1 %vm353_vm2, %v1864_v25  ;;  %6426 = vmatmul.mubr.msk.f32.vlgmr.msra.gmra.mrb[0].mxu0 %vm349_vm3, %v7492_v23  ;;  %v2644_v43 = vpop.permute.xlu0 %2643  ;;  %v2646_v46 = vpop.permute.xlu1 %2645 }
  0xcd   : > { %6435 = vmatpush1.msk.msra.mxu0 %vm353_vm2, %v1866_v26  ;;  %6706 = vmatprep.mubr.msk.f32.mxu1 %vm7001_vm0, %v7000_v0  ;;  %v2647_v51 = vsel %vm1148_vm7, %v2644_v43, %v2646_v46 }
  0xce   : > { %1940 = vmatprep.mubr.f32.mxu0 %v7000_v0  ;;  %6439 = vmatprep.subr.msk.mxu0 %vm353_vm2, %v1856_v29 }
  0xcf   : > { %6707 = vmatmul.mubr.msk.f32.vlgmr.msra.gmra.mrb[2].mxu1 %vm349_vm3, %v7245_v16  ;;  %6709 = vmatprep.subr.mxu1 %v7000_v0 }
  0xd0   : > { %6436 = vmatmul.mubr.msk.f32.vlgmr.msra.gmra.mrb[2].mxu0 %vm349_vm3, %v7245_v16  ;;  %6710 = vmatpush3.msk.msra.mxu1 %vm353_vm2, %v1855_v31  ;;  %v2642_v48 = vpop.permute.xlu0 %2641  ;;  %v2806_v49 = vpop.permute.xlu1 %2805 }
  0xd1   : > { %6440 = vmatpush1.msk.msra.mxu0 %vm353_vm2, %v1857_v32  ;;  %6711 = vmatprep.mubr.msk.f32.mxu1 %vm7001_vm0, %v7000_v0 }
  0xd2   : > { %2090 = vmatprep.mubr.f32.mxu0 %v7000_v0  ;;  %6444 = vmatprep.subr.msk.mxu0 %vm353_vm2, %v2174_v33 }
  0xd3   : > { %6714 = vmatprep.subr.mxu1 %v7000_v0  ;;  %5577 = vrot.lane.b32.xlu0 %v7390_v54, %s7006_s13 }
  0xd4   : > { %5579 = vrot.lane.b32.xlu1 %v7409_v58, %s7006_s13  ;;  %v2808_v50 = vpop.permute.xlu0 %2807 }
  0xd5   : > { %v2809_v57 = vsel %vm1314_vm8, %v2806_v49, %v2808_v50 }
  0xd7   : > { %6712 = vmatmul.mubr.msk.f32.vlgmr.msra.gmra.mrb[2].mxu1 %vm349_vm3, %v7279_v27  ;;  %5575 = vrot.lane.b32.xlu0 %v7383_v53, %s7006_s13 }
  0xd8   : > { %6441 = vmatmul.mubr.msk.f32.vlgmr.msra.gmra.mrb[2].mxu0 %vm349_vm3, %v7279_v27  ;;  %6715 = vmatpush3.msk.msra.mxu1 %vm353_vm2, %v2173_v38  ;;  %v2968_v52 = vpop.permute.xlu0 %2967 }
  0xd9   : > { %6445 = vmatpush1.msk.msra.mxu0 %vm353_vm2, %v2175_v39  ;;  %6716 = vmatprep.mubr.msk.f32.mxu1 %vm7001_vm0, %v7000_v0 }
  0xda   : > { %2249 = vmatprep.mubr.f32.mxu0 %v7000_v0  ;;  %6449 = vmatprep.subr.msk.mxu0 %vm353_vm2, %v2336_v40 }
  0xdb   : > { %6719 = vmatprep.subr.mxu1 %v7000_v0  ;;  %5739 = vrot.lane.b32.xlu1 %v7390_v54, %s7007_s14 }
  0xdc   : > { %5741 = vrot.lane.b32.xlu0 %v7409_v58, %s7007_s14  ;;  %v2966_v59 = vpop.permute.xlu0 %2965 }
  0xdd   : > { %v2972_v13 = vsel %vm1480_vm9, %v2966_v59, %v2968_v52 }
  0xdf   : > { %6717 = vmatmul.mubr.msk.f32.vlgmr.msra.gmra.mrb[2].mxu1 %vm349_vm3, %v7310_v35  ;;  %5737 = vrot.lane.b32.xlu1 %v7383_v53, %s7007_s14  ;;  %s6374_s14 = sshll.u32 %s8022_s2, 3 }
  0xe0   : > { %6446 = vmatmul.mubr.msk.f32.vlgmr.msra.gmra.mrb[2].mxu0 %vm349_vm3, %v7310_v35  ;;  %6720 = vmatpush3.msk.msra.mxu1 %vm353_vm2, %v2335_v44  ;;  %v3132_v2 = vpop.permute.xlu0 %3131  ;;  %s299_s20 = scalar_lea.vmem %s8020_s7, %s6374_s14 }
  0xe1   : > { %6450 = vmatpush1.msk.msra.mxu0 %vm353_vm2, %v2337_v45  ;;  %6721 = vmatprep.mubr.msk.f32.mxu1 %vm7001_vm0, %v7000_v0 }
  0xe2   : > { %2411 = vmatprep.mubr.f32.mxu0 %v7000_v0  ;;  %6454 = vmatprep.subr.msk.mxu0 %vm353_vm2, %v7151_v5  ;;  %v2804_v5 = vpop.permute.xlu1 %2803 }
  0xe3   : > { %6724 = vmatprep.subr.mxu1 %v7000_v0  ;;  %5901 = vrot.lane.b32.xlu0 %v7390_v54, %s7008_s15  ;;  %v2811_v61 = vsel %vm1314_vm8, %v2808_v50, %v2804_v5  ;;  %v2810_v62 = vsel %vm1314_vm8, %v2804_v5, %v2806_v49 }
  0xe4   : > { %5903 = vrot.lane.b32.xlu1 %v7409_v58, %s7008_s15  ;;  %v3326_v14 = vpop.permute.xlu0 %3325 }
  0xe6   : > { %v2970_v55 = vpop.permute.xlu1 %2969 }
  0xe7   : > { %6722 = vmatmul.mubr.msk.f32.vlgmr.msra.gmra.mrb[2].mxu1 %vm349_vm3, %v7340_v41  ;;  %5899 = vrot.lane.b32.xlu0 %v7383_v53, %s7008_s15  ;;  %v2971_v63 = vsel %vm1480_vm9, %v2968_v52, %v2970_v55  ;;  %v2973_v12 = vsel %vm1480_vm9, %v2970_v55, %v2966_v59 }
  0xe8   : > { %6451 = vmatmul.mubr.msk.f32.vlgmr.msra.gmra.mrb[2].mxu0 %vm349_vm3, %v7340_v41  ;;  %6725 = vmatpush3.msk.msra.mxu1 %vm353_vm2, %v7158_v6  ;;  %v2648_v6 = vsel %vm1148_vm7, %v2642_v48, %v2644_v43  ;;  %v3330_v19 = vpop.permute.xlu0 %3329 }
  0xe9   : > { %6455 = vmatpush1.msk.msra.mxu0 %vm353_vm2, %v7143_v4  ;;  %6726 = vmatprep.mubr.msk.f32.mxu1 %vm7001_vm0, %v7000_v0  ;;  %v2649_v4 = vsel %vm1148_vm7, %v2646_v46, %v2642_v48  ;;  %v3333_v29 = vsel %vm345_vm1, %v3330_v19, %v3326_v14 }
  0xea   : > { %2561 = vmatprep.mubr.f32.mxu0 %v7000_v0  ;;  %6459 = vmatprep.subr.msk.mxu0 %vm353_vm2, %v2647_v51  ;;  %v3130_v60 = vpop.permute.xlu1 %3129 }
  0xeb   : > { %6729 = vmatprep.subr.mxu1 %v7000_v0  ;;  %6063 = vrot.lane.b32.xlu1 %v7390_v54, %s7009_s16  ;;  %v3133_v17 = vsel %vm1646_vm10, %v3130_v60, %v3132_v2 }
  0xec   : > { %6065 = vrot.lane.b32.xlu0 %v7409_v58, %s7009_s16  ;;  %v3319_v25 = vpop.permute.xlu0 %3318 }
  0xee   : > { %v3128_v3 = vpop.permute.xlu1 %3127 }
  0xef   : > { %6727 = vmatmul.mubr.msk.f32.vlgmr.msra.gmra.mrb[2].mxu1 %vm349_vm3, %v7367_v47  ;;  %6061 = vrot.lane.b32.xlu1 %v7383_v53, %s7009_s16  ;;  %v3135_v20 = vsel %vm1646_vm10, %v3132_v2, %v3128_v3  ;;  %v3134_v21 = vsel %vm1646_vm10, %v3128_v3, %v3130_v60  ;;  %s295_s16 = scalar_lea.vmem %s8019_s6, %s6374_s14 }
  0xf0   : > { %6456 = vmatmul.mubr.msk.f32.vlgmr.msra.gmra.mrb[2].mxu0 %vm349_vm3, %v7367_v47  ;;  %6730 = vmatpush3.msk.msra.mxu1 %vm353_vm2, %v2649_v4  ;;  %v3635_v30 = vpop.permute.xlu0 %3634 }
  0xf1   : > { %6460 = vmatpush1.msk.msra.mxu0 %vm353_vm2, %v2648_v6  ;;  %6731 = vmatprep.mubr.msk.f32.mxu1 %vm7001_vm0, %v7000_v0 }
  0xf2   : > { %2723 = vmatprep.mubr.f32.mxu0 %v7000_v0  ;;  %6464 = vmatprep.subr.msk.mxu0 %vm353_vm2, %v2809_v57  ;;  %v3328_v18 = vpop.permute.xlu1 %3327 }
  0xf3   : > { %6734 = vmatprep.subr.mxu1 %v7000_v0  ;;  %v3332_v24 = vsel %vm345_vm1, %v3326_v14, %v3328_v18  ;;  %v3331_v28 = vsel %vm345_vm1, %v3328_v18, %v3330_v19 }
  0xf4   : > { %v3639_v37 = vpop.permute.xlu0 %3638 }
  0xf5   : > { %v3642_v42 = vsel %vm663_vm5, %v3639_v37, %v3635_v30 }
  0xf6   : > { %v3317_v22 = vpop.permute.xlu1 %3316 }
  0xf7   : > { %6732 = vmatmul.mubr.msk.f32.vlgmr.msra.gmra.mrb[2].mxu1 %vm349_vm3, %v7403_v56  ;;  %v3323_v31 = vsel %vm335_vm4, %v3317_v22, %v3319_v25 }
  0xf8   : > { %6461 = vmatmul.mubr.msk.f32.vlgmr.msra.gmra.mrb[2].mxu0 %vm349_vm3, %v7403_v56  ;;  %6735 = vmatpush3.msk.msra.mxu1 %vm353_vm2, %v2811_v61  ;;  %v3799_v39 = vpop.permute.xlu0 %3798 }
  0xf9   : > { %6465 = vmatpush1.msk.msra.mxu0 %vm353_vm2, %v2810_v62  ;;  %6736 = vmatprep.mubr.msk.f32.mxu1 %vm7001_vm0, %v7000_v0 }
  0xfa   : > { %2885 = vmatprep.mubr.f32.mxu0 %v7000_v0  ;;  %6469 = vmatprep.subr.msk.mxu0 %vm353_vm2, %v2971_v63  ;;  %v3321_v26 = vpop.permute.xlu1 %3320 }
  0xfb   : > { %6739 = vmatprep.subr.mxu1 %v7000_v0  ;;  %v3322_v33 = vsel %vm335_vm4, %v3319_v25, %v3321_v26  ;;  %v3324_v34 = vsel %vm335_vm4, %v3321_v26, %v3317_v22 }
  0xfe   : > { %v3637_v32 = vpop.permute.xlu1 %3636 }
  0xff   : > { %6737 = vmatmul.mubr.msk.f32.vlgmr.msra.gmra.mrb[2].mxu1 %vm349_vm3, %v7435_v1  ;;  %v3641_v36 = vsel %vm663_vm5, %v3635_v30, %v3637_v32  ;;  %v3640_v40 = vsel %vm663_vm5, %v3637_v32, %v3639_v37  ;;  %v7837_v32 = vld [vmem:[%s7074_s8] sm:$0xff] }
 0x100   : > { %6466 = vmatmul.mubr.msk.f32.vlgmr.msra.gmra.mrb[2].mxu0 %vm349_vm3, %v7435_v1  ;;  %6740 = vmatpush3.msk.msra.mxu1 %vm353_vm2, %v2973_v12 }
 0x101   : > { %6470 = vmatpush1.msk.msra.mxu0 %vm353_vm2, %v2972_v13  ;;  %6741 = vmatprep.mubr.msk.f32.mxu1 %vm7001_vm0, %v7000_v0 }
 0x102   : > { %3047 = vmatprep.mubr.f32.mxu0 %v7000_v0  ;;  %6474 = vmatprep.subr.msk.mxu0 %vm353_vm2, %v3133_v17  ;;  %v3797_v38 = vpop.permute.xlu1 %3796  ;;  %v4111_v45 = vpop.permute.xlu0 %4110 }
 0x103   : > { %6744 = vmatprep.subr.mxu1 %v7000_v0  ;;  %v3803_v43 = vsel %vm829_vm6, %v3797_v38, %v3799_v39 }
 0x106   : > { %v3801_v44 = vpop.permute.xlu1 %3800 }
 0x107   : > { %6742 = vmatmul.mubr.msk.f32.vlgmr.msra.gmra.mrb[2].mxu1 %vm349_vm3, %v7464_v15  ;;  %v3802_v46 = vsel %vm829_vm6, %v3799_v39, %v3801_v44  ;;  %v3804_v48 = vsel %vm829_vm6, %v3801_v44, %v3797_v38  ;;  %v4109_v50 = vpop.permute.xlu0 %4108 }
 0x108   : > { %6471 = vmatmul.mubr.msk.f32.vlgmr.msra.gmra.mrb[2].mxu0 %vm349_vm3, %v7464_v15  ;;  %6745 = vmatpush3.msk.msra.mxu1 %vm353_vm2, %v3135_v20 }
 0x109   : > { %6475 = vmatpush1.msk.msra.mxu0 %vm353_vm2, %v3134_v21  ;;  %6746 = vmatprep.mubr.msk.f32.mxu1 %vm7001_vm0, %v7000_v0 }
 0x10a   : > { %6484 = vmatprep.subr.msk.mxu0 %vm353_vm2, %v3332_v24  ;;  %6749 = vmatprep.subr.mxu1 %v7000_v0  ;;  %v4113_v49 = vpop.permute.xlu1 %4112 }
 0x10b   : > { %3209 = vmatprep.mubr.f32.mxu0 %v7000_v0  ;;  %v4275_v5 = vpop.permute.xlu0 %4274  ;;  %v4114_v52 = vsel %vm1148_vm7, %v4111_v45, %v4113_v49  ;;  %v4116_v6 = vsel %vm1148_vm7, %v4113_v49, %v4109_v50 }
 0x10e   : > { %v4273_v51 = vpop.permute.xlu1 %4272 }
 0x10f   : > { %6747 = vmatmul.mubr.msk.f32.vlgmr.msra.gmra.mrb[2].mxu1 %vm349_vm3, %v7492_v23 }
 0x110   : > { %6750 = vmatpush3.msk.msra.mxu1 %vm353_vm2, %v3331_v28  ;;  %6476 = vmatmul.mubr.msk.f32.vlgmr.msra.gmra.mrb[2].mxu0 %vm349_vm3, %v7492_v23 }
 0x111   : > { %6485 = vmatpush1.msk.msra.mxu0 %vm353_vm2, %v3333_v29  ;;  %6751 = vmatprep.mubr.msk.f32.mxu1 %vm7001_vm0, %v7000_v0  ;;  %v4435_v4 = vpop.permute.xlu0 %4434 }
 0x112   : > { %3407 = vmatprep.mubr.f32.mxu0 %v7000_v0  ;;  %6489 = vmatprep.subr.msk.mxu0 %vm353_vm2, %v3323_v31 }
 0x113   : > { %6752 = vmatmul.mubr.msk.f32.vlgmr.msra.gmra.mrb[4].mxu1 %vm349_vm3, %v7245_v16  ;;  %6754 = vmatprep.subr.mxu1 %v7000_v0 }
 0x114   : > { %6486 = vmatmul.mubr.msk.f32.vlgmr.msra.gmra.mrb[4].mxu0 %vm349_vm3, %v7245_v16  ;;  %6755 = vmatpush3.msk.msra.mxu1 %vm353_vm2, %v3322_v33 }
 0x115   : > { %6490 = vmatpush1.msk.msra.mxu0 %vm353_vm2, %v3324_v34  ;;  %6756 = vmatprep.mubr.msk.f32.mxu1 %vm7001_vm0, %v7000_v0  ;;  %v4433_v57 = vpop.permute.xlu0 %4432 }
 0x116   : > { %3557 = vmatprep.mubr.f32.mxu0 %v7000_v0  ;;  %6494 = vmatprep.subr.msk.mxu0 %vm353_vm2, %v3641_v36  ;;  %v4439_v12 = vsel %vm1480_vm9, %v4433_v57, %v4435_v4 }
 0x117   : > { %6759 = vmatprep.subr.mxu1 %v7000_v0 }
 0x11a   : > { %v4599_v63 = vpop.permute.xlu0 %4598 }
 0x11b   : > { %6757 = vmatmul.mubr.msk.f32.vlgmr.msra.gmra.mrb[4].mxu1 %vm349_vm3, %v7279_v27 }
 0x11c   : > { %6491 = vmatmul.mubr.msk.f32.vlgmr.msra.gmra.mrb[4].mxu0 %vm349_vm3, %v7279_v27  ;;  %6760 = vmatpush3.msk.msra.mxu1 %vm353_vm2, %v3640_v40 }
 0x11d   : > { %6495 = vmatpush1.msk.msra.mxu0 %vm353_vm2, %v3642_v42  ;;  %6761 = vmatprep.mubr.msk.f32.mxu1 %vm7001_vm0, %v7000_v0 }
 0x11e   : > { %3716 = vmatprep.mubr.f32.mxu0 %v7000_v0  ;;  %6499 = vmatprep.subr.msk.mxu0 %vm353_vm2, %v3803_v43 }
 0x11f   : > { %6764 = vmatprep.subr.mxu1 %v7000_v0 }
 0x121   : > { %v4793_v13 = vpop.permute.xlu0 %4792 }
 0x123   : > { %6762 = vmatmul.mubr.msk.f32.vlgmr.msra.gmra.mrb[4].mxu1 %vm349_vm3, %v7310_v35 }
 0x124   : > { %6496 = vmatmul.mubr.msk.f32.vlgmr.msra.gmra.mrb[4].mxu0 %vm349_vm3, %v7310_v35  ;;  %6765 = vmatpush3.msk.msra.mxu1 %vm353_vm2, %v3802_v46 }
 0x125   : > { %6500 = vmatpush1.msk.msra.mxu0 %vm353_vm2, %v3804_v48  ;;  %6766 = vmatprep.mubr.msk.f32.mxu1 %vm7001_vm0, %v7000_v0  ;;  %v4797_v18 = vpop.permute.xlu0 %4796 }
 0x126   : > { %3878 = vmatprep.mubr.f32.mxu0 %v7000_v0  ;;  %6504 = vmatprep.subr.msk.mxu0 %vm353_vm2, %v7209_v8  ;;  %v4271_v8 = vpop.permute.xlu1 %4270  ;;  %v4800_v28 = vsel %vm345_vm1, %v4797_v18, %v4793_v13 }
 0x127   : > { %6769 = vmatprep.subr.mxu1 %v7000_v0  ;;  %v4278_v60 = vsel %vm1314_vm8, %v4275_v5, %v4271_v8  ;;  %v4277_v61 = vsel %vm1314_vm8, %v4271_v8, %v4273_v51 }
 0x12a   : > { %v4437_v55 = vpop.permute.xlu1 %4436  ;;  %v4786_v24 = vpop.permute.xlu0 %4785 }
 0x12b   : > { %6767 = vmatmul.mubr.msk.f32.vlgmr.msra.gmra.mrb[4].mxu1 %vm349_vm3, %v7340_v41  ;;  %v4438_v62 = vsel %vm1480_vm9, %v4435_v4, %v4437_v55  ;;  %v4440_v3 = vsel %vm1480_vm9, %v4437_v55, %v4433_v57 }
 0x12c   : > { %6501 = vmatmul.mubr.msk.f32.vlgmr.msra.gmra.mrb[4].mxu0 %vm349_vm3, %v7340_v41  ;;  %6770 = vmatpush3.msk.msra.mxu1 %vm353_vm2, %v7216_v9  ;;  %v4115_v9 = vsel %vm1148_vm7, %v4109_v50, %v4111_v45 }
 0x12d   : > { %6505 = vmatpush1.msk.msra.mxu0 %vm353_vm2, %v7201_v7  ;;  %6771 = vmatprep.mubr.msk.f32.mxu1 %vm7001_vm0, %v7000_v0  ;;  %v4276_v7 = vsel %vm1314_vm8, %v4273_v51, %v4275_v5 }
 0x12e   : > { %4028 = vmatprep.mubr.f32.mxu0 %v7000_v0  ;;  %6509 = vmatprep.subr.msk.mxu0 %vm353_vm2, %v4114_v52  ;;  %v4597_v59 = vpop.permute.xlu1 %4596 }
 0x12f   : > { %6774 = vmatprep.subr.mxu1 %v7000_v0  ;;  %v4600_v14 = vsel %vm1646_vm10, %v4597_v59, %v4599_v63 }
 0x131   : > { %v5102_v29 = vpop.permute.xlu0 %5101 }
 0x132   : > { %v4595_v2 = vpop.permute.xlu1 %4594 }
 0x133   : > { %6772 = vmatmul.mubr.msk.f32.vlgmr.msra.gmra.mrb[4].mxu1 %vm349_vm3, %v7367_v47  ;;  %v4602_v19 = vsel %vm1646_vm10, %v4599_v63, %v4595_v2  ;;  %v4601_v20 = vsel %vm1646_vm10, %v4595_v2, %v4597_v59  ;;  %v1808_v59 = vshrl.u32 %v333_v10, 7 }
 0x134   : > { %6506 = vmatmul.mubr.msk.f32.vlgmr.msra.gmra.mrb[4].mxu0 %vm349_vm3, %v7367_v47  ;;  %6775 = vmatpush3.msk.msra.mxu1 %vm353_vm2, %v4116_v6 }
 0x135   : > { %6510 = vmatpush1.msk.msra.mxu0 %vm353_vm2, %v4115_v9  ;;  %6776 = vmatprep.mubr.msk.f32.mxu1 %vm7001_vm0, %v7000_v0  ;;  %v5106_v36 = vpop.permute.xlu0 %5105  ;;  %v1817_v11 = vsub.s32 2, %v1808_v59 }
 0x136   : > { %4190 = vmatprep.mubr.f32.mxu0 %v7000_v0  ;;  %6514 = vmatprep.subr.msk.mxu0 %vm353_vm2, %v4276_v7  ;;  %v4795_v17 = vpop.permute.xlu1 %4794 }
 0x137   : > { %6779 = vmatprep.subr.mxu1 %v7000_v0  ;;  %v4799_v22 = vsel %vm345_vm1, %v4793_v13, %v4795_v17  ;;  %v4798_v26 = vsel %vm345_vm1, %v4795_v17, %v4797_v18 }
 0x13a   : > { %v4784_v21 = vpop.permute.xlu1 %4783  ;;  %v5266_v37 = vpop.permute.xlu0 %5265 }
 0x13b   : > { %6777 = vmatmul.mubr.msk.f32.vlgmr.msra.gmra.mrb[4].mxu1 %vm349_vm3, %v7403_v56  ;;  %v4790_v30 = vsel %vm335_vm4, %v4784_v21, %v4786_v24 }
 0x13c   : > { %6511 = vmatmul.mubr.msk.f32.vlgmr.msra.gmra.mrb[4].mxu0 %vm349_vm3, %v7403_v56  ;;  %6780 = vmatpush3.msk.msra.mxu1 %vm353_vm2, %v4278_v60  ;;  %v1809_v60 = vsub.s32 0, %v1808_v59 }
 0x13d   : > { %6515 = vmatpush1.msk.msra.mxu0 %vm353_vm2, %v4277_v61  ;;  %6781 = vmatprep.mubr.msk.f32.mxu1 %vm7001_vm0, %v7000_v0  ;;  %v1813_v61 = vsub.s32 1, %v1808_v59 }
 0x13e   : > { %4352 = vmatprep.mubr.f32.mxu0 %v7000_v0  ;;  %6519 = vmatprep.subr.msk.mxu0 %vm353_vm2, %v4438_v62  ;;  %v4788_v25 = vpop.permute.xlu1 %4787 }
 0x13f   : > { %6784 = vmatprep.subr.mxu1 %v7000_v0  ;;  %v4789_v31 = vsel %vm335_vm4, %v4786_v24, %v4788_v25  ;;  %v4791_v33 = vsel %vm335_vm4, %v4788_v25, %v4784_v21 }
 0x143   : > { %6782 = vmatmul.mubr.msk.f32.vlgmr.msra.gmra.mrb[4].mxu1 %vm349_vm3, %v7435_v1 }
 0x144   : > { %6516 = vmatmul.mubr.msk.f32.vlgmr.msra.gmra.mrb[4].mxu0 %vm349_vm3, %v7435_v1  ;;  %6785 = vmatpush3.msk.msra.mxu1 %vm353_vm2, %v4440_v3 }
 0x145   : > { %6520 = vmatpush1.msk.msra.mxu0 %vm353_vm2, %v4439_v12  ;;  %6786 = vmatprep.mubr.msk.f32.mxu1 %vm7001_vm0, %v7000_v0  ;;  %v5578_v44 = vpop.permute.xlu0 %5577 }
 0x146   : > { %4514 = vmatprep.mubr.f32.mxu0 %v7000_v0  ;;  %6524 = vmatprep.subr.msk.mxu0 %vm353_vm2, %v4600_v14 }
 0x147   : > { %6789 = vmatprep.subr.mxu1 %v7000_v0 }
 0x149   : > { %v5576_v46 = vpop.permute.xlu0 %5575 }
 0x14b   : > { %6787 = vmatmul.mubr.msk.f32.vlgmr.msra.gmra.mrb[4].mxu1 %vm349_vm3, %v7464_v15 }
 0x14c   : > { %6521 = vmatmul.mubr.msk.f32.vlgmr.msra.gmra.mrb[4].mxu0 %vm349_vm3, %v7464_v15  ;;  %6790 = vmatpush3.msk.msra.mxu1 %vm353_vm2, %v4602_v19 }
 0x14d   : > { %6525 = vmatpush1.msk.msra.mxu0 %vm353_vm2, %v4601_v20  ;;  %6791 = vmatprep.mubr.msk.f32.mxu1 %vm7001_vm0, %v7000_v0 }
 0x14e   : > { %6534 = vmatprep.subr.msk.mxu0 %vm353_vm2, %v4799_v22  ;;  %6794 = vmatprep.subr.mxu1 %v7000_v0  ;;  %v5742_v48 = vpop.permute.xlu0 %5741 }
 0x14f   : > { %4676 = vmatprep.mubr.f32.mxu0 %v7000_v0  ;;  %v5104_v0 = vpop.permute.xlu1 %5103 }
 0x150   : > { %v5108_v34 = vsel %vm663_vm5, %v5102_v29, %v5104_v0  ;;  %v5107_v38 = vsel %vm663_vm5, %v5104_v0, %v5106_v36 }
 0x153   : > { %6792 = vmatmul.mubr.msk.f32.vlgmr.msra.gmra.mrb[4].mxu1 %vm349_vm3, %v7492_v23  ;;  %v5264_v39 = vpop.permute.xlu1 %5263 }
 0x154   : > { %6795 = vmatpush3.msk.msra.mxu1 %vm353_vm2, %v4798_v26  ;;  %6526 = vmatmul.mubr.msk.f32.vlgmr.msra.gmra.mrb[4].mxu0 %vm349_vm3, %v7492_v23  ;;  %v5270_v40 = vsel %vm829_vm6, %v5264_v39, %v5266_v37 }
 0x155   : > { %6535 = vmatpush1.msk.msra.mxu0 %vm353_vm2, %v4800_v28  ;;  %6796 = vmatprep.mubr.msk.f32.mxu1 %vm7001_vm0, %v7837_v32  ;;  %v5902_v50 = vpop.permute.xlu0 %5901 }
 0x156   : > { %4874 = vmatprep.mubr.f32.mxu0 %v7837_v32  ;;  %6539 = vmatprep.subr.msk.mxu0 %vm353_vm2, %v4790_v30 }
 0x157   : > { %6797 = vmatmul.mubr.msk.f32.vlgmr.msra.gmra.mrb[6].mxu1 %vm349_vm3, %v7245_v16  ;;  %6799 = vmatprep.subr.mxu1 %v7837_v32  ;;  %v5268_v42 = vpop.permute.xlu1 %5267 }
 0x158   : > { %6536 = vmatmul.mubr.msk.f32.vlgmr.msra.gmra.mrb[6].mxu0 %vm349_vm3, %v7245_v16  ;;  %6800 = vmatpush3.msk.msra.mxu1 %vm353_vm2, %v4789_v31  ;;  %v5109_v16 = vsel %vm663_vm5, %v5106_v36, %v5102_v29  ;;  %v5269_v43 = vsel %vm829_vm6, %v5266_v37, %v5268_v42 }
 0x159   : > { %6540 = vmatpush1.msk.msra.mxu0 %vm353_vm2, %v4791_v33  ;;  %6801 = vmatprep.mubr.msk.f32.mxu1 %vm7001_vm0, %v7837_v32  ;;  %v5900_v8 = vpop.permute.xlu0 %5899 }
 0x15a   : > { %5024 = vmatprep.mubr.f32.mxu0 %v7837_v32  ;;  %6544 = vmatprep.subr.msk.mxu0 %vm353_vm2, %v5108_v34 }
 0x15b   : > { %6804 = vmatprep.subr.mxu1 %v7837_v32  ;;  %v5580_v45 = vpop.permute.xlu1 %5579 }
 0x15e   : > { %v6066_v4 = vpop.permute.xlu0 %6065 }
 0x15f   : > { %6802 = vmatmul.mubr.msk.f32.vlgmr.msra.gmra.mrb[6].mxu1 %vm349_vm3, %v7279_v27 }
 0x160   : > { %6541 = vmatmul.mubr.msk.f32.vlgmr.msra.gmra.mrb[6].mxu0 %vm349_vm3, %v7279_v27  ;;  %6805 = vmatpush3.msk.msra.mxu1 %vm353_vm2, %v5107_v38  ;;  %v5271_v27 = vsel %vm829_vm6, %v5268_v42, %v5264_v39 }
 0x161   : > { %6545 = vmatpush1.msk.msra.mxu0 %vm353_vm2, %v5109_v16  ;;  %6806 = vmatprep.mubr.msk.f32.mxu1 %vm7001_vm0, %v7837_v32 }
 0x162   : > { %5183 = vmatprep.mubr.f32.mxu0 %v7837_v32  ;;  %6549 = vmatprep.subr.msk.mxu0 %vm353_vm2, %v5270_v40 }
 0x163   : > { %6809 = vmatprep.subr.mxu1 %v7837_v32 }
 0x167   : > { %6807 = vmatmul.mubr.msk.f32.vlgmr.msra.gmra.mrb[6].mxu1 %vm349_vm3, %v7310_v35 }
 0x168   : > { %6546 = vmatmul.mubr.msk.f32.vlgmr.msra.gmra.mrb[6].mxu0 %vm349_vm3, %v7310_v35  ;;  %6810 = vmatpush3.msk.msra.mxu1 %vm353_vm2, %v5269_v43  ;;  %v5581_v35 = vsel %vm1148_vm7, %v5578_v44, %v5580_v45 }
 0x169   : > { %6550 = vmatpush1.msk.msra.mxu0 %vm353_vm2, %v5271_v27  ;;  %6811 = vmatprep.mubr.msk.f32.mxu1 %vm7001_vm0, %v7837_v32 }
 0x16a   : > { %5345 = vmatprep.mubr.f32.mxu0 %v7837_v32  ;;  %6554 = vmatprep.subr.msk.mxu0 %vm353_vm2, %v7390_v54  ;;  %v5740_v54 = vpop.permute.xlu1 %5739 }
 0x16b   : > { %6814 = vmatprep.subr.mxu1 %v7837_v32 }
 0x16e   : > { %v5738_v49 = vpop.permute.xlu1 %5737 }
 0x16f   : > { %6812 = vmatmul.mubr.msk.f32.vlgmr.msra.gmra.mrb[6].mxu1 %vm349_vm3, %v7340_v41  ;;  %v5745_v5 = vsel %vm1314_vm8, %v5742_v48, %v5738_v49 }
 0x170   : > { %6551 = vmatmul.mubr.msk.f32.vlgmr.msra.gmra.mrb[6].mxu0 %vm349_vm3, %v7340_v41  ;;  %6815 = vmatpush3.msk.msra.mxu1 %vm353_vm2, %v7409_v58  ;;  %v5583_v41 = vsel %vm1148_vm7, %v5580_v45, %v5576_v46  ;;  %v5582_v58 = vsel %vm1148_vm7, %v5576_v46, %v5578_v44 }
 0x171   : > { %6555 = vmatpush1.msk.msra.mxu0 %vm353_vm2, %v7383_v53  ;;  %6816 = vmatprep.mubr.msk.f32.mxu1 %vm7001_vm0, %v7837_v32  ;;  %v5743_v53 = vsel %vm1314_vm8, %v5740_v54, %v5742_v48 }
 0x172   : > { %5495 = vmatprep.mubr.f32.mxu0 %v7837_v32  ;;  %6559 = vmatprep.subr.msk.mxu0 %vm353_vm2, %v5581_v35  ;;  %v5904_v51 = vpop.permute.xlu1 %5903 }
 0x173   : > { %6819 = vmatprep.subr.mxu1 %v7837_v32  ;;  %v5905_v52 = vsel %vm1480_vm9, %v5902_v50, %v5904_v51  ;;  %v5907_v6 = vsel %vm1480_vm9, %v5904_v51, %v5900_v8 }
 0x176   : > { %v6064_v9 = vpop.permute.xlu1 %6063 }
 0x177   : > { %6817 = vmatmul.mubr.msk.f32.vlgmr.msra.gmra.mrb[6].mxu1 %vm349_vm3, %v7367_v47  ;;  %v6067_v55 = vsel %vm1646_vm10, %v6064_v9, %v6066_v4 }
 0x178   : > { %6556 = vmatmul.mubr.msk.f32.vlgmr.msra.gmra.mrb[6].mxu0 %vm349_vm3, %v7367_v47  ;;  %6820 = vmatpush3.msk.msra.mxu1 %vm353_vm2, %v5583_v41  ;;  %v5744_v47 = vsel %vm1314_vm8, %v5738_v49, %v5740_v54 }
 0x179   : > { %6560 = vmatpush1.msk.msra.mxu0 %vm353_vm2, %v5582_v58  ;;  %6821 = vmatprep.mubr.msk.f32.mxu1 %vm7001_vm0, %v7837_v32 }
 0x17a   : > { %5657 = vmatprep.mubr.f32.mxu0 %v7837_v32  ;;  %6564 = vmatprep.subr.msk.mxu0 %vm353_vm2, %v5743_v53  ;;  %v6062_v7 = vpop.permute.xlu1 %6061 }
 0x17b   : > { %6824 = vmatprep.subr.mxu1 %v7837_v32  ;;  %v6069_v57 = vsel %vm1646_vm10, %v6066_v4, %v6062_v7 }
 0x17f   : > { %6822 = vmatmul.mubr.msk.f32.vlgmr.msra.gmra.mrb[6].mxu1 %vm349_vm3, %v7403_v56 }
 0x180   : > { %6561 = vmatmul.mubr.msk.f32.vlgmr.msra.gmra.mrb[6].mxu0 %vm349_vm3, %v7403_v56  ;;  %6825 = vmatpush3.msk.msra.mxu1 %vm353_vm2, %v5745_v5  ;;  %v5906_v56 = vsel %vm1480_vm9, %v5900_v8, %v5902_v50 }
 0x181   : > { %6565 = vmatpush1.msk.msra.mxu0 %vm353_vm2, %v5744_v47  ;;  %6826 = vmatprep.mubr.msk.f32.mxu1 %vm7001_vm0, %v7837_v32 }
 0x182   : > { %5819 = vmatprep.mubr.f32.mxu0 %v7837_v32  ;;  %6569 = vmatprep.subr.msk.mxu0 %vm353_vm2, %v5905_v52 }
 0x183   : > { %6829 = vmatprep.subr.mxu1 %v7837_v32 }
 0x187   : > { %6827 = vmatmul.mubr.msk.f32.vlgmr.msra.gmra.mrb[6].mxu1 %vm349_vm3, %v7435_v1 }
 0x188   : > { %6566 = vmatmul.mubr.msk.f32.vlgmr.msra.gmra.mrb[6].mxu0 %vm349_vm3, %v7435_v1  ;;  %6830 = vmatpush3.msk.msra.mxu1 %vm353_vm2, %v5907_v6  ;;  %v6068_v1 = vsel %vm1646_vm10, %v6062_v7, %v6064_v9 }
 0x189   : > { %6570 = vmatpush1.msk.msra.mxu0 %vm353_vm2, %v5906_v56  ;;  %6831 = vmatprep.mubr.msk.f32.mxu1 %vm7001_vm0, %v7837_v32 }
 0x18a   : > { %5981 = vmatprep.mubr.f32.mxu0 %v7837_v32  ;;  %6574 = vmatprep.subr.msk.mxu0 %vm353_vm2, %v6067_v55 }
 0x18b   : > { %6834 = vmatprep.subr.mxu1 %v7837_v32 }
 0x18f   : > { %6832 = vmatmul.mubr.msk.f32.vlgmr.msra.gmra.mrb[6].mxu1 %vm349_vm3, %v7464_v15 }
 0x190   : > { %6571 = vmatmul.mubr.msk.f32.vlgmr.msra.gmra.mrb[6].mxu0 %vm349_vm3, %v7464_v15  ;;  %6835 = vmatpush3.msk.msra.mxu1 %vm353_vm2, %v6069_v57  ;;  %v300_v15 = vld [vmem:[%s8017_s4] sm:$0x7] }
 0x191   : > { %6575 = vmatpush1.msk.msra.mxu0 %vm353_vm2, %v6068_v1  ;;  %6836 = vmatprep.mubr.msk.f32.mxu1 %vm7001_vm0, %v7837_v32  ;;  %v1818_v62 = vrot.slane %v300_v15, %v1817_v11  ;;  %v7979_v63 = vrot.slane %v300_v15, %v1809_v60  ;;  %v7981_v10 = vrot.slane %v300_v15, %v1813_v61 }
 0x192   : > { %6143 = vmatprep.mubr.f32.mxu0 %v7837_v32 }
 0x197   : > { %6837 = vmatmul.mubr.msk.f32.vlgmr.msra.gmra.mrb[6].mxu1 %vm349_vm3, %v7492_v23 }
 0x198   : > { %6576 = vmatmul.mubr.msk.f32.vlgmr.msra.gmra.mrb[6].mxu0 %vm349_vm3, %v7492_v23 }
 0x19e   : > { %v1799_v2 = vpop.f32.mrb[0].mxu1 }
 0x19f   : > { %v1824_v3 = vmul.f32 %v1818_v62, %v1799_v2  ;;  %v1728_v12 = vpop.f32.mrb[0].mxu0  ;;  %v6703_v13 = vpop.f32.mrb[1].mxu1 }
 0x1a0   : > { %v1822_v14 = vmul.f32 %v7979_v63, %v1728_v12  ;;  %v1730_v17 = vpop.f32.mrb[1].mxu0 }
 0x1a1   : > { %6431 = vst [vmem:[%s7074_s8 + $0x28] sm:$0xff] %v1824_v3  ;;  %v1823_v23 = vmul.f32 %v7981_v10, %v1730_v17  ;;  %v1836_v22 = vmul.f32 %v1824_v3, %v1824_v3 }
 0x1a2   : > { %6429 = vst [vmem:[%s7074_s8 + $0x18] sm:$0xff] %v1822_v14  ;;  %v1834_v18 = vmul.f32 %v1822_v14, %v1822_v14 }
 0x1a3   : > { %6430 = vst [vmem:[%s7074_s8 + $0x20] sm:$0xff] %v1823_v23  ;;  %v1835_v19 = vmul.f32 %v1823_v23, %v1823_v23  ;;  %v1829_v20 = vadd.f32 %v1823_v23, %v1822_v14 }
 0x1a5   : > { %v1830_v21 = vadd.f32 %v1829_v20, %v1824_v3  ;;  %v1837_v24 = vadd.f32 %v1835_v19, %v1834_v18 }
 0x1a7   : > { %1831 = vadd.xlane.f32.xlu0 %v1830_v21  ;;  %v1838_v25 = vadd.f32 %v1837_v24, %v1836_v22 }
 0x1a9   : > { %1839 = vadd.xlane.f32.xlu1 %v1838_v25 }
 0x1e2   : > { %v3282_v26 = vpop.f32.mrb[2].mxu1 }
 0x1e3   : > { %v3291_v28 = vmul.f32 %v3282_v26, %v1818_v62  ;;  %v3211_v29 = vpop.f32.mrb[2].mxu0  ;;  %v6748_v30 = vpop.f32.mrb[3].mxu1 }
 0x1e4   : > { %v3289_v0 = vmul.f32 %v3211_v29, %v7979_v63  ;;  %v3213_v31 = vpop.f32.mrb[3].mxu0 }
 0x1e5   : > { %6481 = vst [vmem:[%s7074_s8 + $0x40] sm:$0xff] %v3291_v28  ;;  %v3290_v32 = vmul.f32 %v3213_v31, %v7981_v10  ;;  %v3303_v37 = vmul.f32 %v3291_v28, %v3291_v28 }
 0x1e6   : > { %6479 = vst [vmem:[%s7074_s8 + $0x30] sm:$0xff] %v3289_v0  ;;  %v3301_v33 = vmul.f32 %v3289_v0, %v3289_v0 }
 0x1e7   : > { %6480 = vst [vmem:[%s7074_s8 + $0x38] sm:$0xff] %v3290_v32  ;;  %v3296_v34 = vadd.f32 %v3290_v32, %v3289_v0  ;;  %v3302_v36 = vmul.f32 %v3290_v32, %v3290_v32 }
 0x1e9   : > { %v3297_v38 = vadd.f32 %v3296_v34, %v3291_v28  ;;  %v3304_v39 = vadd.f32 %v3302_v36, %v3301_v33 }
 0x1eb   : > { %3298 = vadd.xlane.f32.xlu0 %v3297_v38  ;;  %v3305_v16 = vadd.f32 %v3304_v39, %v3303_v37 }
 0x1ef   : > { %3306 = vadd.xlane.f32.xlu0 %v3305_v16 }
 0x226   : > { %v4749_v40 = vpop.f32.mrb[4].mxu1 }
 0x227   : > { %v4758_v42 = vmul.f32 %v4749_v40, %v1818_v62  ;;  %v4678_v43 = vpop.f32.mrb[4].mxu0  ;;  %v6793_v27 = vpop.f32.mrb[5].mxu1 }
 0x228   : > { %v4756_v44 = vmul.f32 %v4678_v43, %v7979_v63  ;;  %v4680_v45 = vpop.f32.mrb[5].mxu0 }
 0x229   : > { %6531 = vst [vmem:[%s7074_s8 + $0x58] sm:$0xff] %v4758_v42  ;;  %v4757_v35 = vmul.f32 %v4680_v45, %v7981_v10  ;;  %v4770_v41 = vmul.f32 %v4758_v42, %v4758_v42 }
 0x22a   : > { %6529 = vst [vmem:[%s7074_s8 + $0x48] sm:$0xff] %v4756_v44  ;;  %v4768_v46 = vmul.f32 %v4756_v44, %v4756_v44 }
 0x22b   : > { %6530 = vst [vmem:[%s7074_s8 + $0x50] sm:$0xff] %v4757_v35  ;;  %v4763_v54 = vadd.f32 %v4757_v35, %v4756_v44  ;;  %v4769_v48 = vmul.f32 %v4757_v35, %v4757_v35 }
 0x22d   : > { %v4764_v58 = vadd.f32 %v4763_v54, %v4758_v42  ;;  %v4771_v53 = vadd.f32 %v4769_v48, %v4768_v46 }
 0x22f   : > { %4765 = vadd.xlane.f32.xlu1 %v4764_v58  ;;  %v4772_v49 = vadd.f32 %v4771_v53, %v4770_v41 }
 0x231   : > { %4773 = vadd.xlane.f32.xlu0 %v4772_v49 }
 0x234   : > { %v1832_v59 = vpop.xlane.xlu0 %1831 }
 0x236   : > { %v1840_v15 = vpop.xlane.xlu1 %1839 }
 0x26a   : > { %v6216_v50 = vpop.f32.mrb[6].mxu1 }
 0x26b   : > { %v6225_v51 = vmul.f32 %v6216_v50, %v1818_v62  ;;  %v6145_v5 = vpop.f32.mrb[6].mxu0  ;;  %v6838_v47 = vpop.f32.mrb[7].mxu1 }
 0x26c   : > { %v6223_v52 = vmul.f32 %v6145_v5, %v7979_v63  ;;  %v6147_v8 = vpop.f32.mrb[7].mxu0 }
 0x26d   : > { %6581 = vst [vmem:[%s7074_s8 + $0x70] sm:$0xff] %v6225_v51  ;;  %v6224_v4 = vmul.f32 %v6147_v8, %v7981_v10  ;;  %v6237_v55 = vmul.f32 %v6225_v51, %v6225_v51 }
 0x26e   : > { %6579 = vst [vmem:[%s7074_s8 + $0x60] sm:$0xff] %v6223_v52  ;;  %v6235_v6 = vmul.f32 %v6223_v52, %v6223_v52 }
 0x26f   : > { %6580 = vst [vmem:[%s7074_s8 + $0x68] sm:$0xff] %v6224_v4  ;;  %v6230_v9 = vadd.f32 %v6224_v4, %v6223_v52  ;;  %v6236_v56 = vmul.f32 %v6224_v4, %v6224_v4 }
 0x271   : > { %v6231_v7 = vadd.f32 %v6230_v9, %v6225_v51  ;;  %v6238_v57 = vadd.f32 %v6236_v56, %v6235_v6 }
 0x273   : > { %6232 = vadd.xlane.f32.xlu1 %v6231_v7  ;;  %v6239_v1 = vadd.f32 %v6238_v57, %v6237_v55 }
 0x275   : > { %6240 = vadd.xlane.f32.xlu0 %v6239_v1 }
 0x278   : > { %v3299_v11 = vpop.xlane.xlu0 %3298 }
 0x279   : > { %v3300_v62 = vadd.f32 %v3299_v11, %v1832_v59 }
 0x27c   : > { %v3307_v60 = vpop.xlane.xlu0 %3306 }
 0x27d   : > { %v3308_v10 = vadd.f32 %v3307_v60, %v1840_v15 }
 0x2bc   : > { %v4766_v61 = vpop.xlane.xlu1 %4765 }
 0x2bd   : > { %v4767_v2 = vadd.f32 %v4766_v61, %v3300_v62 }
 0x2be   : > { %v4774_v63 = vpop.xlane.xlu0 %4773 }
 0x2bf   : > { %v4775_v12 = vadd.f32 %v4774_v63, %v3308_v10 }
 0x300   : > { %v6233_v3 = vpop.xlane.xlu1 %6232 }
 0x301   : > { %v6234_v13 = vadd.f32 %v6233_v3, %v4767_v2 }
 0x302   : > { %v6241_v14 = vpop.xlane.xlu0 %6240 }
 0x303   : > { %6248 = vst.msk [vmem:[%s295_s16] sm:$0xff] %vm6247_vm11, %v6234_v13  ;;  %v6242_v17 = vadd.f32 %v6241_v14, %v4775_v12 }
 0x305   : > { %6249 = vst.msk [vmem:[%s299_s20] sm:$0xff] %vm6247_vm11, %v6242_v17 }
 0x306 PF: > { %s18_s24 = sadd.s32 1, %s6998_s24  }
 0x307   : > { %p15_p4 = scmp.ge.s32.totalorder %s18_s24, 4  }
 0x309   :  { %17 = sbr.rel (!%p15_p4) target bundleno = 1 (0x1), region = 110 }

// kernel: conv_block_group_forward.4
= control target key start
LH: loop header
LB: loop body
LE: loop exit
PB: predicated region body
PF: predicated region fallthrough
CT: control target
= control target key end

     0   :  { %s9921_s24 = smov 0   ;;  %s11426_s0 = inlined_call_operand.vmem [shape: f32[2,6,8,384], index: 0, kind: input, shape index: {}]   ;;  %s11427_s1 = inlined_call_operand.vmem [shape: f32[9,8,8], index: 1, kind: input, shape index: {}]   ;;  %s11428_s2 = inlined_call_operand.vmem [shape: f32[8,1], index: 2, kind: input, shape index: {}]   ;;  %s11429_s3 = inlined_call_operand.vmem [shape: f32[8,1], index: 3, kind: input, shape index: {}]   ;;  %s11430_s4 = inlined_call_operand.vmem [shape: f32[1,384], index: 4, kind: input, shape index: {}]   ;;  %s11431_s5 = inlined_call_operand.vmem [shape: f32[2,8,8,384], index: 5, kind: output, shape index: {0}]   ;;  %s11432_s6 = inlined_call_operand.vmem [shape: f32[2,8,1], index: 6, kind: output, shape index: {1}]   ;;  %s11433_s7 = inlined_call_operand.vmem [shape: f32[2,8,1], index: 7, kind: output, shape index: {2}]  }
   0x1 LB: > { %s9006_s25 = sadd.s32 4294967295, %s9868_s24   ;;  %p9010_p0 = scmp.ge.s32.totalorder %s9868_s24, 1  ;;  %s9868_s24 = sphi %s9921_s24, %s18_s24  }
   0x2   : > { %p242_p1 = scmp.lt.s32.totalorder %s9868_s24, 3 }
   0x4   : > { %p243_p2 = pnand %p9010_p0, %p242_p1 }
   0x5   : > { %v301_v0 = vld [vmem:[%s11428_s2] sm:$0xff] (!%p243_p2)  ;;  %p282_p3 = scmp.lt.s32.totalorder (!%p243_p2), %s9006_s25, 1  ;;  %v9870_v1 = vmov (!%p243_p2), 0   ;;  %v9871_v3 = vmov (!%p243_p2), 0.0   ;;  %v364_v19 = vlaneseq (!%p243_p2)  ;;  %vm9872_vm0 = vmmov (!%p243_p2), 0   ;;  %s9873_s17 = smov (!%p243_p2), 18  }
   0x6   : > { %246 = sbr.rel (%p243_p2) target bundleno = 1066 (0x42a), region = 40  ;;  %9778 = vset.pattern.permute.xlu0 (!%p243_p2), %v9870_v1  ;;  %v302_v2 = vld [vmem:[%s11429_s3] sm:$0xff] (!%p243_p2)  ;;  %9295 = vmatprep.subr.mxu1 (!%p243_p2), %v9871_v3  ;;  %s9874_s18 = smov (!%p243_p2), 19   ;;  %vm404_vm2 = vcmask (!%p243_p2), 64512   ;;  %vm8886_vm10 = vcmask (!%p243_p2), 7168  }
   0x7   : > { %328 = vperm.xlu0 (!%p243_p2), %9778, %v301_v0   ;;  %472 = vmatprep.mubr.f32.mxu0 (!%p243_p2), %v9871_v3  ;;  %v365_v25 = vshrl.u32 (!%p243_p2), %v364_v19, 7  ;;  %v300_v27 = vld [vmem:[%s11430_s4] sm:$0x7] (!%p243_p2)  ;;  %s9875_s19 = smov (!%p243_p2), 17   ;;  %s9876_s20 = smov (!%p243_p2), 1  }
   0x8   : > { %9297 = vmatprep.mubr.msk.f32.mxu1 (!%p243_p2), %vm9872_vm0, %v9871_v3  ;;  %s9877_s21 = smov (!%p243_p2), 127   ;;  %s9878_s22 = smov (!%p243_p2), 111  }
   0x9   : > { %v374_v26 = vsub.s32 (!%p243_p2), 2, %v365_v25  ;;  %v366_v28 = vsub.s32 (!%p243_p2), 0, %v365_v25  ;;  %v370_v30 = vsub.s32 (!%p243_p2), 1, %v365_v25  ;;  %s9879_s23 = smov (!%p243_p2), 110   ;;  %s9880_s26 = smov (!%p243_p2), 109  }
   0xb   : > { %336 = vperm.xlu0 (!%p243_p2), %9778, %v302_v2   ;;  %v9982_v29 = vrot.slane (!%p243_p2), %v300_v27, %v374_v26  ;;  %v9984_v32 = vrot.slane (!%p243_p2), %v300_v27, %v366_v28  ;;  %v9990_v40 = vrot.slane (!%p243_p2), %v300_v27, %v370_v30 }
   0xd   : > { %s11435_s25 = smov (!%p282_p3, %s9006_s25), 1 }
   0xe   : > { %s9758_s30 = smul.u32 192, %s11435_s25 }
   0xf   : > { %s9757_s11 = smul.u32 144, %s11435_s25 }
  0x10   : > { %s9942_s10 = scalar_lea.vmem %s11431_s5, %s9758_s30 }
  0x11   : > { %320 = vst [vmem:[%s9942_s10] sm:$0xff] %v9871_v3  ;;  %321 = vst [vmem:[%s9942_s10 + $0x8] sm:$0xff] %v9871_v3  ;;  %s9961_s14 = scalar_lea.vmem %s11426_s0, %s9757_s11 }
  0x12   : > { %322 = vst [vmem:[%s9942_s10 + $0x10] sm:$0xff] %v9871_v3  ;;  %9182 = vst [vmem:[%s9942_s10 + $0xa8] sm:$0xff] %v9871_v3  ;;  %v325_v5 = vld [vmem:[%s9961_s14 + $0x10] sm:$0xff]  ;;  %v323_v6 = vld [vmem:[%s9961_s14] sm:$0xff] }
  0x13   : > { %9183 = vst [vmem:[%s9942_s10 + $0xb0] sm:$0xff] %v9871_v3  ;;  %9184 = vst [vmem:[%s9942_s10 + $0xb8] sm:$0xff] %v9871_v3  ;;  %v324_v7 = vld [vmem:[%s9961_s14 + $0x8] sm:$0xff]  ;;  %v9047_v33 = vld [vmem:[%s9961_s14 + $0x18] sm:$0xff] }
  0x14   : > { %v9049_v43 = vld [vmem:[%s9961_s14 + $0x28] sm:$0xff]  ;;  %v9048_v47 = vld [vmem:[%s9961_s14 + $0x20] sm:$0xff]  ;;  %v9074_v2 = vld [vmem:[%s9961_s14 + $0x30] sm:$0xff] }
  0x86   : > { %v9963_v4 = vpop.permute.xlu0 %328 }
  0x87   : > { %v333_v8 = vmul.f32 %v9963_v4, %v325_v5  ;;  %v331_v9 = vmul.f32 %v9963_v4, %v323_v6  ;;  %v332_v10 = vmul.f32 %v9963_v4, %v324_v7  ;;  %v1806_v41 = vmul.f32 %v9047_v33, %v9963_v4 }
  0x88   : > { %v1808_v46 = vmul.f32 %v9049_v43, %v9963_v4  ;;  %v1807_v50 = vmul.f32 %v9048_v47, %v9963_v4  ;;  %v3222_v7 = vmul.f32 %v9074_v2, %v9963_v4 }
  0x8a   : > { %v9971_v11 = vpop.permute.xlu0 %336 }
  0x8b   : > { %v341_v12 = vadd.f32 %v9971_v11, %v333_v8  ;;  %v339_v13 = vadd.f32 %v9971_v11, %v331_v9  ;;  %v340_v14 = vadd.f32 %v9971_v11, %v332_v10  ;;  %v1809_v44 = vadd.f32 %v1806_v41, %v9971_v11  ;;  %v9076_v8 = vld [vmem:[%s9961_s14 + $0x40] sm:$0xff]  ;;  %v9103_v41 = vld [vmem:[%s9961_s14 + $0x58] sm:$0xff] }
  0x8c   : > { %v1811_v49 = vadd.f32 %v1808_v46, %v9971_v11  ;;  %v1810_v52 = vadd.f32 %v1807_v50, %v9971_v11  ;;  %v3225_v9 = vadd.f32 %v3222_v7, %v9971_v11  ;;  %v4640_v46 = vmul.f32 %v9103_v41, %v9963_v4 }
  0x8d   : > { %v9025_v15 = vmul.f32 -1.442695, %v341_v12  ;;  %v9023_v16 = vmul.f32 -1.442695, %v339_v13  ;;  %v9024_v17 = vmul.f32 -1.442695, %v340_v14 }
  0x8e   : > { %v9050_v48 = vmul.f32 -1.442695, %v1809_v44  ;;  %v9052_v51 = vmul.f32 -1.442695, %v1811_v49  ;;  %v9051_v53 = vmul.f32 -1.442695, %v1810_v52 }
  0x8f   : > { %9779 = vpow2.f32 %v9025_v15 }
  0x90   : > { %9781 = vpow2.f32 %v9023_v16 }
  0x91   : > { %9783 = vpow2.f32 %v9024_v17 }
  0x99   : > { %v9780_v18 = vpop.eup %9779 }
  0x9a   : > { %v9782_v20 = vpop.eup %9781  ;;  %v353_v21 = vadd.f32 1.0, %v9780_v18 }
  0x9b   : > { %v9784_v22 = vpop.eup %9783  ;;  %v351_v23 = vadd.f32 1.0, %v9782_v20 }
  0x9c   : > { %9785 = vrcp.f32 %v353_v21  ;;  %v352_v24 = vadd.f32 1.0, %v9784_v22 }
  0x9d   : > { %9787 = vrcp.f32 %v351_v23 }
  0x9e   : > { %9789 = vrcp.f32 %v352_v24 }
  0x9f   : > { %9791 = vpow2.f32 %v9050_v48  ;;  %v10144_v48 = vadd.f32 %v4640_v46, %v9971_v11 }
  0xa0   : > { %9793 = vpow2.f32 %v9052_v51 }
  0xa1   : > { %9795 = vpow2.f32 %v9051_v53  ;;  %v9106_v51 = vmul.f32 -1.442695, %v10144_v48 }
  0xa6   : > { %v9786_v31 = vpop.eup %9785 }
  0xa7   : > { %v9788_v34 = vpop.eup %9787  ;;  %v362_v35 = vmul.f32 %v9786_v31, %v341_v12  ;;  %v3224_v12 = vmul.f32 %v9076_v8, %v9963_v4 }
  0xa8   : > { %v9790_v36 = vpop.eup %9789  ;;  %v360_v37 = vmul.f32 %v9788_v34, %v339_v13  ;;  %v9075_v13 = vld [vmem:[%s9961_s14 + $0x38] sm:$0xff] }
  0xa9   : > { %v9988_v38 = vmul.f32 %v9982_v29, %v362_v35  ;;  %v361_v39 = vmul.f32 %v9790_v36, %v340_v14  ;;  %v9792_v54 = vpop.eup %9791  ;;  %v9077_v14 = vmul.f32 -1.442695, %v3225_v9  ;;  %v3227_v15 = vadd.f32 %v3224_v12, %v9971_v11  ;;  %v9101_v35 = vld [vmem:[%s9961_s14 + $0x48] sm:$0xff] }
  0xaa   : > { %v9994_v42 = vmul.f32 %v9984_v32, %v360_v37  ;;  %v1821_v55 = vadd.f32 1.0, %v9792_v54  ;;  %v9794_v56 = vpop.eup %9793  ;;  %v3223_v16 = vmul.f32 %v9075_v13, %v9963_v4 }
  0xab   : > { %398 = vrot.lane.b32.xlu0 %v9988_v38, %s9873_s17  ;;  %v10003_v45 = vmul.f32 %v9990_v40, %v361_v39  ;;  %v1823_v57 = vadd.f32 1.0, %v9794_v56  ;;  %v9796_v58 = vpop.eup %9795  ;;  %v9079_v17 = vmul.f32 -1.442695, %v3227_v15  ;;  %v4638_v39 = vmul.f32 %v9101_v35, %v9963_v4 }
  0xac   : > { %394 = vrot.lane.b32.xlu1 %v9994_v42, %s9873_s17  ;;  %9797 = vrcp.f32 %v1821_v55  ;;  %v1822_v59 = vadd.f32 1.0, %v9796_v58  ;;  %v3226_v18 = vadd.f32 %v3223_v16, %v9971_v11  ;;  %v10168_v56 = vand.u32 127, %v364_v19 }
  0xad   : > { %9799 = vrcp.f32 %v1823_v57  ;;  %v10132_v43 = vadd.f32 %v4638_v39, %v9971_v11 }
  0xae   : > { %9801 = vrcp.f32 %v1822_v59  ;;  %v9078_v20 = vmul.f32 -1.442695, %v3226_v18  ;;  %vm400_vm1 = vcmp.lt.s32.totalorder %v10168_v56, 18  ;;  %vm390_vm3 = vcmp.lt.s32.totalorder %v10168_v56, 19 }
  0xaf   : > { %384 = vrot.lane.b32.xlu0 %v10003_v45, %s9874_s18  ;;  %9803 = vpow2.f32 %v9077_v14  ;;  %v9104_v47 = vmul.f32 -1.442695, %v10132_v43  ;;  %vm699_vm4 = vcmp.lt.s32.totalorder %v10168_v56, 17  ;;  %vm856_vm5 = vcmp.lt.s32.totalorder %v10168_v56, 1 }
  0xb0   : > { %396 = vrot.lane.b32.xlu1 %v10003_v45, %s9873_s17  ;;  %9805 = vpow2.f32 %v9079_v17  ;;  %v10214_v17 = vld [vmem:[%s11427_s1] sm:$0xff]  ;;  %vm1160_vm6 = vcmp.lt.s32.totalorder %v10168_v56, 127  ;;  %vm1317_vm7 = vcmp.lt.s32.totalorder %v10168_v56, 111  ;;  %vm1474_vm8 = vcmp.lt.s32.totalorder %v10168_v56, 110 }
  0xb1   : > { %9807 = vpow2.f32 %v9078_v20  ;;  %vm1631_vm9 = vcmp.lt.s32.totalorder %v10168_v56, 109 }
  0xb3   : > { %693 = vrot.lane.b32.xlu0 %v9994_v42, %s9875_s19 }
  0xb4   : > { %382 = vrot.lane.b32.xlu1 %v9994_v42, %s9874_s18 }
  0xb6   : > { %v9798_v60 = vpop.eup %9797 }
  0xb7   : > { %697 = vrot.lane.b32.xlu0 %v9988_v38, %s9875_s19  ;;  %v1830_v61 = vmul.f32 %v9798_v60, %v1809_v44  ;;  %v9800_v62 = vpop.eup %9799 }
  0xb8   : > { %386 = vrot.lane.b32.xlu1 %v9988_v38, %s9874_s18  ;;  %v1832_v0 = vmul.f32 %v9800_v62, %v1811_v49  ;;  %v9802_v1 = vpop.eup %9801  ;;  %v9102_v49 = vld [vmem:[%s9961_s14 + $0x50] sm:$0xff] }
  0xb9   : > { %v10051_v63 = vmul.f32 %v1830_v61, %v9984_v32  ;;  %v1831_v6 = vmul.f32 %v9802_v1, %v1810_v52  ;;  %v9804_v21 = vpop.eup %9803  ;;  %v4639_v50 = vmul.f32 %v9102_v49, %v9963_v4 }
  0xba   : > { %v10059_v5 = vmul.f32 %v1832_v0, %v9982_v29  ;;  %v3237_v22 = vadd.f32 1.0, %v9804_v21  ;;  %v9806_v23 = vpop.eup %9805  ;;  %v10184_v0 = vld [vmem:[%s11427_s1 + $0x8] sm:$0xff] }
  0xbb   : > { %852 = vrot.lane.b32.xlu0 %v10003_v45, %s9876_s20  ;;  %v10069_v10 = vmul.f32 %v1831_v6, %v9990_v40  ;;  %v3239_v24 = vadd.f32 1.0, %v9806_v23  ;;  %v9808_v25 = vpop.eup %9807  ;;  %v10156_v52 = vadd.f32 %v4639_v50, %v9971_v11 }
  0xbc   : > { %695 = vrot.lane.b32.xlu1 %v10003_v45, %s9875_s19  ;;  %9809 = vrcp.f32 %v3237_v22  ;;  %v3238_v26 = vadd.f32 1.0, %v9808_v25 }
  0xbd   : > { %9811 = vrcp.f32 %v3239_v24  ;;  %v9105_v53 = vmul.f32 -1.442695, %v10156_v52 }
  0xbe   : > { %9813 = vrcp.f32 %v3238_v26 }
  0xbf   : > { %1156 = vrot.lane.b32.xlu0 %v10003_v45, %s9877_s21  ;;  %9815 = vpow2.f32 %v9104_v47  ;;  %v9128_v47 = vld [vmem:[%s9961_s14 + $0x60] sm:$0xff] }
  0xc0   : > { %850 = vrot.lane.b32.xlu1 %v9994_v42, %s9876_s20  ;;  %9817 = vpow2.f32 %v9106_v51 }
  0xc1   : > { %9819 = vpow2.f32 %v9105_v53  ;;  %v6054_v53 = vmul.f32 %v9128_v47, %v9963_v4 }
  0xc3   : > { %1154 = vrot.lane.b32.xlu0 %v9994_v42, %s9877_s21 }
  0xc4   : > { %854 = vrot.lane.b32.xlu1 %v9988_v38, %s9876_s20 }
  0xc6   : > { %v9810_v27 = vpop.eup %9809 }
  0xc7   : > { %1315 = vrot.lane.b32.xlu0 %v9988_v38, %s9878_s22  ;;  %v3246_v28 = vmul.f32 %v9810_v27, %v3225_v9  ;;  %v9812_v30 = vpop.eup %9811 }
  0xc8   : > { %1158 = vrot.lane.b32.xlu1 %v9988_v38, %s9877_s21  ;;  %v3248_v33 = vmul.f32 %v9812_v30, %v3227_v15  ;;  %v9814_v34 = vpop.eup %9813 }
  0xc9   : > { %v10117_v31 = vmul.f32 %v3246_v28, %v9984_v32  ;;  %v3247_v37 = vmul.f32 %v9814_v34, %v3226_v18  ;;  %v9816_v54 = vpop.eup %9815 }
  0xca   : > { %v10125_v36 = vmul.f32 %v3248_v33, %v9982_v29  ;;  %v4653_v58 = vadd.f32 1.0, %v9816_v54  ;;  %v9818_v59 = vpop.eup %9817  ;;  %v10248_v33 = vld [vmem:[%s11427_s1 + $0x10] sm:$0xff]  ;;  %v10292_v54 = vadd.f32 %v6054_v53, %v9971_v11 }
  0xcb   : > { %1470 = vrot.lane.b32.xlu0 %v10003_v45, %s9879_s23  ;;  %v10137_v44 = vmul.f32 %v3247_v37, %v9990_v40  ;;  %v4655_v2 = vadd.f32 1.0, %v9818_v59  ;;  %v9820_v7 = vpop.eup %9819 }
  0xcc   : > { %1313 = vrot.lane.b32.xlu1 %v10003_v45, %s9878_s22  ;;  %9821 = vrcp.f32 %v4653_v58  ;;  %v4654_v13 = vadd.f32 1.0, %v9820_v7 }
  0xcd   : > { %9823 = vrcp.f32 %v4655_v2  ;;  %v10330_v2 = vld [vmem:[%s11427_s1 + $0x20] sm:$0xff] }
  0xce   : > { %9825 = vrcp.f32 %v4654_v13 }
  0xcf   : > { %1468 = vrot.lane.b32.xlu0 %v9994_v42, %s9879_s23 }
  0xd0   : > { %1311 = vrot.lane.b32.xlu1 %v9994_v42, %s9878_s22 }
  0xd3   : > { %1629 = vrot.lane.b32.xlu0 %v9988_v38, %s9880_s26 }
  0xd4   : > { %1472 = vrot.lane.b32.xlu1 %v9988_v38, %s9879_s23 }
  0xd6   : > { %v9822_v20 = vpop.eup %9821 }
  0xd7   : > { %1845 = vrot.lane.b32.xlu0 %v10051_v63, %s9873_s17  ;;  %v4662_v26 = vmul.f32 %v9822_v20, %v10132_v43  ;;  %v9824_v27 = vpop.eup %9823  ;;  %v10369_v20 = vld [vmem:[%s11427_s1 + $0x28] sm:$0xff] }
  0xd8   : > { %1627 = vrot.lane.b32.xlu1 %v10003_v45, %s9880_s26  ;;  %v4664_v37 = vmul.f32 %v9824_v27, %v10144_v48  ;;  %v9826_v41 = vpop.eup %9825 }
  0xd9   : > { %v10254_v35 = vmul.f32 %v4662_v26, %v9984_v32  ;;  %v4663_v51 = vmul.f32 %v9826_v41, %v10156_v52 }
  0xda   : > { %v10276_v49 = vmul.f32 %v4664_v37, %v9982_v29  ;;  %v10403_v37 = vld [vmem:[%s11427_s1 + $0x30] sm:$0xff] }
  0xdb   : > { %1849 = vrot.lane.b32.xlu0 %v10059_v5, %s9873_s17  ;;  %v10303_v58 = vmul.f32 %v4663_v51, %v9990_v40 }
  0xdc   : > { %1625 = vrot.lane.b32.xlu1 %v9994_v42, %s9880_s26 }
  0xdf   : > { %1838 = vrot.lane.b32.xlu0 %v10069_v10, %s9874_s18 }
  0xe0   : > { %1847 = vrot.lane.b32.xlu1 %v10069_v10, %s9873_s17 }
  0xe3   : > { %2136 = vrot.lane.b32.xlu0 %v10051_v63, %s9875_s19 }
  0xe4   : > { %1836 = vrot.lane.b32.xlu1 %v10051_v63, %s9874_s18 }
  0xe7   : > { %2140 = vrot.lane.b32.xlu0 %v10059_v5, %s9875_s19 }
  0xe8   : > { %1840 = vrot.lane.b32.xlu1 %v10059_v5, %s9874_s18 }
  0xeb   : > { %2291 = vrot.lane.b32.xlu0 %v10069_v10, %s9876_s20 }
  0xec   : > { %2138 = vrot.lane.b32.xlu1 %v10069_v10, %s9875_s19 }
  0xef   : > { %2588 = vrot.lane.b32.xlu0 %v10069_v10, %s9877_s21 }
  0xf0   : > { %2289 = vrot.lane.b32.xlu1 %v10051_v63, %s9876_s20 }
  0xf3   : > { %2586 = vrot.lane.b32.xlu0 %v10051_v63, %s9877_s21 }
  0xf4   : > { %2293 = vrot.lane.b32.xlu1 %v10059_v5, %s9876_s20 }
  0xf7   : > { %2743 = vrot.lane.b32.xlu0 %v10059_v5, %s9878_s22 }
  0xf8   : > { %2590 = vrot.lane.b32.xlu1 %v10059_v5, %s9877_s21 }
  0xfb   : > { %2894 = vrot.lane.b32.xlu0 %v10069_v10, %s9879_s23 }
  0xfc   : > { %2741 = vrot.lane.b32.xlu1 %v10069_v10, %s9878_s22 }
  0xff   : > { %2892 = vrot.lane.b32.xlu0 %v10051_v63, %s9879_s23 }
 0x100   : > { %2739 = vrot.lane.b32.xlu1 %v10051_v63, %s9878_s22 }
 0x103   : > { %3049 = vrot.lane.b32.xlu0 %v10059_v5, %s9880_s26 }
 0x104   : > { %2896 = vrot.lane.b32.xlu1 %v10059_v5, %s9879_s23 }
 0x107   : > { %3261 = vrot.lane.b32.xlu0 %v10117_v31, %s9873_s17 }
 0x108   : > { %3047 = vrot.lane.b32.xlu1 %v10069_v10, %s9880_s26 }
 0x10b   : > { %3265 = vrot.lane.b32.xlu0 %v10125_v36, %s9873_s17 }
 0x10c   : > { %3045 = vrot.lane.b32.xlu1 %v10051_v63, %s9880_s26 }
 0x10f   : > { %3254 = vrot.lane.b32.xlu0 %v10137_v44, %s9874_s18 }
 0x110   : > { %3263 = vrot.lane.b32.xlu1 %v10137_v44, %s9873_s17 }
 0x113   : > { %3552 = vrot.lane.b32.xlu0 %v10117_v31, %s9875_s19 }
 0x114   : > { %3252 = vrot.lane.b32.xlu1 %v10117_v31, %s9874_s18 }
 0x117   : > { %3556 = vrot.lane.b32.xlu0 %v10125_v36, %s9875_s19 }
 0x118   : > { %3256 = vrot.lane.b32.xlu1 %v10125_v36, %s9874_s18 }
 0x11b   : > { %3707 = vrot.lane.b32.xlu0 %v10137_v44, %s9876_s20 }
 0x11c   : > { %3554 = vrot.lane.b32.xlu1 %v10137_v44, %s9875_s19 }
 0x11d   : > { %v399_v55 = vpop.permute.xlu0 %398 }
 0x11e   : > { %v395_v57 = vpop.permute.xlu1 %394 }
 0x11f   : > { %4004 = vrot.lane.b32.xlu0 %v10137_v44, %s9877_s21  ;;  %v403_v1 = vsel %vm400_vm1, %v399_v55, %v395_v57 }
 0x120   : > { %3705 = vrot.lane.b32.xlu1 %v10117_v31, %s9876_s20 }
 0x121   : > { %v385_v60 = vpop.permute.xlu0 %384 }
 0x122   : > { %v397_v61 = vpop.permute.xlu1 %396 }
 0x123   : > { %4002 = vrot.lane.b32.xlu0 %v10117_v31, %s9877_s21  ;;  %v402_v19 = vsel %vm400_vm1, %v395_v57, %v397_v61  ;;  %v401_v62 = vsel %vm400_vm1, %v397_v61, %v399_v55  ;;  %v9130_v55 = vld [vmem:[%s9961_s14 + $0x70] sm:$0xff]  ;;  %v9129_v61 = vld [vmem:[%s9961_s14 + $0x68] sm:$0xff] }
 0x124   : > { %3709 = vrot.lane.b32.xlu1 %v10125_v36, %s9876_s20  ;;  %408 = vmatprep.subr.mxu0 %v402_v19  ;;  %v9131_v19 = vmul.f32 -1.442695, %v10292_v54 }
 0x125   : > { %9296 = vmatpush3.msra.mxu1 %v401_v62  ;;  %409 = vmatpush1.msra.mxu0 %v403_v1  ;;  %v694_v6 = vpop.permute.xlu0 %693  ;;  %v6055_v1 = vmul.f32 %v9129_v61, %v9963_v4 }
 0x126   : > { %9298 = vmatmul.mubr.msk.f32.vlgmr.msra.gmra.mrb[0].mxu1 %vm404_vm2, %v10184_v0  ;;  %9026 = vmatmul.mubr.msk.f32.vlgmr.msra.gmra.mrb[0].mxu0 %vm404_vm2, %v10184_v0  ;;  %v383_v8 = vpop.permute.xlu1 %382  ;;  %9827 = vpow2.f32 %v9131_v19 }
 0x127   : > { %4159 = vrot.lane.b32.xlu0 %v10125_v36, %s9878_s22  ;;  %v392_v9 = vsel %vm390_vm3, %v383_v8, %v385_v60  ;;  %9300 = vmatprep.subr.mxu1 %v9871_v3 }
 0x128   : > { %4006 = vrot.lane.b32.xlu1 %v10125_v36, %s9877_s21  ;;  %552 = vmatprep.subr.mxu0 %v392_v9 }
 0x129   : > { %v698_v12 = vpop.permute.xlu0 %697  ;;  %9302 = vmatprep.mubr.msk.f32.mxu1 %vm9872_vm0, %v9871_v3  ;;  %616 = vmatprep.mubr.f32.mxu0 %v9871_v3 }
 0x12a   : > { %v387_v14 = vpop.permute.xlu1 %386  ;;  %v702_v24 = vsel %vm699_vm4, %v698_v12, %v694_v6 }
 0x12b   : > { %4310 = vrot.lane.b32.xlu0 %v10137_v44, %s9879_s23  ;;  %v393_v15 = vsel %vm390_vm3, %v387_v14, %v383_v8  ;;  %v391_v16 = vsel %vm390_vm3, %v385_v60, %v387_v14  ;;  %v6056_v60 = vmul.f32 %v9130_v55, %v9963_v4  ;;  %v10439_v55 = vld [vmem:[%s11427_s1 + $0x38] sm:$0xff] }
 0x12c   : > { %4157 = vrot.lane.b32.xlu1 %v10137_v44, %s9878_s22  ;;  %553 = vmatpush1.msra.mxu0 %v393_v15 }
 0x12d   : > { %9301 = vmatpush3.msra.mxu1 %v391_v16  ;;  %v853_v18 = vpop.permute.xlu0 %852 }
 0x12e   : > { %9303 = vmatmul.mubr.msk.f32.vlgmr.msra.gmra.mrb[0].mxu1 %vm404_vm2, %v10214_v17  ;;  %9028 = vmatmul.mubr.msk.f32.vlgmr.msra.gmra.mrb[0].mxu0 %vm404_vm2, %v10214_v17  ;;  %v696_v21 = vpop.permute.xlu1 %695 }
 0x12f   : > { %9305 = vmatprep.subr.mxu1 %v9871_v3  ;;  %4308 = vrot.lane.b32.xlu0 %v10117_v31, %s9879_s23  ;;  %v701_v22 = vsel %vm699_vm4, %v694_v6, %v696_v21  ;;  %v700_v23 = vsel %vm699_vm4, %v696_v21, %v698_v12  ;;  %v10336_v6 = vadd.f32 %v6055_v1, %v9971_v11 }
 0x130   : > { %4155 = vrot.lane.b32.xlu1 %v10117_v31, %s9878_s22  ;;  %706 = vmatprep.subr.mxu0 %v701_v22  ;;  %v9828_v22 = vpop.eup %9827 }
 0x131   : > { %9306 = vmatpush3.msra.mxu1 %v700_v23  ;;  %707 = vmatpush1.msra.mxu0 %v702_v24  ;;  %v10235_v25 = vpop.permute.xlu0 %1156  ;;  %v9132_v15 = vmul.f32 -1.442695, %v10336_v6 }
 0x132   : > { %v851_v28 = vpop.permute.xlu1 %850  ;;  %9307 = vmatprep.mubr.msk.f32.mxu1 %vm9872_vm0, %v9871_v3  ;;  %770 = vmatprep.mubr.f32.mxu0 %v9871_v3 }
 0x133   : > { %4465 = vrot.lane.b32.xlu0 %v10125_v36, %s9880_s26  ;;  %v858_v30 = vsel %vm856_vm5, %v851_v28, %v853_v18  ;;  %9310 = vmatprep.subr.mxu1 %v9871_v3 }
 0x134   : > { %4312 = vrot.lane.b32.xlu1 %v10125_v36, %s9879_s23  ;;  %863 = vmatprep.subr.mxu0 %v858_v30 }
 0x135   : > { %v1155_v34 = vpop.permute.xlu0 %1154 }
 0x136   : > { %9308 = vmatmul.mubr.msk.f32.vlgmr.msra.gmra.mrb[0].mxu1 %vm404_vm2, %v10248_v33  ;;  %9030 = vmatmul.mubr.msk.f32.vlgmr.msra.gmra.mrb[0].mxu0 %vm404_vm2, %v10248_v33  ;;  %v855_v39 = vpop.permute.xlu1 %854  ;;  %v1162_v12 = vsel %vm1160_vm6, %v1155_v34, %v10235_v25 }
 0x137   : > { %4677 = vrot.lane.b32.xlu0 %v10254_v35, %s9873_s17  ;;  %v859_v43 = vsel %vm856_vm5, %v855_v39, %v851_v28  ;;  %v857_v46 = vsel %vm856_vm5, %v853_v18, %v855_v39  ;;  %9312 = vmatprep.mubr.msk.f32.mxu1 %vm9872_vm0, %v9871_v3  ;;  %v6069_v28 = vadd.f32 1.0, %v9828_v22  ;;  %v9155_v22 = vld [vmem:[%s9961_s14 + $0x78] sm:$0xff] }
 0x138   : > { %4463 = vrot.lane.b32.xlu1 %v10137_v44, %s9880_s26  ;;  %864 = vmatpush1.msra.mxu0 %v859_v43 }
 0x139   : > { %9311 = vmatpush3.msra.mxu1 %v857_v46  ;;  %1010 = vmatprep.subr.mxu0 %v10003_v45  ;;  %v10273_v48 = vpop.permute.xlu0 %1315  ;;  %v10287_v45 = vld [vmem:[%s11427_s1 + $0x18] sm:$0xff] }
 0x13a   : > { %v1159_v50 = vpop.permute.xlu1 %1158  ;;  %9315 = vmatprep.subr.mxu1 %v9871_v3  ;;  %927 = vmatprep.mubr.f32.mxu0 %v9871_v3 }
 0x13b   : > { %4681 = vrot.lane.b32.xlu0 %v10276_v49, %s9873_s17  ;;  %v1161_v59 = vsel %vm1160_vm6, %v10235_v25, %v1159_v50  ;;  %v1163_v9 = vsel %vm1160_vm6, %v1159_v50, %v1155_v34 }
 0x13c   : > { %4461 = vrot.lane.b32.xlu1 %v10117_v31, %s9880_s26 }
 0x13d   : > { %v10295_v57 = vpop.permute.xlu0 %1470 }
 0x13e   : > { %9313 = vmatmul.mubr.msk.f32.vlgmr.msra.gmra.mrb[0].mxu1 %vm404_vm2, %v10287_v45  ;;  %9032 = vmatmul.mubr.msk.f32.vlgmr.msra.gmra.mrb[0].mxu0 %vm404_vm2, %v10287_v45  ;;  %v1314_v52 = vpop.permute.xlu1 %1313 }
 0x13f   : > { %9316 = vmatpush3.msra.mxu1 %v9988_v38  ;;  %1011 = vmatpush1.msra.mxu0 %v9994_v42  ;;  %v10322_v38 = vadd.f32 %v6056_v60, %v9971_v11  ;;  %v1318_v14 = vsel %vm1317_vm7, %v1314_v52, %v10273_v48 }
 0x140   : > { %1167 = vmatprep.subr.mxu0 %v1161_v59  ;;  %4670 = vrot.lane.b32.xlu0 %v10303_v58, %s9874_s18 }
 0x141   : > { %4679 = vrot.lane.b32.xlu1 %v10303_v58, %s9873_s17  ;;  %v10317_v62 = vpop.permute.xlu0 %1468  ;;  %9317 = vmatprep.mubr.msk.f32.mxu1 %vm9872_vm0, %v9871_v3  ;;  %v9133_v8 = vmul.f32 -1.442695, %v10322_v38 }
 0x142   : > { %v1312_v42 = vpop.permute.xlu1 %1311  ;;  %9320 = vmatprep.subr.mxu1 %v9871_v3  ;;  %1074 = vmatprep.mubr.f32.mxu0 %v9871_v3  ;;  %v1476_v43 = vsel %vm1474_vm8, %v10317_v62, %v10295_v57 }
 0x143   : > { %9829 = vpow2.f32 %v9133_v8  ;;  %v1320_v23 = vsel %vm1317_vm7, %v10273_v48, %v1312_v42  ;;  %v1319_v24 = vsel %vm1317_vm7, %v1312_v42, %v1314_v52 }
 0x144   : > { %4968 = vrot.lane.b32.xlu0 %v10254_v35, %s9875_s19  ;;  %9831 = vpow2.f32 %v9132_v15 }
 0x145   : > { %4668 = vrot.lane.b32.xlu1 %v10254_v35, %s9874_s18  ;;  %v10340_v7 = vpop.permute.xlu0 %1629  ;;  %9833 = vrcp.f32 %v6069_v28 }
 0x146   : > { %9318 = vmatmul.mubr.msk.f32.vlgmr.msra.gmra.mrb[0].mxu1 %vm404_vm2, %v10330_v2  ;;  %9034 = vmatmul.mubr.msk.f32.vlgmr.msra.gmra.mrb[0].mxu0 %vm404_vm2, %v10330_v2  ;;  %v1473_v13 = vpop.permute.xlu1 %1472 }
 0x147   : > { %9321 = vmatpush3.msra.mxu1 %v1163_v9  ;;  %1168 = vmatpush1.msra.mxu0 %v1162_v12  ;;  %v1475_v26 = vsel %vm1474_vm8, %v10295_v57, %v1473_v13  ;;  %v1477_v41 = vsel %vm1474_vm8, %v1473_v13, %v10317_v62 }
 0x148   : > { %1324 = vmatprep.subr.mxu0 %v1318_v14  ;;  %4972 = vrot.lane.b32.xlu0 %v10276_v49, %s9875_s19 }
 0x149   : > { %4672 = vrot.lane.b32.xlu1 %v10276_v49, %s9874_s18  ;;  %v10360_v16 = vpop.permute.xlu0 %1845  ;;  %9322 = vmatprep.mubr.msk.f32.mxu1 %vm9872_vm0, %v9871_v3 }
 0x14a   : > { %v1628_v18 = vpop.permute.xlu1 %1627  ;;  %9325 = vmatprep.subr.mxu1 %v9871_v3  ;;  %1231 = vmatprep.mubr.f32.mxu0 %v9871_v3 }
 0x14b   : > { %v1632_v50 = vsel %vm1631_vm9, %v1628_v18, %v10340_v7 }
 0x14c   : > { %5123 = vrot.lane.b32.xlu0 %v10303_v58, %s9876_s20 }
 0x14d   : > { %4970 = vrot.lane.b32.xlu1 %v10303_v58, %s9875_s19  ;;  %v10375_v21 = vpop.permute.xlu0 %1849  ;;  %v9830_v34 = vpop.eup %9829 }
 0x14e   : > { %9323 = vmatmul.mubr.msk.f32.vlgmr.msra.gmra.mrb[0].mxu1 %vm404_vm2, %v10369_v20  ;;  %9036 = vmatmul.mubr.msk.f32.vlgmr.msra.gmra.mrb[0].mxu0 %vm404_vm2, %v10369_v20  ;;  %v1626_v25 = vpop.permute.xlu1 %1625  ;;  %v9832_v39 = vpop.eup %9831  ;;  %v6071_v47 = vadd.f32 1.0, %v9830_v34  ;;  %v1853_v9 = vsel %vm400_vm1, %v10375_v21, %v10360_v16 }
 0x14f   : > { %9326 = vmatpush3.msra.mxu1 %v1320_v23  ;;  %1325 = vmatpush1.msra.mxu0 %v1319_v24  ;;  %v6070_v51 = vadd.f32 1.0, %v9832_v39  ;;  %v1634_v52 = vsel %vm1631_vm9, %v10340_v7, %v1626_v25  ;;  %v1633_v59 = vsel %vm1631_vm9, %v1626_v25, %v1628_v18  ;;  %v9834_v61 = vpop.eup %9833  ;;  %v10477_v7 = vld [vmem:[%s11427_s1 + $0x40] sm:$0xff] }
 0x150   : > { %1481 = vmatprep.subr.mxu0 %v1475_v26  ;;  %5420 = vrot.lane.b32.xlu0 %v10303_v58, %s9877_s21  ;;  %9835 = vrcp.f32 %v6071_v47  ;;  %v6078_v42 = vmul.f32 %v9834_v61, %v10292_v54 }
 0x151   : > { %5121 = vrot.lane.b32.xlu1 %v10254_v35, %s9876_s20  ;;  %v10394_v27 = vpop.permute.xlu0 %1838  ;;  %9327 = vmatprep.mubr.msk.f32.mxu1 %vm9872_vm0, %v9871_v3  ;;  %9837 = vrcp.f32 %v6070_v51 }
 0x152   : > { %v1848_v30 = vpop.permute.xlu1 %1847  ;;  %9330 = vmatprep.subr.mxu1 %v9871_v3  ;;  %1388 = vmatprep.mubr.f32.mxu0 %v9871_v3  ;;  %v10497_v13 = vmul.f32 %v6078_v42, %v9984_v32  ;;  %v10625_v42 = vld [vmem:[%s9942_s10] sm:$0xff] }
 0x153   : > { %v1852_v19 = vsel %vm400_vm1, %v10360_v16, %v1848_v30  ;;  %v1851_v54 = vsel %vm400_vm1, %v1848_v30, %v10375_v21  ;;  %v7470_v21 = vmul.f32 %v9155_v22, %v9963_v4 }
 0x154   : > { %5418 = vrot.lane.b32.xlu0 %v10254_v35, %s9877_s21 }
 0x155   : > { %5125 = vrot.lane.b32.xlu1 %v10276_v49, %s9876_s20  ;;  %v10423_v48 = vpop.permute.xlu0 %2136  ;;  %v10540_v28 = vadd.f32 %v7470_v21, %v9971_v11 }
 0x156   : > { %9328 = vmatmul.mubr.msk.f32.vlgmr.msra.gmra.mrb[0].mxu1 %vm404_vm2, %v10403_v37  ;;  %9038 = vmatmul.mubr.msk.f32.vlgmr.msra.gmra.mrb[0].mxu0 %vm404_vm2, %v10403_v37  ;;  %v10421_v46 = vpop.permute.xlu1 %1836 }
 0x157   : > { %9331 = vmatpush3.msra.mxu1 %v1477_v41  ;;  %1482 = vmatpush1.msra.mxu0 %v1476_v43  ;;  %v1843_v15 = vsel %vm390_vm3, %v10421_v46, %v10394_v27  ;;  %v9156_v41 = vld [vmem:[%s9961_s14 + $0x80] sm:$0xff]  ;;  %v9158_v43 = vmul.f32 -1.442695, %v10540_v28 }
 0x158   : > { %1638 = vmatprep.subr.mxu0 %v1632_v50  ;;  %5575 = vrot.lane.b32.xlu0 %v10276_v49, %s9878_s22  ;;  %v7471_v50 = vmul.f32 %v9156_v41, %v9963_v4 }
 0x159   : > { %5422 = vrot.lane.b32.xlu1 %v10276_v49, %s9877_s21  ;;  %9332 = vmatprep.mubr.msk.f32.mxu1 %vm9872_vm0, %v9871_v3  ;;  %v10443_v57 = vpop.permute.xlu0 %2140  ;;  %9839 = vpow2.f32 %v9158_v43 }
 0x15a   : > { %v1841_v53 = vpop.permute.xlu1 %1840  ;;  %9335 = vmatprep.subr.mxu1 %v9871_v3  ;;  %1545 = vmatprep.mubr.f32.mxu0 %v9871_v3  ;;  %v9836_v8 = vpop.eup %9835 }
 0x15b   : > { %v9838_v14 = vpop.eup %9837  ;;  %v6080_v18 = vmul.f32 %v9836_v8, %v10322_v38  ;;  %v1842_v23 = vsel %vm390_vm3, %v10394_v27, %v1841_v53  ;;  %v1844_v24 = vsel %vm390_vm3, %v1841_v53, %v10421_v46  ;;  %v9157_v27 = vld [vmem:[%s9961_s14 + $0x88] sm:$0xff]  ;;  %v2144_v53 = vsel %vm699_vm4, %v10443_v57, %v10423_v48 }
 0x15c   : > { %5726 = vrot.lane.b32.xlu0 %v10303_v58, %s9879_s23  ;;  %v6079_v38 = vmul.f32 %v9838_v14, %v10336_v6  ;;  %v7472_v39 = vmul.f32 %v9157_v27, %v9963_v4 }
 0x15d   : > { %5573 = vrot.lane.b32.xlu1 %v10303_v58, %s9878_s22  ;;  %v10472_v1 = vpop.permute.xlu0 %2291  ;;  %v10528_v25 = vmul.f32 %v6080_v18, %v9982_v29 }
 0x15e   : > { %9333 = vmatmul.mubr.msk.f32.vlgmr.msra.gmra.mrb[0].mxu1 %vm404_vm2, %v10439_v55  ;;  %9040 = vmatmul.mubr.msk.f32.vlgmr.msra.gmra.mrb[0].mxu0 %vm404_vm2, %v10439_v55  ;;  %v10456_v60 = vpop.permute.xlu1 %2138  ;;  %v10549_v34 = vmul.f32 %v6079_v38, %v9990_v40  ;;  %v10559_v46 = vadd.f32 %v7472_v39, %v9971_v11 }
 0x15f   : > { %9336 = vmatpush3.msra.mxu1 %v1634_v52  ;;  %1639 = vmatpush1.msra.mxu0 %v1633_v59  ;;  %v2143_v26 = vsel %vm699_vm4, %v10423_v48, %v10456_v60  ;;  %v2142_v51 = vsel %vm699_vm4, %v10456_v60, %v10443_v57  ;;  %v10583_v52 = vadd.f32 %v7471_v50, %v9971_v11 }
 0x160   : > { %1854 = vmatprep.subr.mxu0 %v1852_v19  ;;  %5724 = vrot.lane.b32.xlu0 %v10254_v35, %s9879_s23  ;;  %v9160_v60 = vmul.f32 -1.442695, %v10559_v46 }
 0x161   : > { %5571 = vrot.lane.b32.xlu1 %v10254_v35, %s9878_s22  ;;  %9337 = vmatprep.mubr.msk.f32.mxu1 %vm9872_vm0, %v9871_v3  ;;  %v10507_v16 = vpop.permute.xlu0 %2588  ;;  %v9159_v48 = vmul.f32 -1.442695, %v10583_v52 }
 0x162   : > { %v10467_v62 = vpop.permute.xlu1 %2289  ;;  %9340 = vmatprep.subr.mxu1 %v9871_v3  ;;  %1702 = vmatprep.mubr.f32.mxu0 %v9871_v3  ;;  %9841 = vpow2.f32 %v9160_v60 }
 0x163   : > { %v2296_v4 = vsel %vm856_vm5, %v10467_v62, %v10472_v1  ;;  %9843 = vpow2.f32 %v9159_v48 }
 0x164   : > { %5881 = vrot.lane.b32.xlu0 %v10276_v49, %s9880_s26 }
 0x165   : > { %5728 = vrot.lane.b32.xlu1 %v10276_v49, %s9879_s23  ;;  %v10546_v30 = vpop.permute.xlu0 %2586 }
 0x166   : > { %9338 = vmatmul.mubr.msk.f32.vlgmr.msra.gmra.mrb[0].mxu1 %vm404_vm2, %v10477_v7  ;;  %9042 = vmatmul.mubr.msk.f32.vlgmr.msra.gmra.mrb[0].mxu0 %vm404_vm2, %v10477_v7  ;;  %v10494_v12 = vpop.permute.xlu1 %2293  ;;  %v2593_v22 = vsel %vm1160_vm6, %v10546_v30, %v10507_v16 }
 0x167   : > { %9341 = vmatpush3.msra.mxu1 %v1851_v54  ;;  %1855 = vmatpush1.msra.mxu0 %v1853_v9  ;;  %v2297_v61 = vsel %vm856_vm5, %v10494_v12, %v10467_v62 }
 0x168   : > { %1995 = vmatprep.subr.mxu0 %v1843_v15  ;;  %6093 = vrot.lane.b32.xlu0 %v10497_v13, %s9873_s17 }
 0x169   : > { %5879 = vrot.lane.b32.xlu1 %v10303_v58, %s9880_s26  ;;  %9342 = vmatprep.mubr.msk.f32.mxu1 %vm9872_vm0, %v9871_v3  ;;  %v10585_v59 = vpop.permute.xlu0 %2743 }
 0x16a   : > { %9345 = vmatprep.subr.mxu1 %v9871_v3  ;;  %1918 = vmatprep.mubr.f32.mxu0 %v9871_v3  ;;  %v10530_v6 = vpop.permute.xlu1 %2590 }
 0x16b   : > { %9343 = vmatmul.mubr.msk.f32.vlgmr.msra.gmra.mrb[2].mxu1 %vm404_vm2, %v10184_v0  ;;  %9053 = vmatmul.mubr.msk.f32.vlgmr.msra.gmra.mrb[2].mxu0 %vm404_vm2, %v10184_v0  ;;  %v2592_v9 = vsel %vm1160_vm6, %v10507_v16, %v10530_v6  ;;  %v2594_v18 = vsel %vm1160_vm6, %v10530_v6, %v10546_v30 }
 0x16c   : > { %9346 = vmatpush3.msra.mxu1 %v1842_v23  ;;  %1996 = vmatpush1.msra.mxu0 %v1844_v24 }
 0x16d   : > { %2145 = vmatprep.subr.mxu0 %v2143_v26  ;;  %6097 = vrot.lane.b32.xlu0 %v10528_v25, %s9873_s17  ;;  %v10603_v57 = vpop.permute.xlu0 %2894 }
 0x16e   : > { %5877 = vrot.lane.b32.xlu1 %v10254_v35, %s9880_s26  ;;  %9347 = vmatprep.mubr.msk.f32.mxu1 %vm9872_vm0, %v9871_v3  ;;  %v10561_v47 = vpop.permute.xlu1 %2741 }
 0x16f   : > { %9350 = vmatprep.subr.mxu1 %v9871_v3  ;;  %2059 = vmatprep.mubr.f32.mxu0 %v9871_v3  ;;  %v2745_v38 = vsel %vm1317_vm7, %v10561_v47, %v10585_v59 }
 0x171   : > { %6086 = vrot.lane.b32.xlu0 %v10549_v34, %s9874_s18  ;;  %v10631_v62 = vpop.permute.xlu0 %2892 }
 0x172   : > { %6095 = vrot.lane.b32.xlu1 %v10549_v34, %s9873_s17  ;;  %v10596_v11 = vpop.permute.xlu1 %2739 }
 0x173   : > { %9348 = vmatmul.mubr.msk.f32.vlgmr.msra.gmra.mrb[2].mxu1 %vm404_vm2, %v10214_v17  ;;  %9055 = vmatmul.mubr.msk.f32.vlgmr.msra.gmra.mrb[2].mxu0 %vm404_vm2, %v10214_v17  ;;  %v2747_v6 = vsel %vm1317_vm7, %v10585_v59, %v10596_v11  ;;  %v2746_v26 = vsel %vm1317_vm7, %v10596_v11, %v10561_v47 }
 0x174   : > { %9351 = vmatpush3.msra.mxu1 %v2142_v51  ;;  %2146 = vmatpush1.msra.mxu0 %v2144_v53 }
 0x175   : > { %2298 = vmatprep.subr.mxu0 %v2296_v4  ;;  %6384 = vrot.lane.b32.xlu0 %v10497_v13, %s9875_s19  ;;  %v10655_v14 = vpop.permute.xlu0 %3049 }
 0x176   : > { %6084 = vrot.lane.b32.xlu1 %v10497_v13, %s9874_s18  ;;  %9352 = vmatprep.mubr.msk.f32.mxu1 %vm9872_vm0, %v9871_v3  ;;  %v10620_v19 = vpop.permute.xlu1 %2896 }
 0x177   : > { %9355 = vmatprep.subr.mxu1 %v9871_v3  ;;  %2209 = vmatprep.mubr.f32.mxu0 %v9871_v3  ;;  %v2295_v3 = vsel %vm856_vm5, %v10472_v1, %v10494_v12  ;;  %v9840_v1 = vpop.eup %9839  ;;  %v2898_v39 = vsel %vm1474_vm8, %v10603_v57, %v10620_v19  ;;  %v2900_v53 = vsel %vm1474_vm8, %v10620_v19, %v10631_v62 }
 0x178   : > { %v9842_v8 = vpop.eup %9841 }
 0x179   : > { %6388 = vrot.lane.b32.xlu0 %v10528_v25, %s9875_s19  ;;  %v9844_v12 = vpop.eup %9843  ;;  %v10681_v21 = vpop.permute.xlu0 %3261 }
 0x17a   : > { %6088 = vrot.lane.b32.xlu1 %v10528_v25, %s9874_s18  ;;  %v10641_v54 = vpop.permute.xlu1 %3047 }
 0x17b   : > { %9353 = vmatmul.mubr.msk.f32.vlgmr.msra.gmra.mrb[2].mxu1 %vm404_vm2, %v10248_v33  ;;  %9057 = vmatmul.mubr.msk.f32.vlgmr.msra.gmra.mrb[2].mxu0 %vm404_vm2, %v10248_v33  ;;  %v3051_v59 = vsel %vm1631_vm9, %v10641_v54, %v10655_v14 }
 0x17c   : > { %9356 = vmatpush3.msra.mxu1 %v2295_v3  ;;  %2299 = vmatpush1.msra.mxu0 %v2297_v61 }
 0x17d   : > { %2442 = vmatprep.subr.mxu0 %v10069_v10  ;;  %6539 = vrot.lane.b32.xlu0 %v10549_v34, %s9876_s20  ;;  %v7485_v10 = vadd.f32 1.0, %v9840_v1  ;;  %v10697_v24 = vpop.permute.xlu0 %3265 }
 0x17e   : > { %6386 = vrot.lane.b32.xlu1 %v10549_v34, %s9875_s19  ;;  %9357 = vmatprep.mubr.msk.f32.mxu1 %vm9872_vm0, %v10625_v42  ;;  %v10661_v15 = vpop.permute.xlu1 %3045 }
 0x17f   : > { %9360 = vmatprep.subr.mxu1 %v10625_v42  ;;  %2362 = vmatprep.mubr.f32.mxu0 %v10625_v42  ;;  %9845 = vrcp.f32 %v7485_v10  ;;  %v3052_v3 = vsel %vm1631_vm9, %v10661_v15, %v10641_v54 }
 0x181   : > { %6836 = vrot.lane.b32.xlu0 %v10549_v34, %s9877_s21  ;;  %v3255_v50 = vpop.permute.xlu0 %3254 }
 0x182   : > { %6537 = vrot.lane.b32.xlu1 %v10497_v13, %s9876_s20  ;;  %v10691_v23 = vpop.permute.xlu1 %3263 }
 0x183   : > { %9358 = vmatmul.mubr.msk.f32.vlgmr.msra.gmra.mrb[2].mxu1 %vm404_vm2, %v10287_v45  ;;  %9059 = vmatmul.mubr.msk.f32.vlgmr.msra.gmra.mrb[2].mxu0 %vm404_vm2, %v10287_v45  ;;  %v3268_v61 = vsel %vm400_vm1, %v10681_v21, %v10691_v23  ;;  %v3267_v10 = vsel %vm400_vm1, %v10691_v23, %v10697_v24 }
 0x184   : > { %9361 = vmatpush3.msra.mxu1 %v10059_v5  ;;  %2443 = vmatpush1.msra.mxu0 %v10051_v63  ;;  %v7487_v5 = vadd.f32 1.0, %v9842_v8  ;;  %v7486_v63 = vadd.f32 1.0, %v9844_v12  ;;  %v3269_v8 = vsel %vm400_vm1, %v10697_v24, %v10681_v21 }
 0x185   : > { %2595 = vmatprep.subr.mxu0 %v2592_v9  ;;  %6834 = vrot.lane.b32.xlu0 %v10497_v13, %s9877_s21  ;;  %v3553_v60 = vpop.permute.xlu0 %3552 }
 0x186   : > { %6541 = vrot.lane.b32.xlu1 %v10528_v25, %s9876_s20  ;;  %9362 = vmatprep.mubr.msk.f32.mxu1 %vm9872_vm0, %v10625_v42  ;;  %9847 = vrcp.f32 %v7487_v5  ;;  %v10718_v41 = vpop.permute.xlu1 %3252 }
 0x187   : > { %9365 = vmatprep.subr.mxu1 %v10625_v42  ;;  %2506 = vmatprep.mubr.f32.mxu0 %v10625_v42  ;;  %9849 = vrcp.f32 %v7486_v63  ;;  %v3259_v54 = vsel %vm390_vm3, %v10718_v41, %v3255_v50 }
 0x189   : > { %6991 = vrot.lane.b32.xlu0 %v10528_v25, %s9878_s22  ;;  %v9846_v16 = vpop.eup %9845  ;;  %v3557_v19 = vpop.permute.xlu0 %3556 }
 0x18a   : > { %6838 = vrot.lane.b32.xlu1 %v10528_v25, %s9877_s21  ;;  %v7494_v27 = vmul.f32 %v9846_v16, %v10540_v28 }
 0x18b   : > { %9363 = vmatmul.mubr.msk.f32.vlgmr.msra.gmra.mrb[2].mxu1 %vm404_vm2, %v10330_v2  ;;  %9061 = vmatmul.mubr.msk.f32.vlgmr.msra.gmra.mrb[2].mxu0 %vm404_vm2, %v10330_v2 }
 0x18c   : > { %9366 = vmatpush3.msra.mxu1 %v2594_v18  ;;  %2596 = vmatpush1.msra.mxu0 %v2593_v22  ;;  %v10725_v43 = vmul.f32 %v7494_v27, %v9984_v32  ;;  %v3560_v22 = vsel %vm699_vm4, %v3557_v19, %v3553_v60 }
 0x18d   : > { %2748 = vmatprep.subr.mxu0 %v2745_v38  ;;  %7142 = vrot.lane.b32.xlu0 %v10549_v34, %s9879_s23 }
 0x18e   : > { %6989 = vrot.lane.b32.xlu1 %v10549_v34, %s9878_s22  ;;  %9367 = vmatprep.mubr.msk.f32.mxu1 %vm9872_vm0, %v10625_v42 }
 0x18f   : > { %9370 = vmatprep.subr.mxu1 %v10625_v42  ;;  %2659 = vmatprep.mubr.f32.mxu0 %v10625_v42 }
 0x190   : > { %v9848_v30 = vpop.eup %9847 }
 0x191   : > { %7140 = vrot.lane.b32.xlu0 %v10497_v13, %s9879_s23  ;;  %v9850_v28 = vpop.eup %9849  ;;  %v7496_v47 = vmul.f32 %v9848_v30, %v10559_v46  ;;  %v2899_v46 = vsel %vm1474_vm8, %v10631_v62, %v10603_v57  ;;  %v3053_v57 = vsel %vm1631_vm9, %v10655_v14, %v10661_v15  ;;  %v3708_v62 = vpop.permute.xlu0 %3707 }
 0x192   : > { %6987 = vrot.lane.b32.xlu1 %v10497_v13, %s9878_s22  ;;  %v7495_v51 = vmul.f32 %v9850_v28, %v10583_v52  ;;  %v3257_v52 = vpop.permute.xlu1 %3256 }
 0x193   : > { %9368 = vmatmul.mubr.msk.f32.vlgmr.msra.gmra.mrb[2].mxu1 %vm404_vm2, %v10369_v20  ;;  %9063 = vmatmul.mubr.msk.f32.vlgmr.msra.gmra.mrb[2].mxu0 %vm404_vm2, %v10369_v20  ;;  %v10748_v4 = vmul.f32 %v7496_v47, %v9982_v29  ;;  %v3258_v12 = vsel %vm390_vm3, %v3255_v50, %v3257_v52  ;;  %v3260_v5 = vsel %vm390_vm3, %v3257_v52, %v10718_v41 }
 0x194   : > { %9371 = vmatpush3.msra.mxu1 %v2747_v6  ;;  %2749 = vmatpush1.msra.mxu0 %v2746_v26  ;;  %v10761_v11 = vmul.f32 %v7495_v51, %v9990_v40 }
 0x195   : > { %2901 = vmatprep.subr.mxu0 %v2898_v39  ;;  %7297 = vrot.lane.b32.xlu0 %v10528_v25, %s9880_s26  ;;  %v10829_v14 = vpop.permute.xlu0 %4004 }
 0x196   : > { %7144 = vrot.lane.b32.xlu1 %v10528_v25, %s9879_s23  ;;  %9372 = vmatprep.mubr.msk.f32.mxu1 %vm9872_vm0, %v10625_v42  ;;  %v3555_v48 = vpop.permute.xlu1 %3554 }
 0x197   : > { %9375 = vmatprep.subr.mxu1 %v10625_v42  ;;  %2812 = vmatprep.mubr.f32.mxu0 %v10625_v42  ;;  %v3559_v63 = vsel %vm699_vm4, %v3553_v60, %v3555_v48  ;;  %v3558_v18 = vsel %vm699_vm4, %v3555_v48, %v3557_v19 }
 0x199   : > { %7509 = vrot.lane.b32.xlu0 %v10725_v43, %s9873_s17  ;;  %v4003_v15 = vpop.permute.xlu0 %4002 }
 0x19a   : > { %7295 = vrot.lane.b32.xlu1 %v10549_v34, %s9880_s26  ;;  %v3706_v1 = vpop.permute.xlu1 %3705 }
 0x19b   : > { %9373 = vmatmul.mubr.msk.f32.vlgmr.msra.gmra.mrb[2].mxu1 %vm404_vm2, %v10403_v37  ;;  %9065 = vmatmul.mubr.msk.f32.vlgmr.msra.gmra.mrb[2].mxu0 %vm404_vm2, %v10403_v37  ;;  %v3712_v38 = vsel %vm856_vm5, %v3706_v1, %v3708_v62 }
 0x19c   : > { %9376 = vmatpush3.msra.mxu1 %v2900_v53  ;;  %2902 = vmatpush1.msra.mxu0 %v2899_v46 }
 0x19d   : > { %3054 = vmatprep.subr.mxu0 %v3051_v59  ;;  %7513 = vrot.lane.b32.xlu0 %v10748_v4, %s9873_s17 }
 0x19e   : > { %7293 = vrot.lane.b32.xlu1 %v10497_v13, %s9880_s26  ;;  %9377 = vmatprep.mubr.msk.f32.mxu1 %vm9872_vm0, %v10625_v42  ;;  %v3710_v9 = vpop.permute.xlu1 %3709 }
 0x19f   : > { %9380 = vmatprep.subr.mxu1 %v10625_v42  ;;  %2965 = vmatprep.mubr.f32.mxu0 %v10625_v42  ;;  %v3711_v16 = vsel %vm856_vm5, %v3708_v62, %v3710_v9  ;;  %v3713_v23 = vsel %vm856_vm5, %v3710_v9, %v3706_v1 }
 0x1a1   : > { %7502 = vrot.lane.b32.xlu0 %v10761_v11, %s9874_s18 }
 0x1a2   : > { %7511 = vrot.lane.b32.xlu1 %v10761_v11, %s9873_s17 }
 0x1a3   : > { %9378 = vmatmul.mubr.msk.f32.vlgmr.msra.gmra.mrb[2].mxu1 %vm404_vm2, %v10439_v55  ;;  %9067 = vmatmul.mubr.msk.f32.vlgmr.msra.gmra.mrb[2].mxu0 %vm404_vm2, %v10439_v55 }
 0x1a4   : > { %9381 = vmatpush3.msra.mxu1 %v3053_v57  ;;  %3055 = vmatpush1.msra.mxu0 %v3052_v3 }
 0x1a5   : > { %3270 = vmatprep.subr.mxu0 %v3268_v61  ;;  %7800 = vrot.lane.b32.xlu0 %v10725_v43, %s9875_s19 }
 0x1a6   : > { %7500 = vrot.lane.b32.xlu1 %v10725_v43, %s9874_s18  ;;  %9382 = vmatprep.mubr.msk.f32.mxu1 %vm9872_vm0, %v10625_v42 }
 0x1a7   : > { %9385 = vmatprep.subr.mxu1 %v10625_v42  ;;  %3118 = vmatprep.mubr.f32.mxu0 %v10625_v42 }
 0x1a9   : > { %7804 = vrot.lane.b32.xlu0 %v10748_v4, %s9875_s19 }
 0x1aa   : > { %7504 = vrot.lane.b32.xlu1 %v10748_v4, %s9874_s18 }
 0x1ab   : > { %9383 = vmatmul.mubr.msk.f32.vlgmr.msra.gmra.mrb[2].mxu1 %vm404_vm2, %v10477_v7  ;;  %9069 = vmatmul.mubr.msk.f32.vlgmr.msra.gmra.mrb[2].mxu0 %vm404_vm2, %v10477_v7 }
 0x1ac   : > { %9386 = vmatpush3.msra.mxu1 %v3267_v10  ;;  %3271 = vmatpush1.msra.mxu0 %v3269_v8 }
 0x1ad   : > { %3411 = vmatprep.subr.mxu0 %v3259_v54  ;;  %7955 = vrot.lane.b32.xlu0 %v10761_v11, %s9876_s20 }
 0x1ae   : > { %7802 = vrot.lane.b32.xlu1 %v10761_v11, %s9875_s19  ;;  %9387 = vmatprep.mubr.msk.f32.mxu1 %vm9872_vm0, %v10625_v42 }
 0x1af   : > { %9390 = vmatprep.subr.mxu1 %v10625_v42  ;;  %3334 = vmatprep.mubr.f32.mxu0 %v10625_v42 }
 0x1b0   : > { %9388 = vmatmul.mubr.msk.f32.vlgmr.msra.gmra.mrb[4].mxu1 %vm404_vm2, %v10184_v0  ;;  %9080 = vmatmul.mubr.msk.f32.vlgmr.msra.gmra.mrb[4].mxu0 %vm404_vm2, %v10184_v0  ;;  %v4007_v0 = vpop.permute.xlu1 %4006 }
 0x1b1   : > { %9391 = vmatpush3.msra.mxu1 %v3258_v12  ;;  %3412 = vmatpush1.msra.mxu0 %v3260_v5 }
 0x1b2   : > { %3561 = vmatprep.subr.mxu0 %v3559_v63  ;;  %8252 = vrot.lane.b32.xlu0 %v10761_v11, %s9877_s21 }
 0x1b3   : > { %7953 = vrot.lane.b32.xlu1 %v10725_v43, %s9876_s20  ;;  %9392 = vmatprep.mubr.msk.f32.mxu1 %vm9872_vm0, %v10625_v42 }
 0x1b4   : > { %9395 = vmatprep.subr.mxu1 %v10625_v42  ;;  %3475 = vmatprep.mubr.f32.mxu0 %v10625_v42  ;;  %v4158_v21 = vpop.permute.xlu1 %4157 }
 0x1b6   : > { %8250 = vrot.lane.b32.xlu0 %v10725_v43, %s9877_s21 }
 0x1b7   : > { %7957 = vrot.lane.b32.xlu1 %v10748_v4, %s9876_s20 }
 0x1b8   : > { %9393 = vmatmul.mubr.msk.f32.vlgmr.msra.gmra.mrb[4].mxu1 %vm404_vm2, %v10214_v17  ;;  %9082 = vmatmul.mubr.msk.f32.vlgmr.msra.gmra.mrb[4].mxu0 %vm404_vm2, %v10214_v17  ;;  %v4160_v17 = vpop.permute.xlu0 %4159  ;;  %v4156_v24 = vpop.permute.xlu1 %4155 }
 0x1b9   : > { %9396 = vmatpush3.msra.mxu1 %v3558_v18  ;;  %3562 = vmatpush1.msra.mxu0 %v3560_v22  ;;  %v4161_v39 = vsel %vm1317_vm7, %v4158_v21, %v4160_v17  ;;  %v4162_v47 = vsel %vm1317_vm7, %v4156_v24, %v4158_v21  ;;  %v4163_v50 = vsel %vm1317_vm7, %v4160_v17, %v4156_v24 }
 0x1ba   : > { %3714 = vmatprep.subr.mxu0 %v3712_v38  ;;  %8407 = vrot.lane.b32.xlu0 %v10748_v4, %s9878_s22 }
 0x1bb   : > { %8254 = vrot.lane.b32.xlu1 %v10748_v4, %s9877_s21  ;;  %9397 = vmatprep.mubr.msk.f32.mxu1 %vm9872_vm0, %v10625_v42 }
 0x1bc   : > { %9400 = vmatprep.subr.mxu1 %v10625_v42  ;;  %3625 = vmatprep.mubr.f32.mxu0 %v10625_v42  ;;  %v4311_v6 = vpop.permute.xlu0 %4310  ;;  %v4313_v26 = vpop.permute.xlu1 %4312 }
 0x1bd   : > { %v4314_v53 = vsel %vm1474_vm8, %v4311_v6, %v4313_v26 }
 0x1be   : > { %8558 = vrot.lane.b32.xlu0 %v10761_v11, %s9879_s23 }
 0x1bf   : > { %8405 = vrot.lane.b32.xlu1 %v10761_v11, %s9878_s22 }
 0x1c0   : > { %9398 = vmatmul.mubr.msk.f32.vlgmr.msra.gmra.mrb[4].mxu1 %vm404_vm2, %v10248_v33  ;;  %9084 = vmatmul.mubr.msk.f32.vlgmr.msra.gmra.mrb[4].mxu0 %vm404_vm2, %v10248_v33  ;;  %v4008_v33 = vsel %vm1160_vm6, %v10829_v14, %v4007_v0  ;;  %v4464_v27 = vpop.permute.xlu1 %4463 }
 0x1c1   : > { %9401 = vmatpush3.msra.mxu1 %v3711_v16  ;;  %3715 = vmatpush1.msra.mxu0 %v3713_v23  ;;  %v11002_v23 = vld [vmem:[%s11427_s1] sm:$0xff] }
 0x1c2   : > { %3858 = vmatprep.subr.mxu0 %v10137_v44  ;;  %8556 = vrot.lane.b32.xlu0 %v10725_v43, %s9879_s23  ;;  %v4309_v44 = vpop.permute.xlu0 %4308 }
 0x1c3   : > { %8403 = vrot.lane.b32.xlu1 %v10725_v43, %s9878_s22  ;;  %9402 = vmatprep.mubr.msk.f32.mxu1 %vm9872_vm0, %v10625_v42  ;;  %v4315_v59 = vsel %vm1474_vm8, %v4309_v44, %v4311_v6  ;;  %v4316_v60 = vsel %vm1474_vm8, %v4313_v26, %v4309_v44 }
 0x1c4   : > { %9405 = vmatprep.subr.mxu1 %v10625_v42  ;;  %3778 = vmatprep.mubr.f32.mxu0 %v10625_v42  ;;  %v4462_v41 = vpop.permute.xlu1 %4461 }
 0x1c5   : > { %v4468_v19 = vsel %vm1631_vm9, %v4462_v41, %v4464_v27 }
 0x1c6   : > { %8713 = vrot.lane.b32.xlu0 %v10748_v4, %s9880_s26  ;;  %v4466_v30 = vpop.permute.xlu0 %4465 }
 0x1c7   : > { %8560 = vrot.lane.b32.xlu1 %v10748_v4, %s9879_s23  ;;  %v4467_v57 = vsel %vm1631_vm9, %v4464_v27, %v4466_v30  ;;  %v4469_v1 = vsel %vm1631_vm9, %v4466_v30, %v4462_v41  ;;  %v11021_v27 = vld [vmem:[%s11427_s1 + $0x10] sm:$0xff] }
 0x1c8   : > { %9403 = vmatmul.mubr.msk.f32.vlgmr.msra.gmra.mrb[4].mxu1 %vm404_vm2, %v10287_v45  ;;  %9086 = vmatmul.mubr.msk.f32.vlgmr.msra.gmra.mrb[4].mxu0 %vm404_vm2, %v10287_v45  ;;  %v4680_v51 = vpop.permute.xlu1 %4679 }
 0x1c9   : > { %9406 = vmatpush3.msra.mxu1 %v10125_v36  ;;  %3859 = vmatpush1.msra.mxu0 %v10117_v31  ;;  %v4009_v31 = vsel %vm1160_vm6, %v4003_v15, %v10829_v14  ;;  %v4010_v36 = vsel %vm1160_vm6, %v4007_v0, %v4003_v15  ;;  %v10983_v15 = vld [vmem:[%s11427_s1 + $0x8] sm:$0xff] }
 0x1ca   : > { %4011 = vmatprep.subr.mxu0 %v4008_v33  ;;  %9407 = vmatprep.mubr.msk.f32.mxu1 %vm9872_vm0, %v10625_v42  ;;  %v4678_v28 = vpop.permute.xlu0 %4677 }
 0x1cb   : > { %8711 = vrot.lane.b32.xlu1 %v10761_v11, %s9880_s26  ;;  %9410 = vmatprep.subr.mxu1 %v10625_v42  ;;  %v4684_v62 = vsel %vm400_vm1, %v4678_v28, %v4680_v51 }
 0x1cc   : > { %3922 = vmatprep.mubr.f32.mxu0 %v10625_v42  ;;  %v4669_v52 = vpop.permute.xlu1 %4668 }
 0x1ce   : > { %v4682_v46 = vpop.permute.xlu0 %4681 }
 0x1cf   : > { %8709 = vrot.lane.b32.xlu1 %v10725_v43, %s9880_s26  ;;  %v4685_v54 = vsel %vm400_vm1, %v4682_v46, %v4678_v28  ;;  %v4683_v9 = vsel %vm400_vm1, %v4680_v51, %v4682_v46 }
 0x1d0   : > { %9408 = vmatmul.mubr.msk.f32.vlgmr.msra.gmra.mrb[4].mxu1 %vm404_vm2, %v10330_v2  ;;  %9088 = vmatmul.mubr.msk.f32.vlgmr.msra.gmra.mrb[4].mxu0 %vm404_vm2, %v10330_v2  ;;  %v4673_v3 = vpop.permute.xlu1 %4672 }
 0x1d1   : > { %9411 = vmatpush3.msra.mxu1 %v4010_v36  ;;  %4012 = vmatpush1.msra.mxu0 %v4009_v31  ;;  %v4676_v0 = vsel %vm390_vm3, %v4673_v3, %v4669_v52 }
 0x1d2   : > { %4164 = vmatprep.subr.mxu0 %v4161_v39  ;;  %9412 = vmatprep.mubr.msk.f32.mxu1 %vm9872_vm0, %v10625_v42  ;;  %v4671_v48 = vpop.permute.xlu0 %4670 }
 0x1d3   : > { %9415 = vmatprep.subr.mxu1 %v10625_v42  ;;  %4075 = vmatprep.mubr.f32.mxu0 %v10625_v42  ;;  %v4675_v5 = vsel %vm390_vm3, %v4669_v52, %v4671_v48  ;;  %v4674_v63 = vsel %vm390_vm3, %v4671_v48, %v4673_v3 }
 0x1d4   : > { %v4971_v10 = vpop.permute.xlu1 %4970 }
 0x1d6   : > { %v4969_v61 = vpop.permute.xlu0 %4968 }
 0x1d7   : > { %v4975_v18 = vsel %vm699_vm4, %v4969_v61, %v4971_v10 }
 0x1d8   : > { %9413 = vmatmul.mubr.msk.f32.vlgmr.msra.gmra.mrb[4].mxu1 %vm404_vm2, %v10369_v20  ;;  %9090 = vmatmul.mubr.msk.f32.vlgmr.msra.gmra.mrb[4].mxu0 %vm404_vm2, %v10369_v20  ;;  %v5122_v12 = vpop.permute.xlu1 %5121 }
 0x1d9   : > { %9416 = vmatpush3.msra.mxu1 %v4163_v50  ;;  %4165 = vmatpush1.msra.mxu0 %v4162_v47 }
 0x1da   : > { %4317 = vmatprep.subr.mxu0 %v4314_v53  ;;  %9417 = vmatprep.mubr.msk.f32.mxu1 %vm9872_vm0, %v10625_v42  ;;  %v4973_v8 = vpop.permute.xlu0 %4972 }
 0x1db   : > { %9420 = vmatprep.subr.mxu1 %v10625_v42  ;;  %4228 = vmatprep.mubr.f32.mxu0 %v10625_v42  ;;  %v4976_v21 = vsel %vm699_vm4, %v4973_v8, %v4969_v61  ;;  %v4974_v17 = vsel %vm699_vm4, %v4971_v10, %v4973_v8 }
 0x1dc   : > { %v5126_v22 = vpop.permute.xlu1 %5125 }
 0x1dd   : > { %v5129_v33 = vsel %vm856_vm5, %v5126_v22, %v5122_v12 }
 0x1de   : > { %v5124_v14 = vpop.permute.xlu0 %5123 }
 0x1df   : > { %v5128_v24 = vsel %vm856_vm5, %v5122_v12, %v5124_v14  ;;  %v5127_v44 = vsel %vm856_vm5, %v5124_v14, %v5126_v22 }
 0x1e0   : > { %9418 = vmatmul.mubr.msk.f32.vlgmr.msra.gmra.mrb[4].mxu1 %vm404_vm2, %v10403_v37  ;;  %9092 = vmatmul.mubr.msk.f32.vlgmr.msra.gmra.mrb[4].mxu0 %vm404_vm2, %v10403_v37  ;;  %v5423_v16 = vpop.permute.xlu1 %5422 }
 0x1e1   : > { %9421 = vmatpush3.msra.mxu1 %v4316_v60  ;;  %4318 = vmatpush1.msra.mxu0 %v4315_v59 }
 0x1e2   : > { %4470 = vmatprep.subr.mxu0 %v4467_v57  ;;  %9422 = vmatprep.mubr.msk.f32.mxu1 %vm9872_vm0, %v10625_v42  ;;  %v5421_v38 = vpop.permute.xlu0 %5420 }
 0x1e3   : > { %9425 = vmatprep.subr.mxu1 %v10625_v42  ;;  %4381 = vmatprep.mubr.f32.mxu0 %v10625_v42 }
 0x1e4   : > { %v5574_v26 = vpop.permute.xlu1 %5573 }
 0x1e6   : > { %v5419_v6 = vpop.permute.xlu0 %5418 }
 0x1e8   : > { %9423 = vmatmul.mubr.msk.f32.vlgmr.msra.gmra.mrb[4].mxu1 %vm404_vm2, %v10439_v55  ;;  %9094 = vmatmul.mubr.msk.f32.vlgmr.msra.gmra.mrb[4].mxu0 %vm404_vm2, %v10439_v55  ;;  %v5572_v31 = vpop.permute.xlu1 %5571 }
 0x1e9   : > { %9426 = vmatpush3.msra.mxu1 %v4469_v1  ;;  %4471 = vmatpush1.msra.mxu0 %v4468_v19  ;;  %v5578_v51 = vsel %vm1317_vm7, %v5572_v31, %v5574_v26 }
 0x1ea   : > { %4686 = vmatprep.subr.mxu0 %v4684_v62  ;;  %9427 = vmatprep.mubr.msk.f32.mxu1 %vm9872_vm0, %v10625_v42  ;;  %v5576_v30 = vpop.permute.xlu0 %5575 }
 0x1eb   : > { %9430 = vmatprep.subr.mxu1 %v10625_v42  ;;  %4534 = vmatprep.mubr.f32.mxu0 %v10625_v42  ;;  %v5577_v28 = vsel %vm1317_vm7, %v5574_v26, %v5576_v30 }
 0x1ec   : > { %v5729_v39 = vpop.permute.xlu1 %5728 }
 0x1ee   : > { %v5727_v36 = vpop.permute.xlu0 %5726 }
 0x1ef   : > { %v5730_v46 = vsel %vm1474_vm8, %v5727_v36, %v5729_v39 }
 0x1f0   : > { %9428 = vmatmul.mubr.msk.f32.vlgmr.msra.gmra.mrb[4].mxu1 %vm404_vm2, %v10477_v7  ;;  %9096 = vmatmul.mubr.msk.f32.vlgmr.msra.gmra.mrb[4].mxu0 %vm404_vm2, %v10477_v7 }
 0x1f1   : > { %9431 = vmatpush3.msra.mxu1 %v4683_v9  ;;  %4687 = vmatpush1.msra.mxu0 %v4685_v54 }
 0x1f2   : > { %4827 = vmatprep.subr.mxu0 %v4675_v5  ;;  %9432 = vmatprep.mubr.msk.f32.mxu1 %vm9872_vm0, %v10625_v42  ;;  %v5725_v41 = vpop.permute.xlu0 %5724 }
 0x1f3   : > { %9435 = vmatprep.subr.mxu1 %v10625_v42  ;;  %4750 = vmatprep.mubr.f32.mxu0 %v10625_v42  ;;  %v5731_v60 = vsel %vm1474_vm8, %v5725_v41, %v5727_v36 }
 0x1f4   : > { %9433 = vmatmul.mubr.msk.f32.vlgmr.msra.gmra.mrb[6].mxu1 %vm404_vm2, %v10983_v15  ;;  %9107 = vmatmul.mubr.msk.f32.vlgmr.msra.gmra.mrb[6].mxu0 %vm404_vm2, %v10983_v15 }
 0x1f5   : > { %9436 = vmatpush3.msra.mxu1 %v4674_v63  ;;  %4828 = vmatpush1.msra.mxu0 %v4676_v0 }
 0x1f6   : > { %4977 = vmatprep.subr.mxu0 %v4975_v18  ;;  %9437 = vmatprep.mubr.msk.f32.mxu1 %vm9872_vm0, %v10625_v42  ;;  %v5882_v47 = vpop.permute.xlu0 %5881 }
 0x1f7   : > { %9440 = vmatprep.subr.mxu1 %v10625_v42  ;;  %4891 = vmatprep.mubr.f32.mxu0 %v10625_v42 }
 0x1fa   : > { %v6094_v53 = vpop.permute.xlu0 %6093 }
 0x1fc   : > { %9438 = vmatmul.mubr.msk.f32.vlgmr.msra.gmra.mrb[6].mxu1 %vm404_vm2, %v11002_v23  ;;  %9109 = vmatmul.mubr.msk.f32.vlgmr.msra.gmra.mrb[6].mxu0 %vm404_vm2, %v11002_v23 }
 0x1fd   : > { %9441 = vmatpush3.msra.mxu1 %v4974_v17  ;;  %4978 = vmatpush1.msra.mxu0 %v4976_v21 }
 0x1fe   : > { %5130 = vmatprep.subr.mxu0 %v5128_v24  ;;  %9442 = vmatprep.mubr.msk.f32.mxu1 %vm9872_vm0, %v10625_v42  ;;  %v6098_v59 = vpop.permute.xlu0 %6097 }
 0x1ff   : > { %9445 = vmatprep.subr.mxu1 %v10625_v42  ;;  %5041 = vmatprep.mubr.f32.mxu0 %v10625_v42  ;;  %v6101_v8 = vsel %vm400_vm1, %v6098_v59, %v6094_v53 }
 0x202   : > { %v6087_v3 = vpop.permute.xlu0 %6086 }
 0x204   : > { %9443 = vmatmul.mubr.msk.f32.vlgmr.msra.gmra.mrb[6].mxu1 %vm404_vm2, %v11021_v27  ;;  %9111 = vmatmul.mubr.msk.f32.vlgmr.msra.gmra.mrb[6].mxu0 %vm404_vm2, %v11021_v27 }
 0x205   : > { %9446 = vmatpush3.msra.mxu1 %v5127_v44  ;;  %5131 = vmatpush1.msra.mxu0 %v5129_v33 }
 0x206   : > { %5274 = vmatprep.subr.mxu0 %v10303_v58  ;;  %9447 = vmatprep.mubr.msk.f32.mxu1 %vm9872_vm0, %v10625_v42  ;;  %v5424_v58 = vsel %vm1160_vm6, %v5421_v38, %v5423_v16  ;;  %v6385_v62 = vpop.permute.xlu0 %6384 }
 0x207   : > { %9450 = vmatprep.subr.mxu1 %v10625_v42  ;;  %5194 = vmatprep.mubr.f32.mxu0 %v10625_v42 }
 0x20a   : > { %v6389_v54 = vpop.permute.xlu0 %6388 }
 0x20b   : > { %v6392_v33 = vsel %vm699_vm4, %v6389_v54, %v6385_v62 }
 0x20c   : > { %9448 = vmatmul.mubr.msk.f32.vlgmr.msra.gmra.mrb[6].mxu1 %vm404_vm2, %v10287_v45  ;;  %9113 = vmatmul.mubr.msk.f32.vlgmr.msra.gmra.mrb[6].mxu0 %vm404_vm2, %v10287_v45  ;;  %v5425_v45 = vsel %vm1160_vm6, %v5419_v6, %v5421_v38 }
 0x20d   : > { %9451 = vmatpush3.msra.mxu1 %v10276_v49  ;;  %5275 = vmatpush1.msra.mxu0 %v10254_v35  ;;  %v5426_v49 = vsel %vm1160_vm6, %v5423_v16, %v5419_v6  ;;  %v5880_v35 = vpop.permute.xlu1 %5879 }
 0x20e   : > { %5427 = vmatprep.subr.mxu0 %v5424_v58  ;;  %9452 = vmatprep.mubr.msk.f32.mxu1 %vm9872_vm0, %v10625_v42  ;;  %v5883_v48 = vsel %vm1631_vm9, %v5880_v35, %v5882_v47  ;;  %v6540_v38 = vpop.permute.xlu0 %6539 }
 0x20f   : > { %9455 = vmatprep.subr.mxu1 %v10625_v42  ;;  %5338 = vmatprep.mubr.f32.mxu0 %v10625_v42 }
 0x211   : > { %v5878_v50 = vpop.permute.xlu1 %5877 }
 0x212   : > { %v5884_v61 = vsel %vm1631_vm9, %v5878_v50, %v5880_v35 }
 0x214   : > { %9453 = vmatmul.mubr.msk.f32.vlgmr.msra.gmra.mrb[6].mxu1 %vm404_vm2, %v10330_v2  ;;  %9115 = vmatmul.mubr.msk.f32.vlgmr.msra.gmra.mrb[6].mxu0 %vm404_vm2, %v10330_v2  ;;  %v5579_v2 = vsel %vm1317_vm7, %v5576_v30, %v5572_v31 }
 0x215   : > { %9456 = vmatpush3.msra.mxu1 %v5426_v49  ;;  %5428 = vmatpush1.msra.mxu0 %v5425_v45  ;;  %v6096_v52 = vpop.permute.xlu1 %6095 }
 0x216   : > { %5580 = vmatprep.subr.mxu0 %v5577_v28  ;;  %9457 = vmatprep.mubr.msk.f32.mxu1 %vm9872_vm0, %v10625_v42  ;;  %v6100_v1 = vsel %vm400_vm1, %v6094_v53, %v6096_v52  ;;  %v11164_v53 = vld [vmem:[%s11427_s1 + $0x18] sm:$0xff] }
 0x217   : > { %9460 = vmatprep.subr.mxu1 %v10625_v42  ;;  %5491 = vmatprep.mubr.f32.mxu0 %v10625_v42 }
 0x219   : > { %v6085_v57 = vpop.permute.xlu1 %6084 }
 0x21a   : > { %v6091_v9 = vsel %vm390_vm3, %v6085_v57, %v6087_v3 }
 0x21c   : > { %9458 = vmatmul.mubr.msk.f32.vlgmr.msra.gmra.mrb[6].mxu1 %vm404_vm2, %v10369_v20  ;;  %9117 = vmatmul.mubr.msk.f32.vlgmr.msra.gmra.mrb[6].mxu0 %vm404_vm2, %v10369_v20  ;;  %v5732_v20 = vsel %vm1474_vm8, %v5729_v39, %v5725_v41  ;;  %v6837_v39 = vpop.permute.xlu0 %6836 }
 0x21d   : > { %9461 = vmatpush3.msra.mxu1 %v5579_v2  ;;  %5581 = vmatpush1.msra.mxu0 %v5578_v51  ;;  %v6089_v19 = vpop.permute.xlu1 %6088 }
 0x21e   : > { %5733 = vmatprep.subr.mxu0 %v5730_v46  ;;  %9462 = vmatprep.mubr.msk.f32.mxu1 %vm9872_vm0, %v10625_v42  ;;  %v6090_v12 = vsel %vm390_vm3, %v6087_v3, %v6089_v19 }
 0x21f   : > { %9465 = vmatprep.subr.mxu1 %v10625_v42  ;;  %5644 = vmatprep.mubr.f32.mxu0 %v10625_v42 }
 0x220   : > { %v6835_v35 = vpop.permute.xlu0 %6834 }
 0x221   : > { %v6387_v10 = vpop.permute.xlu1 %6386 }
 0x222   : > { %v6391_v14 = vsel %vm699_vm4, %v6385_v62, %v6387_v10  ;;  %v6390_v30 = vsel %vm699_vm4, %v6387_v10, %v6389_v54  ;;  %v11223_v54 = vld [vmem:[%s11427_s1 + $0x30] sm:$0xff] }
 0x224   : > { %9463 = vmatmul.mubr.msk.f32.vlgmr.msra.gmra.mrb[6].mxu1 %vm404_vm2, %v10403_v37  ;;  %9119 = vmatmul.mubr.msk.f32.vlgmr.msra.gmra.mrb[6].mxu0 %vm404_vm2, %v10403_v37  ;;  %v5885_v37 = vsel %vm1631_vm9, %v5882_v47, %v5878_v50  ;;  %v6992_v51 = vpop.permute.xlu0 %6991 }
 0x225   : > { %9466 = vmatpush3.msra.mxu1 %v5732_v20  ;;  %5734 = vmatpush1.msra.mxu0 %v5731_v60  ;;  %v6538_v5 = vpop.permute.xlu1 %6537 }
 0x226   : > { %5886 = vmatprep.subr.mxu0 %v5883_v48  ;;  %9467 = vmatprep.mubr.msk.f32.mxu1 %vm9872_vm0, %v10625_v42  ;;  %v6544_v41 = vsel %vm856_vm5, %v6538_v5, %v6540_v38 }
 0x227   : > { %9470 = vmatprep.subr.mxu1 %v10625_v42  ;;  %5797 = vmatprep.mubr.f32.mxu0 %v10625_v42 }
 0x228   : > { %v7143_v46 = vpop.permute.xlu0 %7142 }
 0x229   : > { %v6542_v6 = vpop.permute.xlu1 %6541 }
 0x22a   : > { %v6543_v28 = vsel %vm856_vm5, %v6540_v38, %v6542_v6  ;;  %v6545_v47 = vsel %vm856_vm5, %v6542_v6, %v6538_v5 }
 0x22c   : > { %9468 = vmatmul.mubr.msk.f32.vlgmr.msra.gmra.mrb[6].mxu1 %vm404_vm2, %v10439_v55  ;;  %9121 = vmatmul.mubr.msk.f32.vlgmr.msra.gmra.mrb[6].mxu0 %vm404_vm2, %v10439_v55  ;;  %v6099_v55 = vsel %vm400_vm1, %v6096_v52, %v6098_v59  ;;  %v6841_v59 = vsel %vm1160_vm6, %v6835_v35, %v6837_v39  ;;  %v7141_v60 = vpop.permute.xlu0 %7140 }
 0x22d   : > { %9471 = vmatpush3.msra.mxu1 %v5885_v37  ;;  %5887 = vmatpush1.msra.mxu0 %v5884_v61  ;;  %v6839_v49 = vpop.permute.xlu1 %6838  ;;  %v11204_v37 = vld [vmem:[%s11427_s1 + $0x28] sm:$0xff]  ;;  %v7147_v10 = vsel %vm1474_vm8, %v7141_v60, %v7143_v46 }
 0x22e   : > { %6102 = vmatprep.subr.mxu0 %v6100_v1  ;;  %9472 = vmatprep.mubr.msk.f32.mxu1 %vm9872_vm0, %v10625_v42 }
 0x22f   : > { %9475 = vmatprep.subr.mxu1 %v10625_v42  ;;  %5950 = vmatprep.mubr.f32.mxu0 %v10625_v42 }
 0x231   : > { %v6990_v50 = vpop.permute.xlu1 %6989 }
 0x232   : > { %v6993_v20 = vsel %vm1317_vm7, %v6990_v50, %v6992_v51 }
 0x234   : > { %9473 = vmatmul.mubr.msk.f32.vlgmr.msra.gmra.mrb[6].mxu1 %vm404_vm2, %v10477_v7  ;;  %9123 = vmatmul.mubr.msk.f32.vlgmr.msra.gmra.mrb[6].mxu0 %vm404_vm2, %v10477_v7  ;;  %v6092_v7 = vsel %vm390_vm3, %v6089_v19, %v6085_v57  ;;  %v7298_v57 = vpop.permute.xlu0 %7297 }
 0x235   : > { %9476 = vmatpush3.msra.mxu1 %v6099_v55  ;;  %6103 = vmatpush1.msra.mxu0 %v6101_v8  ;;  %v6988_v2 = vpop.permute.xlu1 %6987 }
 0x236   : > { %6243 = vmatprep.subr.mxu0 %v6091_v9  ;;  %9477 = vmatprep.mubr.msk.f32.mxu1 %vm9872_vm0, %v10625_v42  ;;  %v6994_v3 = vsel %vm1317_vm7, %v6988_v2, %v6990_v50  ;;  %v6995_v61 = vsel %vm1317_vm7, %v6992_v51, %v6988_v2 }
 0x237   : > { %9480 = vmatprep.subr.mxu1 %v10625_v42  ;;  %6166 = vmatprep.mubr.f32.mxu0 %v10625_v42 }
 0x238   : > { %9478 = vmatmul.mubr.msk.f32.vlgmr.msra.gmra.mrb[8].mxu1 %vm404_vm2, %v10983_v15  ;;  %9134 = vmatmul.mubr.msk.f32.vlgmr.msra.gmra.mrb[8].mxu0 %vm404_vm2, %v10983_v15  ;;  %v7510_v62 = vpop.permute.xlu0 %7509 }
 0x239   : > { %9481 = vmatpush3.msra.mxu1 %v6090_v12  ;;  %6244 = vmatpush1.msra.mxu0 %v6092_v7  ;;  %v1775_v63 = vpop.f32.mrb[0].mxu1  ;;  %v1704_v18 = vpop.f32.mrb[0].mxu0 }
 0x23a   : > { %6393 = vmatprep.subr.mxu0 %v6391_v14  ;;  %v1784_v0 = vmul.f32 %v1775_v63, %v9982_v29  ;;  %v9339_v22 = vpop.f32.mrb[1].mxu1  ;;  %9482 = vmatprep.mubr.msk.f32.mxu1 %vm9872_vm0, %v10625_v42  ;;  %v1782_v21 = vmul.f32 %v1704_v18, %v9984_v32  ;;  %v1706_v17 = vpop.f32.mrb[1].mxu0  ;;  %v11242_v63 = vld [vmem:[%s11427_s1 + $0x38] sm:$0xff] }
 0x23b   : > { %9485 = vmatprep.subr.mxu1 %v10625_v42  ;;  %6307 = vmatprep.mubr.f32.mxu0 %v10625_v42  ;;  %v1783_v16 = vmul.f32 %v1706_v17, %v9990_v40  ;;  %v7145_v52 = vpop.permute.xlu1 %7144 }
 0x23c   : > { %9046 = vst [vmem:[%s9942_s10 + $0x28] sm:$0xff] %v1784_v0  ;;  %9044 = vst [vmem:[%s9942_s10 + $0x18] sm:$0xff] %v1782_v21  ;;  %v1794_v24 = vmul.f32 %v1782_v21, %v1782_v21  ;;  %v1796_v31 = vmul.f32 %v1784_v0, %v1784_v0  ;;  %v7146_v19 = vsel %vm1474_vm8, %v7143_v46, %v7145_v52  ;;  %v7514_v12 = vpop.permute.xlu0 %7513 }
 0x23d   : > { %9045 = vst [vmem:[%s9942_s10 + $0x20] sm:$0xff] %v1783_v16  ;;  %v1789_v26 = vadd.f32 %v1783_v16, %v1782_v21  ;;  %v1795_v44 = vmul.f32 %v1783_v16, %v1783_v16  ;;  %v7148_v8 = vsel %vm1474_vm8, %v7145_v52, %v7141_v60  ;;  %v7517_v21 = vsel %vm400_vm1, %v7514_v12, %v7510_v62  ;;  %v11261_v16 = vld [vmem:[%s11427_s1 + $0x40] sm:$0xff] }
 0x23f   : > { %v1790_v36 = vadd.f32 %v1789_v26, %v1784_v0  ;;  %v1797_v58 = vadd.f32 %v1795_v44, %v1794_v24  ;;  %v7296_v48 = vpop.permute.xlu1 %7295  ;;  %v11272_v26 = vld [vmem:[%s9942_s10] sm:$0xff] }
 0x240   : > { %9483 = vmatmul.mubr.msk.f32.vlgmr.msra.gmra.mrb[8].mxu1 %vm404_vm2, %v11002_v23  ;;  %9136 = vmatmul.mubr.msk.f32.vlgmr.msra.gmra.mrb[8].mxu0 %vm404_vm2, %v11002_v23  ;;  %v7299_v9 = vsel %vm1631_vm9, %v7296_v48, %v7298_v57  ;;  %v7503_v0 = vpop.permute.xlu0 %7502 }
 0x241   : > { %9486 = vmatpush3.msra.mxu1 %v6390_v30  ;;  %6394 = vmatpush1.msra.mxu0 %v6392_v33  ;;  %v1798_v45 = vadd.f32 %v1797_v58, %v1796_v31 }
 0x242   : > { %6546 = vmatprep.subr.mxu0 %v6544_v41  ;;  %1791 = vadd.xlane.f32.xlu0 %v1790_v36 }
 0x243   : > { %9487 = vmatprep.mubr.msk.f32.mxu1 %vm9872_vm0, %v10625_v42  ;;  %9490 = vmatprep.subr.mxu1 %v10625_v42  ;;  %v7294_v1 = vpop.permute.xlu1 %7293 }
 0x244   : > { %1799 = vadd.xlane.f32.xlu1 %v1798_v45  ;;  %6457 = vmatprep.mubr.f32.mxu0 %v10625_v42  ;;  %v7300_v5 = vsel %vm1631_vm9, %v7294_v1, %v7296_v48  ;;  %v7301_v14 = vsel %vm1631_vm9, %v7298_v57, %v7294_v1  ;;  %v7801_v38 = vpop.permute.xlu0 %7800 }
 0x247   : > { %v7512_v55 = vpop.permute.xlu1 %7511 }
 0x248   : > { %9488 = vmatmul.mubr.msk.f32.vlgmr.msra.gmra.mrb[8].mxu1 %vm404_vm2, %v11021_v27  ;;  %9138 = vmatmul.mubr.msk.f32.vlgmr.msra.gmra.mrb[8].mxu0 %vm404_vm2, %v11021_v27  ;;  %v7516_v18 = vsel %vm400_vm1, %v7510_v62, %v7512_v55  ;;  %v7515_v17 = vsel %vm400_vm1, %v7512_v55, %v7514_v12 }
 0x249   : > { %9491 = vmatpush3.msra.mxu1 %v6543_v28  ;;  %6547 = vmatpush1.msra.mxu0 %v6545_v47 }
 0x24a   : > { %6690 = vmatprep.subr.mxu0 %v10549_v34  ;;  %9492 = vmatprep.mubr.msk.f32.mxu1 %vm9872_vm0, %v10625_v42  ;;  %v6840_v34 = vsel %vm1160_vm6, %v6837_v39, %v6839_v49 }
 0x24b   : > { %9495 = vmatprep.subr.mxu1 %v10625_v42  ;;  %6610 = vmatprep.mubr.f32.mxu0 %v10625_v42  ;;  %v7501_v7 = vpop.permute.xlu1 %7500 }
 0x24c   : > { %v7507_v24 = vsel %vm390_vm3, %v7501_v7, %v7503_v0 }
 0x24f   : > { %v7505_v22 = vpop.permute.xlu1 %7504 }
 0x250   : > { %9493 = vmatmul.mubr.msk.f32.vlgmr.msra.gmra.mrb[8].mxu1 %vm404_vm2, %v11164_v53  ;;  %9140 = vmatmul.mubr.msk.f32.vlgmr.msra.gmra.mrb[8].mxu0 %vm404_vm2, %v11164_v53  ;;  %v7506_v44 = vsel %vm390_vm3, %v7503_v0, %v7505_v22  ;;  %v7508_v33 = vsel %vm390_vm3, %v7505_v22, %v7501_v7 }
 0x251   : > { %9496 = vmatpush3.msra.mxu1 %v10528_v25  ;;  %6691 = vmatpush1.msra.mxu0 %v10497_v13  ;;  %v6842_v25 = vsel %vm1160_vm6, %v6839_v49, %v6835_v35  ;;  %v11185_v13 = vld [vmem:[%s11427_s1 + $0x20] sm:$0xff] }
 0x252   : > { %6843 = vmatprep.subr.mxu0 %v6840_v34  ;;  %9497 = vmatprep.mubr.msk.f32.mxu1 %vm9872_vm0, %v10625_v42 }
 0x253   : > { %9500 = vmatprep.subr.mxu1 %v10625_v42  ;;  %6754 = vmatprep.mubr.f32.mxu0 %v10625_v42  ;;  %v7803_v6 = vpop.permute.xlu1 %7802 }
 0x254   : > { %v7807_v30 = vsel %vm699_vm4, %v7801_v38, %v7803_v6 }
 0x257   : > { %v7954_v35 = vpop.permute.xlu1 %7953 }
 0x258   : > { %9498 = vmatmul.mubr.msk.f32.vlgmr.msra.gmra.mrb[8].mxu1 %vm404_vm2, %v11185_v13  ;;  %9142 = vmatmul.mubr.msk.f32.vlgmr.msra.gmra.mrb[8].mxu0 %vm404_vm2, %v11185_v13 }
 0x259   : > { %9501 = vmatpush3.msra.mxu1 %v6842_v25  ;;  %6844 = vmatpush1.msra.mxu0 %v6841_v59 }
 0x25a   : > { %6996 = vmatprep.subr.mxu0 %v6993_v20  ;;  %9502 = vmatprep.mubr.msk.f32.mxu1 %vm9872_vm0, %v10625_v42 }
 0x25b   : > { %9505 = vmatprep.subr.mxu1 %v10625_v42  ;;  %6907 = vmatprep.mubr.f32.mxu0 %v10625_v42  ;;  %v7958_v60 = vpop.permute.xlu1 %7957 }
 0x25c   : > { %v7961_v20 = vsel %vm856_vm5, %v7958_v60, %v7954_v35 }
 0x25f   : > { %v8255_v57 = vpop.permute.xlu1 %8254 }
 0x260   : > { %9503 = vmatmul.mubr.msk.f32.vlgmr.msra.gmra.mrb[8].mxu1 %vm404_vm2, %v11204_v37  ;;  %9144 = vmatmul.mubr.msk.f32.vlgmr.msra.gmra.mrb[8].mxu0 %vm404_vm2, %v11204_v37 }
 0x261   : > { %9506 = vmatpush3.msra.mxu1 %v6995_v61  ;;  %6997 = vmatpush1.msra.mxu0 %v6994_v3 }
 0x262   : > { %7149 = vmatprep.subr.mxu0 %v7146_v19  ;;  %9507 = vmatprep.mubr.msk.f32.mxu1 %vm9872_vm0, %v10625_v42 }
 0x263   : > { %9510 = vmatprep.subr.mxu1 %v10625_v42  ;;  %7060 = vmatprep.mubr.f32.mxu0 %v10625_v42 }
 0x268   : > { %9508 = vmatmul.mubr.msk.f32.vlgmr.msra.gmra.mrb[8].mxu1 %vm404_vm2, %v11223_v54  ;;  %9146 = vmatmul.mubr.msk.f32.vlgmr.msra.gmra.mrb[8].mxu0 %vm404_vm2, %v11223_v54 }
 0x269   : > { %9511 = vmatpush3.msra.mxu1 %v7148_v8  ;;  %7150 = vmatpush1.msra.mxu0 %v7147_v10 }
 0x26a   : > { %7302 = vmatprep.subr.mxu0 %v7299_v9  ;;  %9512 = vmatprep.mubr.msk.f32.mxu1 %vm9872_vm0, %v10625_v42 }
 0x26b   : > { %9515 = vmatprep.subr.mxu1 %v10625_v42  ;;  %7213 = vmatprep.mubr.f32.mxu0 %v10625_v42 }
 0x270   : > { %9513 = vmatmul.mubr.msk.f32.vlgmr.msra.gmra.mrb[8].mxu1 %vm404_vm2, %v11242_v63  ;;  %9148 = vmatmul.mubr.msk.f32.vlgmr.msra.gmra.mrb[8].mxu0 %vm404_vm2, %v11242_v63 }
 0x271   : > { %9516 = vmatpush3.msra.mxu1 %v7301_v14  ;;  %7303 = vmatpush1.msra.mxu0 %v7300_v5 }
 0x272   : > { %7518 = vmatprep.subr.mxu0 %v7516_v18  ;;  %9517 = vmatprep.mubr.msk.f32.mxu1 %vm9872_vm0, %v10625_v42 }
 0x273   : > { %9520 = vmatprep.subr.mxu1 %v10625_v42  ;;  %7366 = vmatprep.mubr.f32.mxu0 %v10625_v42 }
 0x278   : > { %9518 = vmatmul.mubr.msk.f32.vlgmr.msra.gmra.mrb[8].mxu1 %vm404_vm2, %v11261_v16  ;;  %9150 = vmatmul.mubr.msk.f32.vlgmr.msra.gmra.mrb[8].mxu0 %vm404_vm2, %v11261_v16 }
 0x279   : > { %9521 = vmatpush3.msra.mxu1 %v7515_v17  ;;  %7519 = vmatpush1.msra.mxu0 %v7517_v21 }
 0x27a   : > { %7659 = vmatprep.subr.mxu0 %v7507_v24  ;;  %9522 = vmatprep.mubr.msk.f32.mxu1 %vm9872_vm0, %v10625_v42  ;;  %v7805_v42 = vpop.permute.xlu0 %7804 }
 0x27b   : > { %9525 = vmatprep.subr.mxu1 %v11272_v26  ;;  %7582 = vmatprep.mubr.f32.mxu0 %v11272_v26  ;;  %v7808_v50 = vsel %vm699_vm4, %v7805_v42, %v7801_v38  ;;  %v7806_v51 = vsel %vm699_vm4, %v7803_v6, %v7805_v42 }
 0x27c   : > { %9523 = vmatmul.mubr.msk.f32.vlgmr.msra.gmra.mrb[10].mxu1 %vm404_vm2, %v10983_v15  ;;  %9161 = vmatmul.mubr.msk.f32.vlgmr.msra.gmra.mrb[10].mxu0 %vm404_vm2, %v10983_v15 }
 0x27d   : > { %9526 = vmatpush3.msra.mxu1 %v7506_v44  ;;  %7660 = vmatpush1.msra.mxu0 %v7508_v33 }
 0x27e   : > { %7809 = vmatprep.subr.mxu0 %v7807_v30  ;;  %v3191_v31 = vpop.f32.mrb[2].mxu1  ;;  %v3120_v36 = vpop.f32.mrb[2].mxu0  ;;  %9527 = vmatprep.mubr.msk.f32.mxu1 %vm9872_vm0, %v11272_v26 }
 0x27f   : > { %v3200_v58 = vmul.f32 %v3191_v31, %v9982_v29  ;;  %v3198_v39 = vmul.f32 %v3120_v36, %v9984_v32  ;;  %v9384_v15 = vpop.f32.mrb[3].mxu1  ;;  %v3122_v41 = vpop.f32.mrb[3].mxu0  ;;  %9530 = vmatprep.subr.mxu1 %v11272_v26  ;;  %7723 = vmatprep.mubr.f32.mxu0 %v11272_v26 }
 0x280   : > { %v3199_v45 = vmul.f32 %v3122_v41, %v9990_v40  ;;  %v7956_v2 = vpop.permute.xlu0 %7955 }
 0x281   : > { %9073 = vst [vmem:[%s9942_s10 + $0x40] sm:$0xff] %v3200_v58  ;;  %9071 = vst [vmem:[%s9942_s10 + $0x30] sm:$0xff] %v3198_v39  ;;  %v3210_v49 = vmul.f32 %v3198_v39, %v3198_v39  ;;  %v3212_v34 = vmul.f32 %v3200_v58, %v3200_v58  ;;  %v7960_v59 = vsel %vm856_vm5, %v7954_v35, %v7956_v2 }
 0x282   : > { %9072 = vst [vmem:[%s9942_s10 + $0x38] sm:$0xff] %v3199_v45  ;;  %v3205_v28 = vadd.f32 %v3199_v45, %v3198_v39  ;;  %v3211_v47 = vmul.f32 %v3199_v45, %v3199_v45 }
 0x284   : > { %9528 = vmatmul.mubr.msk.f32.vlgmr.msra.gmra.mrb[10].mxu1 %vm404_vm2, %v11002_v23  ;;  %9163 = vmatmul.mubr.msk.f32.vlgmr.msra.gmra.mrb[10].mxu0 %vm404_vm2, %v11002_v23  ;;  %v3206_v46 = vadd.f32 %v3205_v28, %v3200_v58  ;;  %v3213_v52 = vadd.f32 %v3211_v47, %v3210_v49  ;;  %v7959_v23 = vsel %vm856_vm5, %v7956_v2, %v7958_v60  ;;  %v8253_v48 = vpop.permute.xlu0 %8252 }
 0x285   : > { %9531 = vmatpush3.msra.mxu1 %v7806_v51  ;;  %7810 = vmatpush1.msra.mxu0 %v7808_v50 }
 0x286   : > { %7962 = vmatprep.subr.mxu0 %v7960_v59  ;;  %3207 = vadd.xlane.f32.xlu0 %v3206_v46  ;;  %v3214_v25 = vadd.f32 %v3213_v52, %v3212_v34 }
 0x287   : > { %9532 = vmatprep.mubr.msk.f32.mxu1 %vm9872_vm0, %v11272_v26  ;;  %9535 = vmatprep.subr.mxu1 %v11272_v26 }
 0x288   : > { %7873 = vmatprep.mubr.f32.mxu0 %v11272_v26  ;;  %v8251_v3 = vpop.permute.xlu0 %8250 }
 0x28a   : > { %3215 = vadd.xlane.f32.xlu0 %v3214_v25 }
 0x28c   : > { %9533 = vmatmul.mubr.msk.f32.vlgmr.msra.gmra.mrb[10].mxu1 %vm404_vm2, %v11021_v27  ;;  %9165 = vmatmul.mubr.msk.f32.vlgmr.msra.gmra.mrb[10].mxu0 %vm404_vm2, %v11021_v27  ;;  %v8406_v27 = vpop.permute.xlu1 %8405  ;;  %v8408_v61 = vpop.permute.xlu0 %8407 }
 0x28d   : > { %9536 = vmatpush3.msra.mxu1 %v7959_v23  ;;  %7963 = vmatpush1.msra.mxu0 %v7961_v20  ;;  %v8409_v19 = vsel %vm1317_vm7, %v8406_v27, %v8408_v61 }
 0x28e   : > { %8106 = vmatprep.subr.mxu0 %v10761_v11  ;;  %9537 = vmatprep.mubr.msk.f32.mxu1 %vm9872_vm0, %v11272_v26  ;;  %v8256_v11 = vsel %vm1160_vm6, %v8253_v48, %v8255_v57 }
 0x28f   : > { %9540 = vmatprep.subr.mxu1 %v11272_v26  ;;  %8026 = vmatprep.mubr.f32.mxu0 %v11272_v26 }
 0x290   : > { %v8559_v1 = vpop.permute.xlu0 %8558 }
 0x294   : > { %9538 = vmatmul.mubr.msk.f32.vlgmr.msra.gmra.mrb[10].mxu1 %vm404_vm2, %v11164_v53  ;;  %9167 = vmatmul.mubr.msk.f32.vlgmr.msra.gmra.mrb[10].mxu0 %vm404_vm2, %v11164_v53  ;;  %v8257_v53 = vsel %vm1160_vm6, %v8251_v3, %v8253_v48  ;;  %v8557_v55 = vpop.permute.xlu0 %8556 }
 0x295   : > { %9541 = vmatpush3.msra.mxu1 %v10748_v4  ;;  %8107 = vmatpush1.msra.mxu0 %v10725_v43  ;;  %v8258_v4 = vsel %vm1160_vm6, %v8255_v57, %v8251_v3  ;;  %v8404_v43 = vpop.permute.xlu1 %8403  ;;  %v8563_v12 = vsel %vm1474_vm8, %v8557_v55, %v8559_v1 }
 0x296   : > { %8259 = vmatprep.subr.mxu0 %v8256_v11  ;;  %9542 = vmatprep.mubr.msk.f32.mxu1 %vm9872_vm0, %v11272_v26  ;;  %v8410_v10 = vsel %vm1317_vm7, %v8404_v43, %v8406_v27 }
 0x297   : > { %9545 = vmatprep.subr.mxu1 %v11272_v26  ;;  %8170 = vmatprep.mubr.f32.mxu0 %v11272_v26 }
 0x298   : > { %v8714_v7 = vpop.permute.xlu0 %8713 }
 0x299   : > { %v8561_v62 = vpop.permute.xlu1 %8560 }
 0x29a   : > { %v8562_v8 = vsel %vm1474_vm8, %v8559_v1, %v8561_v62 }
 0x29c   : > { %9543 = vmatmul.mubr.msk.f32.vlgmr.msra.gmra.mrb[10].mxu1 %vm404_vm2, %v11185_v13  ;;  %9169 = vmatmul.mubr.msk.f32.vlgmr.msra.gmra.mrb[10].mxu0 %vm404_vm2, %v11185_v13  ;;  %v8411_v13 = vsel %vm1317_vm7, %v8408_v61, %v8404_v43 }
 0x29d   : > { %9546 = vmatpush3.msra.mxu1 %v8258_v4  ;;  %8260 = vmatpush1.msra.mxu0 %v8257_v53  ;;  %v8712_v9 = vpop.permute.xlu1 %8711 }
 0x29e   : > { %8412 = vmatprep.subr.mxu0 %v8409_v19  ;;  %9547 = vmatprep.mubr.msk.f32.mxu1 %vm9872_vm0, %v11272_v26  ;;  %v8715_v5 = vsel %vm1631_vm9, %v8712_v9, %v8714_v7 }
 0x29f   : > { %9550 = vmatprep.subr.mxu1 %v11272_v26  ;;  %8323 = vmatprep.mubr.f32.mxu0 %v11272_v26 }
 0x2a1   : > { %v8710_v14 = vpop.permute.xlu1 %8709 }
 0x2a2   : > { %v8716_v0 = vsel %vm1631_vm9, %v8710_v14, %v8712_v9 }
 0x2a4   : > { %9548 = vmatmul.mubr.msk.f32.vlgmr.msra.gmra.mrb[10].mxu1 %vm404_vm2, %v11204_v37  ;;  %9171 = vmatmul.mubr.msk.f32.vlgmr.msra.gmra.mrb[10].mxu0 %vm404_vm2, %v11204_v37  ;;  %v8564_v37 = vsel %vm1474_vm8, %v8561_v62, %v8557_v55 }
 0x2a5   : > { %9551 = vmatpush3.msra.mxu1 %v8411_v13  ;;  %8413 = vmatpush1.msra.mxu0 %v8410_v10 }
 0x2a6   : > { %8565 = vmatprep.subr.mxu0 %v8562_v8  ;;  %9552 = vmatprep.mubr.msk.f32.mxu1 %vm9872_vm0, %v11272_v26 }
 0x2a7   : > { %9555 = vmatprep.subr.mxu1 %v11272_v26  ;;  %8476 = vmatprep.mubr.f32.mxu0 %v11272_v26 }
 0x2ac   : > { %9553 = vmatmul.mubr.msk.f32.vlgmr.msra.gmra.mrb[10].mxu1 %vm404_vm2, %v11223_v54  ;;  %9173 = vmatmul.mubr.msk.f32.vlgmr.msra.gmra.mrb[10].mxu0 %vm404_vm2, %v11223_v54  ;;  %v8717_v54 = vsel %vm1631_vm9, %v8714_v7, %v8710_v14 }
 0x2ad   : > { %9556 = vmatpush3.msra.mxu1 %v8564_v37  ;;  %8566 = vmatpush1.msra.mxu0 %v8563_v12 }
 0x2ae   : > { %8718 = vmatprep.subr.mxu0 %v8715_v5  ;;  %9557 = vmatprep.mubr.msk.f32.mxu1 %vm9872_vm0, %v11272_v26 }
 0x2af   : > { %9560 = vmatprep.subr.mxu1 %v11272_v26  ;;  %8629 = vmatprep.mubr.f32.mxu0 %v11272_v26 }
 0x2b4   : > { %9558 = vmatmul.mubr.msk.f32.vlgmr.msra.gmra.mrb[10].mxu1 %vm404_vm2, %v11242_v63  ;;  %9175 = vmatmul.mubr.msk.f32.vlgmr.msra.gmra.mrb[10].mxu0 %vm404_vm2, %v11242_v63 }
 0x2b5   : > { %9561 = vmatpush3.msra.mxu1 %v8717_v54  ;;  %8719 = vmatpush1.msra.mxu0 %v8716_v0 }
 0x2b6   : > { %9562 = vmatprep.mubr.msk.f32.mxu1 %vm9872_vm0, %v11272_v26  ;;  %8782 = vmatprep.mubr.f32.mxu0 %v11272_v26 }
 0x2bc   : > { %9563 = vmatmul.mubr.msk.f32.vlgmr.msra.gmra.mrb[10].mxu1 %vm404_vm2, %v11261_v16  ;;  %9177 = vmatmul.mubr.msk.f32.vlgmr.msra.gmra.mrb[10].mxu0 %vm404_vm2, %v11261_v16 }
 0x2c3   : > { %v4607_v56 = vpop.f32.mrb[4].mxu1  ;;  %v4536_v18 = vpop.f32.mrb[4].mxu0 }
 0x2c4   : > { %v4616_v22 = vmul.f32 %v4607_v56, %v9982_v29  ;;  %v4614_v63 = vmul.f32 %v4536_v18, %v9984_v32  ;;  %v9429_v38 = vpop.f32.mrb[5].mxu1  ;;  %v4538_v21 = vpop.f32.mrb[5].mxu0 }
 0x2c5   : > { %v4615_v17 = vmul.f32 %v4538_v21, %v9990_v40 }
 0x2c6   : > { %9100 = vst [vmem:[%s9942_s10 + $0x58] sm:$0xff] %v4616_v22  ;;  %9098 = vst [vmem:[%s9942_s10 + $0x48] sm:$0xff] %v4614_v63  ;;  %v4626_v24 = vmul.f32 %v4614_v63, %v4614_v63  ;;  %v4628_v44 = vmul.f32 %v4616_v22, %v4616_v22 }
 0x2c7   : > { %9099 = vst [vmem:[%s9942_s10 + $0x50] sm:$0xff] %v4615_v17  ;;  %v4621_v6 = vadd.f32 %v4615_v17, %v4614_v63  ;;  %v4627_v26 = vmul.f32 %v4615_v17, %v4615_v17 }
 0x2c9   : > { %v4622_v16 = vadd.f32 %v4621_v6, %v4616_v22  ;;  %v4629_v33 = vadd.f32 %v4627_v26, %v4626_v24 }
 0x2cb   : > { %4623 = vadd.xlane.f32.xlu1 %v4622_v16  ;;  %v4630_v42 = vadd.f32 %v4629_v33, %v4628_v44 }
 0x2cd   : > { %4631 = vadd.xlane.f32.xlu0 %v4630_v42 }
 0x307   : > { %v6023_v30 = vpop.f32.mrb[6].mxu1  ;;  %v5952_v31 = vpop.f32.mrb[6].mxu0 }
 0x308   : > { %v6032_v36 = vmul.f32 %v6023_v30, %v9982_v29  ;;  %v6030_v58 = vmul.f32 %v5952_v31, %v9984_v32  ;;  %v9474_v39 = vpop.f32.mrb[7].mxu1  ;;  %v5954_v15 = vpop.f32.mrb[7].mxu0 }
 0x309   : > { %v6031_v41 = vmul.f32 %v5954_v15, %v9990_v40 }
 0x30a   : > { %9127 = vst [vmem:[%s9942_s10 + $0x70] sm:$0xff] %v6032_v36  ;;  %9125 = vst [vmem:[%s9942_s10 + $0x60] sm:$0xff] %v6030_v58  ;;  %v6042_v45 = vmul.f32 %v6030_v58, %v6030_v58  ;;  %v6044_v28 = vmul.f32 %v6032_v36, %v6032_v36 }
 0x30b   : > { %9126 = vst [vmem:[%s9942_s10 + $0x68] sm:$0xff] %v6031_v41  ;;  %v6037_v49 = vadd.f32 %v6031_v41, %v6030_v58  ;;  %v6043_v35 = vmul.f32 %v6031_v41, %v6031_v41 }
 0x30d   : > { %v6038_v47 = vadd.f32 %v6037_v49, %v6032_v36  ;;  %v6045_v50 = vadd.f32 %v6043_v35, %v6042_v45 }
 0x30f   : > { %6039 = vadd.xlane.f32.xlu1 %v6038_v47  ;;  %v6046_v51 = vadd.f32 %v6045_v50, %v6044_v28 }
 0x311   : > { %6047 = vadd.xlane.f32.xlu0 %v6046_v51 }
 0x34b   : > { %v7439_v2 = vpop.f32.mrb[8].mxu1  ;;  %v7368_v34 = vpop.f32.mrb[8].mxu0 }
 0x34c   : > { %v7448_v46 = vmul.f32 %v7439_v2, %v9982_v29  ;;  %v7446_v52 = vmul.f32 %v7368_v34, %v9984_v32  ;;  %v9519_v59 = vpop.f32.mrb[9].mxu1  ;;  %v7370_v25 = vpop.f32.mrb[9].mxu0 }
 0x34d   : > { %v7447_v60 = vmul.f32 %v7370_v25, %v9990_v40 }
 0x34e   : > { %9154 = vst [vmem:[%s9942_s10 + $0x88] sm:$0xff] %v7448_v46  ;;  %9152 = vst [vmem:[%s9942_s10 + $0x78] sm:$0xff] %v7446_v52  ;;  %v7458_v23 = vmul.f32 %v7446_v52, %v7446_v52  ;;  %v7460_v57 = vmul.f32 %v7448_v46, %v7448_v46 }
 0x34f   : > { %9153 = vst [vmem:[%s9942_s10 + $0x80] sm:$0xff] %v7447_v60  ;;  %v7453_v20 = vadd.f32 %v7447_v60, %v7446_v52  ;;  %v7459_v48 = vmul.f32 %v7447_v60, %v7447_v60 }
 0x351   : > { %v7454_v3 = vadd.f32 %v7453_v20, %v7448_v46  ;;  %v7461_v11 = vadd.f32 %v7459_v48, %v7458_v23 }
 0x353   : > { %7455 = vadd.xlane.f32.xlu1 %v7454_v3  ;;  %v7462_v27 = vadd.f32 %v7461_v11, %v7460_v57 }
 0x355   : > { %7463 = vadd.xlane.f32.xlu0 %v7462_v27 }
 0x38f   : > { %v8855_v61 = vpop.f32.mrb[10].mxu1  ;;  %v8784_v53 = vpop.f32.mrb[10].mxu0 }
 0x390   : > { %v8864_v4 = vmul.f32 %v8855_v61, %v9982_v29  ;;  %v8862_v43 = vmul.f32 %v8784_v53, %v9984_v32  ;;  %v9564_v19 = vpop.f32.mrb[11].mxu1  ;;  %v8786_v1 = vpop.f32.mrb[11].mxu0 }
 0x391   : > { %v8863_v62 = vmul.f32 %v8786_v1, %v9990_v40  ;;  %v1792_v29 = vpop.xlane.xlu0 %1791  ;;  %v1800_v32 = vpop.xlane.xlu1 %1799 }
 0x392   : > { %9181 = vst [vmem:[%s9942_s10 + $0xa0] sm:$0xff] %v8864_v4  ;;  %9179 = vst [vmem:[%s9942_s10 + $0x90] sm:$0xff] %v8862_v43  ;;  %v8874_v10 = vmul.f32 %v8862_v43, %v8862_v43  ;;  %v8876_v55 = vmul.f32 %v8864_v4, %v8864_v4 }
 0x393   : > { %9180 = vst [vmem:[%s9942_s10 + $0x98] sm:$0xff] %v8863_v62  ;;  %v8869_v13 = vadd.f32 %v8863_v62, %v8862_v43  ;;  %v8875_v8 = vmul.f32 %v8863_v62, %v8863_v62  ;;  %s9013_s10 = sshll.u32 %s11435_s25, 3 }
 0x394   : > { %s295_s14 = scalar_lea.vmem %s11432_s6, %s9013_s10  ;;  %s299_s19 = scalar_lea.vmem %s11433_s7, %s9013_s10 }
 0x395   : > { %v8870_v9 = vadd.f32 %v8869_v13, %v8864_v4  ;;  %v8877_v12 = vadd.f32 %v8875_v8, %v8874_v10  ;;  %v3208_v37 = vpop.xlane.xlu0 %3207  ;;  %v4624_v14 = vpop.xlane.xlu1 %4623 }
 0x396   : > { %v3209_v54 = vadd.f32 %v3208_v37, %v1792_v29 }
 0x397   : > { %8871 = vadd.xlane.f32.xlu1 %v8870_v9  ;;  %v8878_v7 = vadd.f32 %v8877_v12, %v8876_v55 }
 0x398   : > { %v4625_v22 = vadd.f32 %v4624_v14, %v3209_v54 }
 0x399   : > { %8879 = vadd.xlane.f32.xlu0 %v8878_v7  ;;  %v3216_v5 = vpop.xlane.xlu0 %3215 }
 0x39a   : > { %v3217_v18 = vadd.f32 %v3216_v5, %v1800_v32 }
 0x39c   : > { %v6040_v40 = vpop.xlane.xlu1 %6039 }
 0x39d   : > { %v4632_v0 = vpop.xlane.xlu0 %4631  ;;  %v6041_v21 = vadd.f32 %v6040_v40, %v4625_v22 }
 0x39e   : > { %v4633_v38 = vadd.f32 %v4632_v0, %v3217_v18 }
 0x3a1   : > { %v6048_v56 = vpop.xlane.xlu0 %6047 }
 0x3a2   : > { %v6049_v24 = vadd.f32 %v6048_v56, %v4633_v38 }
 0x3e0   : > { %v7456_v63 = vpop.xlane.xlu1 %7455 }
 0x3e1   : > { %v7457_v6 = vadd.f32 %v7456_v63, %v6041_v21 }
 0x3e2   : > { %v7464_v17 = vpop.xlane.xlu0 %7463 }
 0x3e3   : > { %v7465_v44 = vadd.f32 %v7464_v17, %v6049_v24 }
 0x424   : > { %v8872_v26 = vpop.xlane.xlu1 %8871 }
 0x425   : > { %v8873_v16 = vadd.f32 %v8872_v26, %v7457_v6 }
 0x426   : > { %v8880_v33 = vpop.xlane.xlu0 %8879 }
 0x427   : > { %8887 = vst.msk [vmem:[%s295_s14] sm:$0xff] %vm8886_vm10, %v8873_v16  ;;  %v8881_v42 = vadd.f32 %v8880_v33, %v7465_v44 }
 0x429   : > { %8888 = vst.msk [vmem:[%s299_s19] sm:$0xff] %vm8886_vm10, %v8881_v42 }
 0x42a PF: > { %s18_s24 = sadd.s32 1, %s9868_s24  }
 0x42b   : > { %p15_p4 = scmp.ge.s32.totalorder %s18_s24, 4  }
 0x42d   :  { %17 = sbr.rel (!%p15_p4) target bundleno = 1 (0x1), region = 114 }

</bundles_post_ra>
